<compile_context>
chip_gen: v5e
topology: v5e:2x2
jax: 0.10.0
libtpu: 0.0.40
codegen_flags: <defaults>
</compile_context>

<pallas_src>
import itertools

import numpy as np
import jax
import jax.numpy as jnp
from jax import lax
from jax.experimental import pallas as pl
from jax.experimental.pallas import tpu as pltpu

# ----------------------------- configuration --------------------------------
DIM = 64                       # input channels C (divisible by 16 and num_heads)
NUM_HEADS = 4
ATTN_RATIO = 4
RESOLUTION = 7                 # window size -> N = 49 tokens
KS = 5                         # depthwise kernel size (kernels=[5,5,5,5])
PAD = KS // 2

KEY_DIM = DIM // 16            # 4
D = ATTN_RATIO * KEY_DIM       # 16  (value dim per head)
CH = DIM // NUM_HEADS          # 16  (per-head input channels)
QKV_OUT = 2 * KEY_DIM + D      # 24  (fused q|k|v output width)
N = RESOLUTION * RESOLUTION    # 49
SCALE = KEY_DIM ** -0.5
B = 2

assert CH == D, "cascade residual add requires dim/num_heads == attn_ratio*key_dim"


# ------------------------------- Pallas kernel -------------------------------
def cga_kernel(x_ref, wqkv_ref, bqkv_ref, dwm_ref, dwb_ref, ab_ref, wp_ref, bp_ref,
               o_ref):
    # x_ref    : (NUM_HEADS, N, CH)          per-head channel chunks of one batch element (f32)
    # wqkv_ref : (NUM_HEADS, CH, QKV_OUT)    fused q|k|v weights (BN + attn scale folded, bf16)
    # bqkv_ref : (NUM_HEADS, 1, QKV_OUT)     fused q|k|v bias (f32)
    # dwm_ref  : (NUM_HEADS, KEY_DIM, N, N)  depthwise conv as per-channel (N,N) operator (bf16)
    # dwb_ref  : (NUM_HEADS, 1, KEY_DIM)     depthwise bias (attn scale folded, f32)
    # ab_ref   : (NUM_HEADS, N, N)           gathered attention biases (f32)
    # wp_ref   : (NUM_HEADS, D, DIM)         per-head slice of projection weight (bf16)
    # bp_ref   : (1, DIM)                    projection bias (f32)
    # o_ref    : (N, DIM)

    # one-hot lane selectors used to re-assemble the per-channel depthwise results
    lane = lax.broadcasted_iota(jnp.int32, (1, KEY_DIM), 1)
    sels = [(lane == c).astype(jnp.float32) for c in range(KEY_DIM)]

    out_acc = jnp.zeros((N, DIM), jnp.float32)
    feat = None
    for i in range(NUM_HEADS):
        chunk = x_ref[i]                                     # (N, CH) f32
        feat = chunk if i == 0 else feat + chunk             # cascade add (f32)
        feat_bf = feat.astype(jnp.bfloat16)

        # fused q|k|v projection (single MXU matmul per head)
        qkv = jnp.dot(feat_bf, wqkv_ref[i],
                      preferred_element_type=jnp.float32) + bqkv_ref[i]   # (N, QKV_OUT)
        q = qkv[:, :KEY_DIM].astype(jnp.bfloat16)            # (N, KEY_DIM), scale folded
        k = qkv[:, KEY_DIM:2 * KEY_DIM].astype(jnp.bfloat16) # (N, KEY_DIM)
        v = qkv[:, 2 * KEY_DIM:].astype(jnp.bfloat16)        # (N, D)

        # depthwise 5x5 conv on q as KEY_DIM small (N,N) MXU matmuls:
        #   q_dw[:, c] = dwm[i, c] @ q[:, c]   (select column c of each result)
        q_dw = jnp.zeros((N, KEY_DIM), jnp.float32)
        for c in range(KEY_DIM):
            full = jnp.dot(dwm_ref[i, c], q, preferred_element_type=jnp.float32)
            q_dw = q_dw + full * sels[c]
        q_dw = q_dw + dwb_ref[i]                             # (N, KEY_DIM) f32

        # logits[n, m] = q_dw[n, :] . k[m, :]  (attention scale already folded into q path)
        logits = lax.dot_general(q_dw.astype(jnp.bfloat16), k,
                                 (((1,), (1,)), ((), ())),
                                 preferred_element_type=jnp.float32)      # (N, N)
        logits = logits + ab_ref[i]

        # softmax over keys (f32 math; approx reciprocal runs on the EUP slot)
        logits = logits - jnp.max(logits, axis=-1, keepdims=True)
        p = jnp.exp(logits)
        attn = p * pl.reciprocal(jnp.sum(p, axis=-1, keepdims=True), approx=True)

        feat = jnp.dot(attn.astype(jnp.bfloat16), v,
                       preferred_element_type=jnp.float32)                # (N, D) f32

        # projection folded into the head loop (replaces concat -> relu -> big dot)
        out_acc = out_acc + jnp.dot(jnp.maximum(feat, 0.0).astype(jnp.bfloat16),
                                    wp_ref[i], preferred_element_type=jnp.float32)

    o_ref[...] = (out_acc + bp_ref[...]).astype(o_ref.dtype)


def run_pallas(x, kp):
    """x: (B, N, DIM) float32; kp: kernel-layout params."""
    Bn = x.shape[0]
    # split channels into per-head chunks -> (B, NUM_HEADS, N, CH)
    x_chunks = jnp.transpose(x.reshape(Bn, N, NUM_HEADS, CH), (0, 2, 1, 3))

    in_specs = [
        pl.BlockSpec((None, NUM_HEADS, N, CH), lambda b: (b, 0, 0, 0)),       # x
        pl.BlockSpec((NUM_HEADS, CH, QKV_OUT), lambda b: (0, 0, 0)),          # wqkv
        pl.BlockSpec((NUM_HEADS, 1, QKV_OUT), lambda b: (0, 0, 0)),           # bqkv
        pl.BlockSpec((NUM_HEADS, KEY_DIM, N, N), lambda b: (0, 0, 0, 0)),     # dwm
        pl.BlockSpec((NUM_HEADS, 1, KEY_DIM), lambda b: (0, 0, 0)),           # dwb
        pl.BlockSpec((NUM_HEADS, N, N), lambda b: (0, 0, 0)),                 # attn bias
        pl.BlockSpec((NUM_HEADS, D, DIM), lambda b: (0, 0, 0)),               # wp
        pl.BlockSpec((1, DIM), lambda b: (0, 0)),                             # bp
    ]
    out_specs = pl.BlockSpec((None, N, DIM), lambda b: (b, 0, 0))

    fn = pl.pallas_call(
        cga_kernel,
        out_shape=jax.ShapeDtypeStruct((Bn, N, DIM), jnp.float32),
        grid=(Bn,),
        in_specs=in_specs,
        out_specs=out_specs,
        compiler_params=pltpu.CompilerParams(dimension_semantics=("parallel",)),
    )
    return fn(x_chunks, kp["wqkv"], kp["bqkv"], kp["dwm"], kp["dwb"],
              kp["ab"], kp["wp"], kp["bp"])


# ------------------------- deterministic parameter setup ---------------------
def make_params(key):
    keys = jax.random.split(key, 7)

    # Conv2d_BN blocks in folded (eval/deploy) form: w*scale, +bias.
    # (Synthetic deterministic values; PyTorch zero-inits such as proj-BN weight=0
    #  and attention_biases=0 replaced by small random values so the full path runs.)
    w_qkv = jax.random.normal(keys[0], (NUM_HEADS, QKV_OUT, CH), jnp.float32) / np.sqrt(CH)
    b_qkv = 0.1 * jax.random.normal(keys[1], (NUM_HEADS, QKV_OUT), jnp.float32)
    w_dw = jax.random.normal(keys[2], (NUM_HEADS, KEY_DIM, KS, KS), jnp.float32) / KS
    b_dw = 0.1 * jax.random.normal(keys[3], (NUM_HEADS, KEY_DIM), jnp.float32)
    w_proj = jax.random.normal(keys[4], (DIM, D * NUM_HEADS), jnp.float32) / np.sqrt(D * NUM_HEADS)
    b_proj = 0.1 * jax.random.normal(keys[5], (DIM,), jnp.float32)

    # attention bias table + index map, exactly as in the PyTorch __init__
    points = list(itertools.product(range(RESOLUTION), range(RESOLUTION)))
    attention_offsets = {}
    idxs = []
    for p1 in points:
        for p2 in points:
            offset = (abs(p1[0] - p2[0]), abs(p1[1] - p2[1]))
            if offset not in attention_offsets:
                attention_offsets[offset] = len(attention_offsets)
            idxs.append(attention_offsets[offset])
    idxs = np.asarray(idxs, dtype=np.int32).reshape(N, N)
    attention_biases = 0.1 * jax.random.normal(
        keys[6], (NUM_HEADS, len(attention_offsets)), jnp.float32)
    ab = attention_biases[:, idxs]                                   # (NUM_HEADS, N, N)

    # --- depthwise conv as a per-channel (N,N) operator, channel-major layout ---
    w_dw_np = np.asarray(w_dw)
    ys, xs = np.meshgrid(np.arange(RESOLUTION), np.arange(RESOLUTION), indexing="ij")
    py, px = ys.reshape(-1), xs.reshape(-1)
    dy = py[None, :] - py[:, None] + PAD          # [out_token, in_token]
    dx = px[None, :] - px[:, None] + PAD
    valid = ((dy >= 0) & (dy < KS) & (dx >= 0) & (dx < KS)).astype(np.float32)
    dyc = np.clip(dy, 0, KS - 1)
    dxc = np.clip(dx, 0, KS - 1)
    dwm = (w_dw_np[:, :, dyc, dxc] * valid[None, None]).astype(np.float32)  # (H, KEY_DIM, N, N)

    # reference-layout params (conv form)
    p = dict(w_qkv=w_qkv, b_qkv=b_qkv, w_dw=w_dw, b_dw=b_dw,
             ab=ab, w_proj=w_proj, b_proj=b_proj)

    # kernel-layout params: fused q|k|v (attention scale folded into q columns),
    # channel-major dwm, per-head projection weight slices; matmul operands in bf16.
    col_scale = np.concatenate([np.full((KEY_DIM,), SCALE, np.float32),
                                np.ones((KEY_DIM + D,), np.float32)])
    wqkv_k = jnp.transpose(w_qkv, (0, 2, 1)) * col_scale[None, None, :]     # (H, CH, QKV_OUT)
    bqkv_k = b_qkv * col_scale[None, :]                                     # (H, QKV_OUT)
    kp = dict(
        wqkv=wqkv_k.astype(jnp.bfloat16),
        bqkv=bqkv_k.reshape(NUM_HEADS, 1, QKV_OUT),
        dwm=jnp.asarray(dwm).astype(jnp.bfloat16),
        dwb=(b_dw * SCALE).reshape(NUM_HEADS, 1, KEY_DIM),
        ab=ab,
        wp=jnp.transpose(w_proj, (1, 0)).reshape(NUM_HEADS, D, DIM).astype(jnp.bfloat16),
        bp=b_proj.reshape(1, DIM),
    )
    return p, kp


# ----------------------------- pure-JAX reference ----------------------------
def reference(x, p):
    Bn = x.shape[0]
    Hs = Ws = RESOLUTION
    x4 = jnp.transpose(x.reshape(Bn, Hs, Ws, DIM), (0, 3, 1, 2))     # NCHW
    chunks = [x4[:, i * CH:(i + 1) * CH] for i in range(NUM_HEADS)]
    outs = []
    feat = chunks[0]
    for i in range(NUM_HEADS):
        if i > 0:
            feat = feat + chunks[i]
        f = jnp.einsum("bchw,oc->bohw", feat, p["w_qkv"][i]) + p["b_qkv"][i][None, :, None, None]
        q, k, v = f[:, :KEY_DIM], f[:, KEY_DIM:2 * KEY_DIM], f[:, 2 * KEY_DIM:]
        q = lax.conv_general_dilated(
            q, p["w_dw"][i][:, None], (1, 1), "SAME",
            feature_group_count=KEY_DIM,
            dimension_numbers=("NCHW", "OIHW", "NCHW"))
        q = q + p["b_dw"][i][None, :, None, None]
        qf, kf, vf = q.reshape(Bn, KEY_DIM, N), k.reshape(Bn, KEY_DIM, N), v.reshape(Bn, D, N)
        attn = jnp.einsum("bcn,bcm->bnm", qf, kf) * SCALE + p["ab"][i][None]
        attn = jax.nn.softmax(attn, axis=-1)
        feat = jnp.einsum("bcm,bnm->bcn", vf, attn).reshape(Bn, D, Hs, Ws)
        outs.append(feat)
    cat = jnp.concatenate(outs, axis=1)
    y = jax.nn.relu(cat)
    y = jnp.einsum("bchw,oc->bohw", y, p["w_proj"]) + p["b_proj"][None, :, None, None]
    return jnp.transpose(y, (0, 2, 3, 1)).reshape(Bn, N, DIM)


# ------------------------------------ main -----------------------------------
if __name__ == "__main__":
    root = jax.random.PRNGKey(0)
    kx, kparams = jax.random.split(root)
    x = jax.random.normal(kx, (B, N, DIM), dtype=jnp.float32)

    p, kp = make_params(kparams)

    out = run_pallas(x, kp)
    out = jax.block_until_ready(out)
    assert out.shape == (B, N, DIM)

    ref = reference(x, p)
    err = float(jnp.max(jnp.abs(out - ref)))
    scale = float(jnp.max(jnp.abs(ref)))
    # tolerance sized for bf16 MXU operands (f32 accumulation, f32 softmax/bias math)
    assert np.isfinite(err) and err < 5e-2 + 2e-2 * scale, f"max abs err {err} (ref max {scale})"
    print("KERNEL_OK")
</pallas_src>

<mosaic_0001>
module attributes {stable_mosaic.version = 11 : i64} {
  func.func @cga_kernel(%arg0: i32, %arg1: memref<1x4x49x16xf32, #tpu.memory_space<vmem>>, %arg2: memref<4x16x24xbf16, #tpu.memory_space<vmem>>, %arg3: memref<4x1x24xf32, #tpu.memory_space<vmem>>, %arg4: memref<4x4x49x49xbf16, #tpu.memory_space<vmem>>, %arg5: memref<4x1x4xf32, #tpu.memory_space<vmem>>, %arg6: memref<4x49x49xf32, #tpu.memory_space<vmem>>, %arg7: memref<4x16x64xbf16, #tpu.memory_space<vmem>>, %arg8: memref<1x64xf32, #tpu.memory_space<vmem>>, %arg9: memref<1x49x64xf32, #tpu.memory_space<vmem>>) attributes {dimension_semantics = [#tpu.dimension_semantics<parallel>], iteration_bounds = array<i64: 2>, scalar_prefetch = 0 : i64, scratch_operands = 0 : i64, tpu.core_type = #tpu.core_type<tc>, window_params = [{transform_indices = @transform_0, window_bounds = array<i64: 1, 4, 49, 16>}, {pipeline_mode = #tpu.pipeline_mode<synchronous>, transform_indices = @transform_1, window_bounds = array<i64: 4, 16, 24>}, {pipeline_mode = #tpu.pipeline_mode<synchronous>, transform_indices = @transform_2, window_bounds = array<i64: 4, 1, 24>}, {pipeline_mode = #tpu.pipeline_mode<synchronous>, transform_indices = @transform_3, window_bounds = array<i64: 4, 4, 49, 49>}, {pipeline_mode = #tpu.pipeline_mode<synchronous>, transform_indices = @transform_4, window_bounds = array<i64: 4, 1, 4>}, {pipeline_mode = #tpu.pipeline_mode<synchronous>, transform_indices = @transform_5, window_bounds = array<i64: 4, 49, 49>}, {pipeline_mode = #tpu.pipeline_mode<synchronous>, transform_indices = @transform_6, window_bounds = array<i64: 4, 16, 64>}, {pipeline_mode = #tpu.pipeline_mode<synchronous>, transform_indices = @transform_7, window_bounds = array<i64: 1, 64>}, {transform_indices = @transform_8, window_bounds = array<i64: 1, 49, 64>}]} {
    %0 = tpu.iota {dimensions = array<i32: 1>} : vector<1x4xi32>
    %c0_i32 = arith.constant 0 : i32
    %1 = vector.broadcast %c0_i32 : i32 to vector<1x4xi32>
    %2 = arith.cmpi eq, %0, %1 : vector<1x4xi32>
    %3 = arith.extui %2 : vector<1x4xi1> to vector<1x4xi32>
    %4 = arith.sitofp %3 : vector<1x4xi32> to vector<1x4xf32>
    %c1_i32 = arith.constant 1 : i32
    %5 = vector.broadcast %c1_i32 : i32 to vector<1x4xi32>
    %6 = arith.cmpi eq, %0, %5 : vector<1x4xi32>
    %7 = arith.extui %6 : vector<1x4xi1> to vector<1x4xi32>
    %8 = arith.sitofp %7 : vector<1x4xi32> to vector<1x4xf32>
    %c2_i32 = arith.constant 2 : i32
    %9 = vector.broadcast %c2_i32 : i32 to vector<1x4xi32>
    %10 = arith.cmpi eq, %0, %9 : vector<1x4xi32>
    %11 = arith.extui %10 : vector<1x4xi1> to vector<1x4xi32>
    %12 = arith.sitofp %11 : vector<1x4xi32> to vector<1x4xf32>
    %c3_i32 = arith.constant 3 : i32
    %13 = vector.broadcast %c3_i32 : i32 to vector<1x4xi32>
    %14 = arith.cmpi eq, %0, %13 : vector<1x4xi32>
    %15 = arith.extui %14 : vector<1x4xi1> to vector<1x4xi32>
    %16 = arith.sitofp %15 : vector<1x4xi32> to vector<1x4xf32>
    %cst = arith.constant 0.000000e+00 : f32
    %17 = vector.broadcast %cst : f32 to vector<49x64xf32>
    %c0 = arith.constant 0 : index
    %c0_0 = arith.constant 0 : index
    %c0_1 = arith.constant 0 : index
    %c0_2 = arith.constant 0 : index
    %18 = vector.load %arg1[%c0, %c0_0, %c0_1, %c0_2] : memref<1x4x49x16xf32, #tpu.memory_space<vmem>>, vector<1x1x49x16xf32>
    %19 = vector.shape_cast %18 : vector<1x1x49x16xf32> to vector<49x16xf32>
    %20 = arith.truncf %19 : vector<49x16xf32> to vector<49x16xbf16>
    %c0_3 = arith.constant 0 : index
    %c0_4 = arith.constant 0 : index
    %c0_5 = arith.constant 0 : index
    %21 = vector.load %arg2[%c0_3, %c0_4, %c0_5] : memref<4x16x24xbf16, #tpu.memory_space<vmem>>, vector<1x16x24xbf16>
    %22 = vector.shape_cast %21 : vector<1x16x24xbf16> to vector<16x24xbf16>
    %cst_6 = arith.constant dense<0.000000e+00> : vector<49x24xf32>
    %23 = tpu.matmul %20, %22, %cst_6 {dimension_numbers = #tpu.dot_dimension_numbers<[1], [0], [0], [1], [0, 0, 1, 1], [], []>} : vector<49x16xbf16>, vector<16x24xbf16>, vector<49x24xf32> -> vector<49x24xf32>
    %c0_7 = arith.constant 0 : index
    %c0_8 = arith.constant 0 : index
    %c0_9 = arith.constant 0 : index
    %24 = vector.load %arg3[%c0_7, %c0_8, %c0_9] : memref<4x1x24xf32, #tpu.memory_space<vmem>>, vector<1x1x24xf32>
    %25 = vector.shape_cast %24 : vector<1x1x24xf32> to vector<1x24xf32>
    %26 = vector.broadcast %25 : vector<1x24xf32> to vector<49x24xf32>
    %27 = arith.addf %23, %26 : vector<49x24xf32>
    %28 = vector.extract_strided_slice %27 {offsets = [0, 0], sizes = [49, 4], strides = [1, 1]} : vector<49x24xf32> to vector<49x4xf32>
    %29 = arith.truncf %28 : vector<49x4xf32> to vector<49x4xbf16>
    %30 = vector.extract_strided_slice %27 {offsets = [0, 4], sizes = [49, 4], strides = [1, 1]} : vector<49x24xf32> to vector<49x4xf32>
    %31 = arith.truncf %30 : vector<49x4xf32> to vector<49x4xbf16>
    %32 = vector.extract_strided_slice %27 {offsets = [0, 8], sizes = [49, 16], strides = [1, 1]} : vector<49x24xf32> to vector<49x16xf32>
    %33 = arith.truncf %32 : vector<49x16xf32> to vector<49x16xbf16>
    %cst_10 = arith.constant 0.000000e+00 : f32
    %34 = vector.broadcast %cst_10 : f32 to vector<49x4xf32>
    %c0_11 = arith.constant 0 : index
    %c0_12 = arith.constant 0 : index
    %c0_13 = arith.constant 0 : index
    %c0_14 = arith.constant 0 : index
    %35 = vector.load %arg4[%c0_11, %c0_12, %c0_13, %c0_14] : memref<4x4x49x49xbf16, #tpu.memory_space<vmem>>, vector<1x1x49x49xbf16>
    %36 = vector.shape_cast %35 : vector<1x1x49x49xbf16> to vector<49x49xbf16>
    %cst_15 = arith.constant dense<0.000000e+00> : vector<49x4xf32>
    %37 = tpu.matmul %36, %29, %cst_15 {dimension_numbers = #tpu.dot_dimension_numbers<[1], [0], [0], [1], [0, 0, 1, 1], [], []>} : vector<49x49xbf16>, vector<49x4xbf16>, vector<49x4xf32> -> vector<49x4xf32>
    %38 = vector.broadcast %4 : vector<1x4xf32> to vector<49x4xf32>
    %39 = arith.mulf %37, %38 : vector<49x4xf32>
    %40 = arith.addf %34, %39 : vector<49x4xf32>
    %c0_16 = arith.constant 0 : index
    %c1 = arith.constant 1 : index
    %c0_17 = arith.constant 0 : index
    %c0_18 = arith.constant 0 : index
    %41 = vector.load %arg4[%c0_16, %c1, %c0_17, %c0_18] : memref<4x4x49x49xbf16, #tpu.memory_space<vmem>>, vector<1x1x49x49xbf16>
    %42 = vector.shape_cast %41 : vector<1x1x49x49xbf16> to vector<49x49xbf16>
    %cst_19 = arith.constant dense<0.000000e+00> : vector<49x4xf32>
    %43 = tpu.matmul %42, %29, %cst_19 {dimension_numbers = #tpu.dot_dimension_numbers<[1], [0], [0], [1], [0, 0, 1, 1], [], []>} : vector<49x49xbf16>, vector<49x4xbf16>, vector<49x4xf32> -> vector<49x4xf32>
    %44 = vector.broadcast %8 : vector<1x4xf32> to vector<49x4xf32>
    %45 = arith.mulf %43, %44 : vector<49x4xf32>
    %46 = arith.addf %40, %45 : vector<49x4xf32>
    %c0_20 = arith.constant 0 : index
    %c2 = arith.constant 2 : index
    %c0_21 = arith.constant 0 : index
    %c0_22 = arith.constant 0 : index
    %47 = vector.load %arg4[%c0_20, %c2, %c0_21, %c0_22] : memref<4x4x49x49xbf16, #tpu.memory_space<vmem>>, vector<1x1x49x49xbf16>
    %48 = vector.shape_cast %47 : vector<1x1x49x49xbf16> to vector<49x49xbf16>
    %cst_23 = arith.constant dense<0.000000e+00> : vector<49x4xf32>
    %49 = tpu.matmul %48, %29, %cst_23 {dimension_numbers = #tpu.dot_dimension_numbers<[1], [0], [0], [1], [0, 0, 1, 1], [], []>} : vector<49x49xbf16>, vector<49x4xbf16>, vector<49x4xf32> -> vector<49x4xf32>
    %50 = vector.broadcast %12 : vector<1x4xf32> to vector<49x4xf32>
    %51 = arith.mulf %49, %50 : vector<49x4xf32>
    %52 = arith.addf %46, %51 : vector<49x4xf32>
    %c0_24 = arith.constant 0 : index
    %c3 = arith.constant 3 : index
    %c0_25 = arith.constant 0 : index
    %c0_26 = arith.constant 0 : index
    %53 = vector.load %arg4[%c0_24, %c3, %c0_25, %c0_26] : memref<4x4x49x49xbf16, #tpu.memory_space<vmem>>, vector<1x1x49x49xbf16>
    %54 = vector.shape_cast %53 : vector<1x1x49x49xbf16> to vector<49x49xbf16>
    %cst_27 = arith.constant dense<0.000000e+00> : vector<49x4xf32>
    %55 = tpu.matmul %54, %29, %cst_27 {dimension_numbers = #tpu.dot_dimension_numbers<[1], [0], [0], [1], [0, 0, 1, 1], [], []>} : vector<49x49xbf16>, vector<49x4xbf16>, vector<49x4xf32> -> vector<49x4xf32>
    %56 = vector.broadcast %16 : vector<1x4xf32> to vector<49x4xf32>
    %57 = arith.mulf %55, %56 : vector<49x4xf32>
    %58 = arith.addf %52, %57 : vector<49x4xf32>
    %c0_28 = arith.constant 0 : index
    %c0_29 = arith.constant 0 : index
    %c0_30 = arith.constant 0 : index
    %59 = vector.load %arg5[%c0_28, %c0_29, %c0_30] : memref<4x1x4xf32, #tpu.memory_space<vmem>>, vector<1x1x4xf32>
    %60 = vector.shape_cast %59 : vector<1x1x4xf32> to vector<1x4xf32>
    %61 = vector.broadcast %60 : vector<1x4xf32> to vector<49x4xf32>
    %62 = arith.addf %58, %61 : vector<49x4xf32>
    %63 = arith.truncf %62 : vector<49x4xf32> to vector<49x4xbf16>
    %cst_31 = arith.constant dense<0.000000e+00> : vector<49x49xf32>
    %64 = tpu.matmul %63, %31, %cst_31 {dimension_numbers = #tpu.dot_dimension_numbers<[1], [1], [0], [0], [0, 0, 1, 0], [], []>} : vector<49x4xbf16>, vector<49x4xbf16>, vector<49x49xf32> -> vector<49x49xf32>
    %c0_32 = arith.constant 0 : index
    %c0_33 = arith.constant 0 : index
    %c0_34 = arith.constant 0 : index
    %65 = vector.load %arg6[%c0_32, %c0_33, %c0_34] : memref<4x49x49xf32, #tpu.memory_space<vmem>>, vector<1x49x49xf32>
    %66 = vector.shape_cast %65 : vector<1x49x49xf32> to vector<49x49xf32>
    %67 = arith.addf %64, %66 : vector<49x49xf32>
    %cst_35 = arith.constant dense<0xFF800000> : vector<49xf32>
    %68 = vector.multi_reduction <maximumf>, %67, %cst_35 [1] : vector<49x49xf32> to vector<49xf32>
    %69 = vector.shape_cast %68 : vector<49xf32> to vector<49x1xf32>
    %70 = vector.broadcast %69 : vector<49x1xf32> to vector<49x49xf32>
    %71 = arith.subf %67, %70 : vector<49x49xf32>
    %72 = math.exp %71 : vector<49x49xf32>
    %cst_36 = arith.constant dense<0.000000e+00> : vector<49xf32>
    %73 = vector.multi_reduction <add>, %72, %cst_36 [1] : vector<49x49xf32> to vector<49xf32>
    %74 = vector.shape_cast %73 : vector<49xf32> to vector<49x1xf32>
    %75 = tpu.reciprocal %74 {approx = true} : vector<49x1xf32> -> vector<49x1xf32>
    %76 = vector.broadcast %75 : vector<49x1xf32> to vector<49x49xf32>
    %77 = arith.mulf %72, %76 : vector<49x49xf32>
    %78 = arith.truncf %77 : vector<49x49xf32> to vector<49x49xbf16>
    %cst_37 = arith.constant dense<0.000000e+00> : vector<49x16xf32>
    %79 = tpu.matmul %78, %33, %cst_37 {dimension_numbers = #tpu.dot_dimension_numbers<[1], [0], [0], [1], [0, 0, 1, 1], [], []>} : vector<49x49xbf16>, vector<49x16xbf16>, vector<49x16xf32> -> vector<49x16xf32>
    %cst_38 = arith.constant 0.000000e+00 : f32
    %80 = vector.broadcast %cst_38 : f32 to vector<49x16xf32>
    %81 = arith.maximumf %79, %80 : vector<49x16xf32>
    %82 = arith.truncf %81 : vector<49x16xf32> to vector<49x16xbf16>
    %c0_39 = arith.constant 0 : index
    %c0_40 = arith.constant 0 : index
    %c0_41 = arith.constant 0 : index
    %83 = vector.load %arg7[%c0_39, %c0_40, %c0_41] : memref<4x16x64xbf16, #tpu.memory_space<vmem>>, vector<1x16x64xbf16>
    %84 = vector.shape_cast %83 : vector<1x16x64xbf16> to vector<16x64xbf16>
    %cst_42 = arith.constant dense<0.000000e+00> : vector<49x64xf32>
    %85 = tpu.matmul %82, %84, %cst_42 {dimension_numbers = #tpu.dot_dimension_numbers<[1], [0], [0], [1], [0, 0, 1, 1], [], []>} : vector<49x16xbf16>, vector<16x64xbf16>, vector<49x64xf32> -> vector<49x64xf32>
    %86 = arith.addf %17, %85 : vector<49x64xf32>
    %c0_43 = arith.constant 0 : index
    %c1_44 = arith.constant 1 : index
    %c0_45 = arith.constant 0 : index
    %c0_46 = arith.constant 0 : index
    %87 = vector.load %arg1[%c0_43, %c1_44, %c0_45, %c0_46] : memref<1x4x49x16xf32, #tpu.memory_space<vmem>>, vector<1x1x49x16xf32>
    %88 = vector.shape_cast %87 : vector<1x1x49x16xf32> to vector<49x16xf32>
    %89 = arith.addf %79, %88 : vector<49x16xf32>
    %90 = arith.truncf %89 : vector<49x16xf32> to vector<49x16xbf16>
    %c1_47 = arith.constant 1 : index
    %c0_48 = arith.constant 0 : index
    %c0_49 = arith.constant 0 : index
    %91 = vector.load %arg2[%c1_47, %c0_48, %c0_49] : memref<4x16x24xbf16, #tpu.memory_space<vmem>>, vector<1x16x24xbf16>
    %92 = vector.shape_cast %91 : vector<1x16x24xbf16> to vector<16x24xbf16>
    %cst_50 = arith.constant dense<0.000000e+00> : vector<49x24xf32>
    %93 = tpu.matmul %90, %92, %cst_50 {dimension_numbers = #tpu.dot_dimension_numbers<[1], [0], [0], [1], [0, 0, 1, 1], [], []>} : vector<49x16xbf16>, vector<16x24xbf16>, vector<49x24xf32> -> vector<49x24xf32>
    %c1_51 = arith.constant 1 : index
    %c0_52 = arith.constant 0 : index
    %c0_53 = arith.constant 0 : index
    %94 = vector.load %arg3[%c1_51, %c0_52, %c0_53] : memref<4x1x24xf32, #tpu.memory_space<vmem>>, vector<1x1x24xf32>
    %95 = vector.shape_cast %94 : vector<1x1x24xf32> to vector<1x24xf32>
    %96 = vector.broadcast %95 : vector<1x24xf32> to vector<49x24xf32>
    %97 = arith.addf %93, %96 : vector<49x24xf32>
    %98 = vector.extract_strided_slice %97 {offsets = [0, 0], sizes = [49, 4], strides = [1, 1]} : vector<49x24xf32> to vector<49x4xf32>
    %99 = arith.truncf %98 : vector<49x4xf32> to vector<49x4xbf16>
    %100 = vector.extract_strided_slice %97 {offsets = [0, 4], sizes = [49, 4], strides = [1, 1]} : vector<49x24xf32> to vector<49x4xf32>
    %101 = arith.truncf %100 : vector<49x4xf32> to vector<49x4xbf16>
    %102 = vector.extract_strided_slice %97 {offsets = [0, 8], sizes = [49, 16], strides = [1, 1]} : vector<49x24xf32> to vector<49x16xf32>
    %103 = arith.truncf %102 : vector<49x16xf32> to vector<49x16xbf16>
    %cst_54 = arith.constant 0.000000e+00 : f32
    %104 = vector.broadcast %cst_54 : f32 to vector<49x4xf32>
    %c1_55 = arith.constant 1 : index
    %c0_56 = arith.constant 0 : index
    %c0_57 = arith.constant 0 : index
    %c0_58 = arith.constant 0 : index
    %105 = vector.load %arg4[%c1_55, %c0_56, %c0_57, %c0_58] : memref<4x4x49x49xbf16, #tpu.memory_space<vmem>>, vector<1x1x49x49xbf16>
    %106 = vector.shape_cast %105 : vector<1x1x49x49xbf16> to vector<49x49xbf16>
    %cst_59 = arith.constant dense<0.000000e+00> : vector<49x4xf32>
    %107 = tpu.matmul %106, %99, %cst_59 {dimension_numbers = #tpu.dot_dimension_numbers<[1], [0], [0], [1], [0, 0, 1, 1], [], []>} : vector<49x49xbf16>, vector<49x4xbf16>, vector<49x4xf32> -> vector<49x4xf32>
    %108 = vector.broadcast %4 : vector<1x4xf32> to vector<49x4xf32>
    %109 = arith.mulf %107, %108 : vector<49x4xf32>
    %110 = arith.addf %104, %109 : vector<49x4xf32>
    %c1_60 = arith.constant 1 : index
    %c1_61 = arith.constant 1 : index
    %c0_62 = arith.constant 0 : index
    %c0_63 = arith.constant 0 : index
    %111 = vector.load %arg4[%c1_60, %c1_61, %c0_62, %c0_63] : memref<4x4x49x49xbf16, #tpu.memory_space<vmem>>, vector<1x1x49x49xbf16>
    %112 = vector.shape_cast %111 : vector<1x1x49x49xbf16> to vector<49x49xbf16>
    %cst_64 = arith.constant dense<0.000000e+00> : vector<49x4xf32>
    %113 = tpu.matmul %112, %99, %cst_64 {dimension_numbers = #tpu.dot_dimension_numbers<[1], [0], [0], [1], [0, 0, 1, 1], [], []>} : vector<49x49xbf16>, vector<49x4xbf16>, vector<49x4xf32> -> vector<49x4xf32>
    %114 = vector.broadcast %8 : vector<1x4xf32> to vector<49x4xf32>
    %115 = arith.mulf %113, %114 : vector<49x4xf32>
    %116 = arith.addf %110, %115 : vector<49x4xf32>
    %c1_65 = arith.constant 1 : index
    %c2_66 = arith.constant 2 : index
    %c0_67 = arith.constant 0 : index
    %c0_68 = arith.constant 0 : index
    %117 = vector.load %arg4[%c1_65, %c2_66, %c0_67, %c0_68] : memref<4x4x49x49xbf16, #tpu.memory_space<vmem>>, vector<1x1x49x49xbf16>
    %118 = vector.shape_cast %117 : vector<1x1x49x49xbf16> to vector<49x49xbf16>
    %cst_69 = arith.constant dense<0.000000e+00> : vector<49x4xf32>
    %119 = tpu.matmul %118, %99, %cst_69 {dimension_numbers = #tpu.dot_dimension_numbers<[1], [0], [0], [1], [0, 0, 1, 1], [], []>} : vector<49x49xbf16>, vector<49x4xbf16>, vector<49x4xf32> -> vector<49x4xf32>
    %120 = vector.broadcast %12 : vector<1x4xf32> to vector<49x4xf32>
    %121 = arith.mulf %119, %120 : vector<49x4xf32>
    %122 = arith.addf %116, %121 : vector<49x4xf32>
    %c1_70 = arith.constant 1 : index
    %c3_71 = arith.constant 3 : index
    %c0_72 = arith.constant 0 : index
    %c0_73 = arith.constant 0 : index
    %123 = vector.load %arg4[%c1_70, %c3_71, %c0_72, %c0_73] : memref<4x4x49x49xbf16, #tpu.memory_space<vmem>>, vector<1x1x49x49xbf16>
    %124 = vector.shape_cast %123 : vector<1x1x49x49xbf16> to vector<49x49xbf16>
    %cst_74 = arith.constant dense<0.000000e+00> : vector<49x4xf32>
    %125 = tpu.matmul %124, %99, %cst_74 {dimension_numbers = #tpu.dot_dimension_numbers<[1], [0], [0], [1], [0, 0, 1, 1], [], []>} : vector<49x49xbf16>, vector<49x4xbf16>, vector<49x4xf32> -> vector<49x4xf32>
    %126 = vector.broadcast %16 : vector<1x4xf32> to vector<49x4xf32>
    %127 = arith.mulf %125, %126 : vector<49x4xf32>
    %128 = arith.addf %122, %127 : vector<49x4xf32>
    %c1_75 = arith.constant 1 : index
    %c0_76 = arith.constant 0 : index
    %c0_77 = arith.constant 0 : index
    %129 = vector.load %arg5[%c1_75, %c0_76, %c0_77] : memref<4x1x4xf32, #tpu.memory_space<vmem>>, vector<1x1x4xf32>
    %130 = vector.shape_cast %129 : vector<1x1x4xf32> to vector<1x4xf32>
    %131 = vector.broadcast %130 : vector<1x4xf32> to vector<49x4xf32>
    %132 = arith.addf %128, %131 : vector<49x4xf32>
    %133 = arith.truncf %132 : vector<49x4xf32> to vector<49x4xbf16>
    %cst_78 = arith.constant dense<0.000000e+00> : vector<49x49xf32>
    %134 = tpu.matmul %133, %101, %cst_78 {dimension_numbers = #tpu.dot_dimension_numbers<[1], [1], [0], [0], [0, 0, 1, 0], [], []>} : vector<49x4xbf16>, vector<49x4xbf16>, vector<49x49xf32> -> vector<49x49xf32>
    %c1_79 = arith.constant 1 : index
    %c0_80 = arith.constant 0 : index
    %c0_81 = arith.constant 0 : index
    %135 = vector.load %arg6[%c1_79, %c0_80, %c0_81] : memref<4x49x49xf32, #tpu.memory_space<vmem>>, vector<1x49x49xf32>
    %136 = vector.shape_cast %135 : vector<1x49x49xf32> to vector<49x49xf32>
    %137 = arith.addf %134, %136 : vector<49x49xf32>
    %cst_82 = arith.constant dense<0xFF800000> : vector<49xf32>
    %138 = vector.multi_reduction <maximumf>, %137, %cst_82 [1] : vector<49x49xf32> to vector<49xf32>
    %139 = vector.shape_cast %138 : vector<49xf32> to vector<49x1xf32>
    %140 = vector.broadcast %139 : vector<49x1xf32> to vector<49x49xf32>
    %141 = arith.subf %137, %140 : vector<49x49xf32>
    %142 = math.exp %141 : vector<49x49xf32>
    %cst_83 = arith.constant dense<0.000000e+00> : vector<49xf32>
    %143 = vector.multi_reduction <add>, %142, %cst_83 [1] : vector<49x49xf32> to vector<49xf32>
    %144 = vector.shape_cast %143 : vector<49xf32> to vector<49x1xf32>
    %145 = tpu.reciprocal %144 {approx = true} : vector<49x1xf32> -> vector<49x1xf32>
    %146 = vector.broadcast %145 : vector<49x1xf32> to vector<49x49xf32>
    %147 = arith.mulf %142, %146 : vector<49x49xf32>
    %148 = arith.truncf %147 : vector<49x49xf32> to vector<49x49xbf16>
    %cst_84 = arith.constant dense<0.000000e+00> : vector<49x16xf32>
    %149 = tpu.matmul %148, %103, %cst_84 {dimension_numbers = #tpu.dot_dimension_numbers<[1], [0], [0], [1], [0, 0, 1, 1], [], []>} : vector<49x49xbf16>, vector<49x16xbf16>, vector<49x16xf32> -> vector<49x16xf32>
    %cst_85 = arith.constant 0.000000e+00 : f32
    %150 = vector.broadcast %cst_85 : f32 to vector<49x16xf32>
    %151 = arith.maximumf %149, %150 : vector<49x16xf32>
    %152 = arith.truncf %151 : vector<49x16xf32> to vector<49x16xbf16>
    %c1_86 = arith.constant 1 : index
    %c0_87 = arith.constant 0 : index
    %c0_88 = arith.constant 0 : index
    %153 = vector.load %arg7[%c1_86, %c0_87, %c0_88] : memref<4x16x64xbf16, #tpu.memory_space<vmem>>, vector<1x16x64xbf16>
    %154 = vector.shape_cast %153 : vector<1x16x64xbf16> to vector<16x64xbf16>
    %cst_89 = arith.constant dense<0.000000e+00> : vector<49x64xf32>
    %155 = tpu.matmul %152, %154, %cst_89 {dimension_numbers = #tpu.dot_dimension_numbers<[1], [0], [0], [1], [0, 0, 1, 1], [], []>} : vector<49x16xbf16>, vector<16x64xbf16>, vector<49x64xf32> -> vector<49x64xf32>
    %156 = arith.addf %86, %155 : vector<49x64xf32>
    %c0_90 = arith.constant 0 : index
    %c2_91 = arith.constant 2 : index
    %c0_92 = arith.constant 0 : index
    %c0_93 = arith.constant 0 : index
    %157 = vector.load %arg1[%c0_90, %c2_91, %c0_92, %c0_93] : memref<1x4x49x16xf32, #tpu.memory_space<vmem>>, vector<1x1x49x16xf32>
    %158 = vector.shape_cast %157 : vector<1x1x49x16xf32> to vector<49x16xf32>
    %159 = arith.addf %149, %158 : vector<49x16xf32>
    %160 = arith.truncf %159 : vector<49x16xf32> to vector<49x16xbf16>
    %c2_94 = arith.constant 2 : index
    %c0_95 = arith.constant 0 : index
    %c0_96 = arith.constant 0 : index
    %161 = vector.load %arg2[%c2_94, %c0_95, %c0_96] : memref<4x16x24xbf16, #tpu.memory_space<vmem>>, vector<1x16x24xbf16>
    %162 = vector.shape_cast %161 : vector<1x16x24xbf16> to vector<16x24xbf16>
    %cst_97 = arith.constant dense<0.000000e+00> : vector<49x24xf32>
    %163 = tpu.matmul %160, %162, %cst_97 {dimension_numbers = #tpu.dot_dimension_numbers<[1], [0], [0], [1], [0, 0, 1, 1], [], []>} : vector<49x16xbf16>, vector<16x24xbf16>, vector<49x24xf32> -> vector<49x24xf32>
    %c2_98 = arith.constant 2 : index
    %c0_99 = arith.constant 0 : index
    %c0_100 = arith.constant 0 : index
    %164 = vector.load %arg3[%c2_98, %c0_99, %c0_100] : memref<4x1x24xf32, #tpu.memory_space<vmem>>, vector<1x1x24xf32>
    %165 = vector.shape_cast %164 : vector<1x1x24xf32> to vector<1x24xf32>
    %166 = vector.broadcast %165 : vector<1x24xf32> to vector<49x24xf32>
    %167 = arith.addf %163, %166 : vector<49x24xf32>
    %168 = vector.extract_strided_slice %167 {offsets = [0, 0], sizes = [49, 4], strides = [1, 1]} : vector<49x24xf32> to vector<49x4xf32>
    %169 = arith.truncf %168 : vector<49x4xf32> to vector<49x4xbf16>
    %170 = vector.extract_strided_slice %167 {offsets = [0, 4], sizes = [49, 4], strides = [1, 1]} : vector<49x24xf32> to vector<49x4xf32>
    %171 = arith.truncf %170 : vector<49x4xf32> to vector<49x4xbf16>
    %172 = vector.extract_strided_slice %167 {offsets = [0, 8], sizes = [49, 16], strides = [1, 1]} : vector<49x24xf32> to vector<49x16xf32>
    %173 = arith.truncf %172 : vector<49x16xf32> to vector<49x16xbf16>
    %cst_101 = arith.constant 0.000000e+00 : f32
    %174 = vector.broadcast %cst_101 : f32 to vector<49x4xf32>
    %c2_102 = arith.constant 2 : index
    %c0_103 = arith.constant 0 : index
    %c0_104 = arith.constant 0 : index
    %c0_105 = arith.constant 0 : index
    %175 = vector.load %arg4[%c2_102, %c0_103, %c0_104, %c0_105] : memref<4x4x49x49xbf16, #tpu.memory_space<vmem>>, vector<1x1x49x49xbf16>
    %176 = vector.shape_cast %175 : vector<1x1x49x49xbf16> to vector<49x49xbf16>
    %cst_106 = arith.constant dense<0.000000e+00> : vector<49x4xf32>
    %177 = tpu.matmul %176, %169, %cst_106 {dimension_numbers = #tpu.dot_dimension_numbers<[1], [0], [0], [1], [0, 0, 1, 1], [], []>} : vector<49x49xbf16>, vector<49x4xbf16>, vector<49x4xf32> -> vector<49x4xf32>
    %178 = vector.broadcast %4 : vector<1x4xf32> to vector<49x4xf32>
    %179 = arith.mulf %177, %178 : vector<49x4xf32>
    %180 = arith.addf %174, %179 : vector<49x4xf32>
    %c2_107 = arith.constant 2 : index
    %c1_108 = arith.constant 1 : index
    %c0_109 = arith.constant 0 : index
    %c0_110 = arith.constant 0 : index
    %181 = vector.load %arg4[%c2_107, %c1_108, %c0_109, %c0_110] : memref<4x4x49x49xbf16, #tpu.memory_space<vmem>>, vector<1x1x49x49xbf16>
    %182 = vector.shape_cast %181 : vector<1x1x49x49xbf16> to vector<49x49xbf16>
    %cst_111 = arith.constant dense<0.000000e+00> : vector<49x4xf32>
    %183 = tpu.matmul %182, %169, %cst_111 {dimension_numbers = #tpu.dot_dimension_numbers<[1], [0], [0], [1], [0, 0, 1, 1], [], []>} : vector<49x49xbf16>, vector<49x4xbf16>, vector<49x4xf32> -> vector<49x4xf32>
    %184 = vector.broadcast %8 : vector<1x4xf32> to vector<49x4xf32>
    %185 = arith.mulf %183, %184 : vector<49x4xf32>
    %186 = arith.addf %180, %185 : vector<49x4xf32>
    %c2_112 = arith.constant 2 : index
    %c2_113 = arith.constant 2 : index
    %c0_114 = arith.constant 0 : index
    %c0_115 = arith.constant 0 : index
    %187 = vector.load %arg4[%c2_112, %c2_113, %c0_114, %c0_115] : memref<4x4x49x49xbf16, #tpu.memory_space<vmem>>, vector<1x1x49x49xbf16>
    %188 = vector.shape_cast %187 : vector<1x1x49x49xbf16> to vector<49x49xbf16>
    %cst_116 = arith.constant dense<0.000000e+00> : vector<49x4xf32>
    %189 = tpu.matmul %188, %169, %cst_116 {dimension_numbers = #tpu.dot_dimension_numbers<[1], [0], [0], [1], [0, 0, 1, 1], [], []>} : vector<49x49xbf16>, vector<49x4xbf16>, vector<49x4xf32> -> vector<49x4xf32>
    %190 = vector.broadcast %12 : vector<1x4xf32> to vector<49x4xf32>
    %191 = arith.mulf %189, %190 : vector<49x4xf32>
    %192 = arith.addf %186, %191 : vector<49x4xf32>
    %c2_117 = arith.constant 2 : index
    %c3_118 = arith.constant 3 : index
    %c0_119 = arith.constant 0 : index
    %c0_120 = arith.constant 0 : index
    %193 = vector.load %arg4[%c2_117, %c3_118, %c0_119, %c0_120] : memref<4x4x49x49xbf16, #tpu.memory_space<vmem>>, vector<1x1x49x49xbf16>
    %194 = vector.shape_cast %193 : vector<1x1x49x49xbf16> to vector<49x49xbf16>
    %cst_121 = arith.constant dense<0.000000e+00> : vector<49x4xf32>
    %195 = tpu.matmul %194, %169, %cst_121 {dimension_numbers = #tpu.dot_dimension_numbers<[1], [0], [0], [1], [0, 0, 1, 1], [], []>} : vector<49x49xbf16>, vector<49x4xbf16>, vector<49x4xf32> -> vector<49x4xf32>
    %196 = vector.broadcast %16 : vector<1x4xf32> to vector<49x4xf32>
    %197 = arith.mulf %195, %196 : vector<49x4xf32>
    %198 = arith.addf %192, %197 : vector<49x4xf32>
    %c2_122 = arith.constant 2 : index
    %c0_123 = arith.constant 0 : index
    %c0_124 = arith.constant 0 : index
    %199 = vector.load %arg5[%c2_122, %c0_123, %c0_124] : memref<4x1x4xf32, #tpu.memory_space<vmem>>, vector<1x1x4xf32>
    %200 = vector.shape_cast %199 : vector<1x1x4xf32> to vector<1x4xf32>
    %201 = vector.broadcast %200 : vector<1x4xf32> to vector<49x4xf32>
    %202 = arith.addf %198, %201 : vector<49x4xf32>
    %203 = arith.truncf %202 : vector<49x4xf32> to vector<49x4xbf16>
    %cst_125 = arith.constant dense<0.000000e+00> : vector<49x49xf32>
    %204 = tpu.matmul %203, %171, %cst_125 {dimension_numbers = #tpu.dot_dimension_numbers<[1], [1], [0], [0], [0, 0, 1, 0], [], []>} : vector<49x4xbf16>, vector<49x4xbf16>, vector<49x49xf32> -> vector<49x49xf32>
    %c2_126 = arith.constant 2 : index
    %c0_127 = arith.constant 0 : index
    %c0_128 = arith.constant 0 : index
    %205 = vector.load %arg6[%c2_126, %c0_127, %c0_128] : memref<4x49x49xf32, #tpu.memory_space<vmem>>, vector<1x49x49xf32>
    %206 = vector.shape_cast %205 : vector<1x49x49xf32> to vector<49x49xf32>
    %207 = arith.addf %204, %206 : vector<49x49xf32>
    %cst_129 = arith.constant dense<0xFF800000> : vector<49xf32>
    %208 = vector.multi_reduction <maximumf>, %207, %cst_129 [1] : vector<49x49xf32> to vector<49xf32>
    %209 = vector.shape_cast %208 : vector<49xf32> to vector<49x1xf32>
    %210 = vector.broadcast %209 : vector<49x1xf32> to vector<49x49xf32>
    %211 = arith.subf %207, %210 : vector<49x49xf32>
    %212 = math.exp %211 : vector<49x49xf32>
    %cst_130 = arith.constant dense<0.000000e+00> : vector<49xf32>
    %213 = vector.multi_reduction <add>, %212, %cst_130 [1] : vector<49x49xf32> to vector<49xf32>
    %214 = vector.shape_cast %213 : vector<49xf32> to vector<49x1xf32>
    %215 = tpu.reciprocal %214 {approx = true} : vector<49x1xf32> -> vector<49x1xf32>
    %216 = vector.broadcast %215 : vector<49x1xf32> to vector<49x49xf32>
    %217 = arith.mulf %212, %216 : vector<49x49xf32>
    %218 = arith.truncf %217 : vector<49x49xf32> to vector<49x49xbf16>
    %cst_131 = arith.constant dense<0.000000e+00> : vector<49x16xf32>
    %219 = tpu.matmul %218, %173, %cst_131 {dimension_numbers = #tpu.dot_dimension_numbers<[1], [0], [0], [1], [0, 0, 1, 1], [], []>} : vector<49x49xbf16>, vector<49x16xbf16>, vector<49x16xf32> -> vector<49x16xf32>
    %cst_132 = arith.constant 0.000000e+00 : f32
    %220 = vector.broadcast %cst_132 : f32 to vector<49x16xf32>
    %221 = arith.maximumf %219, %220 : vector<49x16xf32>
    %222 = arith.truncf %221 : vector<49x16xf32> to vector<49x16xbf16>
    %c2_133 = arith.constant 2 : index
    %c0_134 = arith.constant 0 : index
    %c0_135 = arith.constant 0 : index
    %223 = vector.load %arg7[%c2_133, %c0_134, %c0_135] : memref<4x16x64xbf16, #tpu.memory_space<vmem>>, vector<1x16x64xbf16>
    %224 = vector.shape_cast %223 : vector<1x16x64xbf16> to vector<16x64xbf16>
    %cst_136 = arith.constant dense<0.000000e+00> : vector<49x64xf32>
    %225 = tpu.matmul %222, %224, %cst_136 {dimension_numbers = #tpu.dot_dimension_numbers<[1], [0], [0], [1], [0, 0, 1, 1], [], []>} : vector<49x16xbf16>, vector<16x64xbf16>, vector<49x64xf32> -> vector<49x64xf32>
    %226 = arith.addf %156, %225 : vector<49x64xf32>
    %c0_137 = arith.constant 0 : index
    %c3_138 = arith.constant 3 : index
    %c0_139 = arith.constant 0 : index
    %c0_140 = arith.constant 0 : index
    %227 = vector.load %arg1[%c0_137, %c3_138, %c0_139, %c0_140] : memref<1x4x49x16xf32, #tpu.memory_space<vmem>>, vector<1x1x49x16xf32>
    %228 = vector.shape_cast %227 : vector<1x1x49x16xf32> to vector<49x16xf32>
    %229 = arith.addf %219, %228 : vector<49x16xf32>
    %230 = arith.truncf %229 : vector<49x16xf32> to vector<49x16xbf16>
    %c3_141 = arith.constant 3 : index
    %c0_142 = arith.constant 0 : index
    %c0_143 = arith.constant 0 : index
    %231 = vector.load %arg2[%c3_141, %c0_142, %c0_143] : memref<4x16x24xbf16, #tpu.memory_space<vmem>>, vector<1x16x24xbf16>
    %232 = vector.shape_cast %231 : vector<1x16x24xbf16> to vector<16x24xbf16>
    %cst_144 = arith.constant dense<0.000000e+00> : vector<49x24xf32>
    %233 = tpu.matmul %230, %232, %cst_144 {dimension_numbers = #tpu.dot_dimension_numbers<[1], [0], [0], [1], [0, 0, 1, 1], [], []>} : vector<49x16xbf16>, vector<16x24xbf16>, vector<49x24xf32> -> vector<49x24xf32>
    %c3_145 = arith.constant 3 : index
    %c0_146 = arith.constant 0 : index
    %c0_147 = arith.constant 0 : index
    %234 = vector.load %arg3[%c3_145, %c0_146, %c0_147] : memref<4x1x24xf32, #tpu.memory_space<vmem>>, vector<1x1x24xf32>
    %235 = vector.shape_cast %234 : vector<1x1x24xf32> to vector<1x24xf32>
    %236 = vector.broadcast %235 : vector<1x24xf32> to vector<49x24xf32>
    %237 = arith.addf %233, %236 : vector<49x24xf32>
    %238 = vector.extract_strided_slice %237 {offsets = [0, 0], sizes = [49, 4], strides = [1, 1]} : vector<49x24xf32> to vector<49x4xf32>
    %239 = arith.truncf %238 : vector<49x4xf32> to vector<49x4xbf16>
    %240 = vector.extract_strided_slice %237 {offsets = [0, 4], sizes = [49, 4], strides = [1, 1]} : vector<49x24xf32> to vector<49x4xf32>
    %241 = arith.truncf %240 : vector<49x4xf32> to vector<49x4xbf16>
    %242 = vector.extract_strided_slice %237 {offsets = [0, 8], sizes = [49, 16], strides = [1, 1]} : vector<49x24xf32> to vector<49x16xf32>
    %243 = arith.truncf %242 : vector<49x16xf32> to vector<49x16xbf16>
    %cst_148 = arith.constant 0.000000e+00 : f32
    %244 = vector.broadcast %cst_148 : f32 to vector<49x4xf32>
    %c3_149 = arith.constant 3 : index
    %c0_150 = arith.constant 0 : index
    %c0_151 = arith.constant 0 : index
    %c0_152 = arith.constant 0 : index
    %245 = vector.load %arg4[%c3_149, %c0_150, %c0_151, %c0_152] : memref<4x4x49x49xbf16, #tpu.memory_space<vmem>>, vector<1x1x49x49xbf16>
    %246 = vector.shape_cast %245 : vector<1x1x49x49xbf16> to vector<49x49xbf16>
    %cst_153 = arith.constant dense<0.000000e+00> : vector<49x4xf32>
    %247 = tpu.matmul %246, %239, %cst_153 {dimension_numbers = #tpu.dot_dimension_numbers<[1], [0], [0], [1], [0, 0, 1, 1], [], []>} : vector<49x49xbf16>, vector<49x4xbf16>, vector<49x4xf32> -> vector<49x4xf32>
    %248 = vector.broadcast %4 : vector<1x4xf32> to vector<49x4xf32>
    %249 = arith.mulf %247, %248 : vector<49x4xf32>
    %250 = arith.addf %244, %249 : vector<49x4xf32>
    %c3_154 = arith.constant 3 : index
    %c1_155 = arith.constant 1 : index
    %c0_156 = arith.constant 0 : index
    %c0_157 = arith.constant 0 : index
    %251 = vector.load %arg4[%c3_154, %c1_155, %c0_156, %c0_157] : memref<4x4x49x49xbf16, #tpu.memory_space<vmem>>, vector<1x1x49x49xbf16>
    %252 = vector.shape_cast %251 : vector<1x1x49x49xbf16> to vector<49x49xbf16>
    %cst_158 = arith.constant dense<0.000000e+00> : vector<49x4xf32>
    %253 = tpu.matmul %252, %239, %cst_158 {dimension_numbers = #tpu.dot_dimension_numbers<[1], [0], [0], [1], [0, 0, 1, 1], [], []>} : vector<49x49xbf16>, vector<49x4xbf16>, vector<49x4xf32> -> vector<49x4xf32>
    %254 = vector.broadcast %8 : vector<1x4xf32> to vector<49x4xf32>
    %255 = arith.mulf %253, %254 : vector<49x4xf32>
    %256 = arith.addf %250, %255 : vector<49x4xf32>
    %c3_159 = arith.constant 3 : index
    %c2_160 = arith.constant 2 : index
    %c0_161 = arith.constant 0 : index
    %c0_162 = arith.constant 0 : index
    %257 = vector.load %arg4[%c3_159, %c2_160, %c0_161, %c0_162] : memref<4x4x49x49xbf16, #tpu.memory_space<vmem>>, vector<1x1x49x49xbf16>
    %258 = vector.shape_cast %257 : vector<1x1x49x49xbf16> to vector<49x49xbf16>
    %cst_163 = arith.constant dense<0.000000e+00> : vector<49x4xf32>
    %259 = tpu.matmul %258, %239, %cst_163 {dimension_numbers = #tpu.dot_dimension_numbers<[1], [0], [0], [1], [0, 0, 1, 1], [], []>} : vector<49x49xbf16>, vector<49x4xbf16>, vector<49x4xf32> -> vector<49x4xf32>
    %260 = vector.broadcast %12 : vector<1x4xf32> to vector<49x4xf32>
    %261 = arith.mulf %259, %260 : vector<49x4xf32>
    %262 = arith.addf %256, %261 : vector<49x4xf32>
    %c3_164 = arith.constant 3 : index
    %c3_165 = arith.constant 3 : index
    %c0_166 = arith.constant 0 : index
    %c0_167 = arith.constant 0 : index
    %263 = vector.load %arg4[%c3_164, %c3_165, %c0_166, %c0_167] : memref<4x4x49x49xbf16, #tpu.memory_space<vmem>>, vector<1x1x49x49xbf16>
    %264 = vector.shape_cast %263 : vector<1x1x49x49xbf16> to vector<49x49xbf16>
    %cst_168 = arith.constant dense<0.000000e+00> : vector<49x4xf32>
    %265 = tpu.matmul %264, %239, %cst_168 {dimension_numbers = #tpu.dot_dimension_numbers<[1], [0], [0], [1], [0, 0, 1, 1], [], []>} : vector<49x49xbf16>, vector<49x4xbf16>, vector<49x4xf32> -> vector<49x4xf32>
    %266 = vector.broadcast %16 : vector<1x4xf32> to vector<49x4xf32>
    %267 = arith.mulf %265, %266 : vector<49x4xf32>
    %268 = arith.addf %262, %267 : vector<49x4xf32>
    %c3_169 = arith.constant 3 : index
    %c0_170 = arith.constant 0 : index
    %c0_171 = arith.constant 0 : index
    %269 = vector.load %arg5[%c3_169, %c0_170, %c0_171] : memref<4x1x4xf32, #tpu.memory_space<vmem>>, vector<1x1x4xf32>
    %270 = vector.shape_cast %269 : vector<1x1x4xf32> to vector<1x4xf32>
    %271 = vector.broadcast %270 : vector<1x4xf32> to vector<49x4xf32>
    %272 = arith.addf %268, %271 : vector<49x4xf32>
    %273 = arith.truncf %272 : vector<49x4xf32> to vector<49x4xbf16>
    %cst_172 = arith.constant dense<0.000000e+00> : vector<49x49xf32>
    %274 = tpu.matmul %273, %241, %cst_172 {dimension_numbers = #tpu.dot_dimension_numbers<[1], [1], [0], [0], [0, 0, 1, 0], [], []>} : vector<49x4xbf16>, vector<49x4xbf16>, vector<49x49xf32> -> vector<49x49xf32>
    %c3_173 = arith.constant 3 : index
    %c0_174 = arith.constant 0 : index
    %c0_175 = arith.constant 0 : index
    %275 = vector.load %arg6[%c3_173, %c0_174, %c0_175] : memref<4x49x49xf32, #tpu.memory_space<vmem>>, vector<1x49x49xf32>
    %276 = vector.shape_cast %275 : vector<1x49x49xf32> to vector<49x49xf32>
    %277 = arith.addf %274, %276 : vector<49x49xf32>
    %cst_176 = arith.constant dense<0xFF800000> : vector<49xf32>
    %278 = vector.multi_reduction <maximumf>, %277, %cst_176 [1] : vector<49x49xf32> to vector<49xf32>
    %279 = vector.shape_cast %278 : vector<49xf32> to vector<49x1xf32>
    %280 = vector.broadcast %279 : vector<49x1xf32> to vector<49x49xf32>
    %281 = arith.subf %277, %280 : vector<49x49xf32>
    %282 = math.exp %281 : vector<49x49xf32>
    %cst_177 = arith.constant dense<0.000000e+00> : vector<49xf32>
    %283 = vector.multi_reduction <add>, %282, %cst_177 [1] : vector<49x49xf32> to vector<49xf32>
    %284 = vector.shape_cast %283 : vector<49xf32> to vector<49x1xf32>
    %285 = tpu.reciprocal %284 {approx = true} : vector<49x1xf32> -> vector<49x1xf32>
    %286 = vector.broadcast %285 : vector<49x1xf32> to vector<49x49xf32>
    %287 = arith.mulf %282, %286 : vector<49x49xf32>
    %288 = arith.truncf %287 : vector<49x49xf32> to vector<49x49xbf16>
    %cst_178 = arith.constant dense<0.000000e+00> : vector<49x16xf32>
    %289 = tpu.matmul %288, %243, %cst_178 {dimension_numbers = #tpu.dot_dimension_numbers<[1], [0], [0], [1], [0, 0, 1, 1], [], []>} : vector<49x49xbf16>, vector<49x16xbf16>, vector<49x16xf32> -> vector<49x16xf32>
    %cst_179 = arith.constant 0.000000e+00 : f32
    %290 = vector.broadcast %cst_179 : f32 to vector<49x16xf32>
    %291 = arith.maximumf %289, %290 : vector<49x16xf32>
    %292 = arith.truncf %291 : vector<49x16xf32> to vector<49x16xbf16>
    %c3_180 = arith.constant 3 : index
    %c0_181 = arith.constant 0 : index
    %c0_182 = arith.constant 0 : index
    %293 = vector.load %arg7[%c3_180, %c0_181, %c0_182] : memref<4x16x64xbf16, #tpu.memory_space<vmem>>, vector<1x16x64xbf16>
    %294 = vector.shape_cast %293 : vector<1x16x64xbf16> to vector<16x64xbf16>
    %cst_183 = arith.constant dense<0.000000e+00> : vector<49x64xf32>
    %295 = tpu.matmul %292, %294, %cst_183 {dimension_numbers = #tpu.dot_dimension_numbers<[1], [0], [0], [1], [0, 0, 1, 1], [], []>} : vector<49x16xbf16>, vector<16x64xbf16>, vector<49x64xf32> -> vector<49x64xf32>
    %296 = arith.addf %226, %295 : vector<49x64xf32>
    %c0_184 = arith.constant 0 : index
    %c0_185 = arith.constant 0 : index
    %297 = vector.load %arg8[%c0_184, %c0_185] : memref<1x64xf32, #tpu.memory_space<vmem>>, vector<1x64xf32>
    %298 = vector.broadcast %297 : vector<1x64xf32> to vector<49x64xf32>
    %299 = arith.addf %296, %298 : vector<49x64xf32>
    %c0_186 = arith.constant 0 : index
    %c0_187 = arith.constant 0 : index
    %c0_188 = arith.constant 0 : index
    %300 = vector.load %arg9[%c0_186, %c0_187, %c0_188] : memref<1x49x64xf32, #tpu.memory_space<vmem>>, vector<1x49x64xf32>
    %301 = vector.shape_cast %300 : vector<1x49x64xf32> to vector<49x64xf32>
    %302 = vector.shape_cast %299 : vector<49x64xf32> to vector<1x49x64xf32>
    tpu.vector_store %arg9[%c0_186, %c0_187, %c0_188], %302 {strides = array<i32>} : memref<1x49x64xf32, #tpu.memory_space<vmem>>, vector<1x49x64xf32>,
    return
  }
  func.func @transform_0(%arg0: i32) -> (i32, i32, i32, i32) {
    %c0_i32 = arith.constant 0 : i32
    %c0_i32_0 = arith.constant 0 : i32
    %c0_i32_1 = arith.constant 0 : i32
    %c0_i32_2 = arith.constant 0 : i32
    return %arg0, %c0_i32, %c0_i32_0, %c0_i32_1 : i32, i32, i32, i32
  }
  func.func @transform_1(%arg0: i32) -> (i32, i32, i32) {
    %c0_i32 = arith.constant 0 : i32
    %c0_i32_0 = arith.constant 0 : i32
    %c0_i32_1 = arith.constant 0 : i32
    %c0_i32_2 = arith.constant 0 : i32
    return %c0_i32, %c0_i32_0, %c0_i32_1 : i32, i32, i32
  }
  func.func @transform_2(%arg0: i32) -> (i32, i32, i32) {
    %c0_i32 = arith.constant 0 : i32
    %c0_i32_0 = arith.constant 0 : i32
    %c0_i32_1 = arith.constant 0 : i32
    %c0_i32_2 = arith.constant 0 : i32
    return %c0_i32, %c0_i32_0, %c0_i32_1 : i32, i32, i32
  }
  func.func @transform_3(%arg0: i32) -> (i32, i32, i32, i32) {
    %c0_i32 = arith.constant 0 : i32
    %c0_i32_0 = arith.constant 0 : i32
    %c0_i32_1 = arith.constant 0 : i32
    %c0_i32_2 = arith.constant 0 : i32
    %c0_i32_3 = arith.constant 0 : i32
    return %c0_i32, %c0_i32_0, %c0_i32_1, %c0_i32_2 : i32, i32, i32, i32
  }
  func.func @transform_4(%arg0: i32) -> (i32, i32, i32) {
    %c0_i32 = arith.constant 0 : i32
    %c0_i32_0 = arith.constant 0 : i32
    %c0_i32_1 = arith.constant 0 : i32
    %c0_i32_2 = arith.constant 0 : i32
    return %c0_i32, %c0_i32_0, %c0_i32_1 : i32, i32, i32
  }
  func.func @transform_5(%arg0: i32) -> (i32, i32, i32) {
    %c0_i32 = arith.constant 0 : i32
    %c0_i32_0 = arith.constant 0 : i32
    %c0_i32_1 = arith.constant 0 : i32
    %c0_i32_2 = arith.constant 0 : i32
    return %c0_i32, %c0_i32_0, %c0_i32_1 : i32, i32, i32
  }
  func.func @transform_6(%arg0: i32) -> (i32, i32, i32) {
    %c0_i32 = arith.constant 0 : i32
    %c0_i32_0 = arith.constant 0 : i32
    %c0_i32_1 = arith.constant 0 : i32
    %c0_i32_2 = arith.constant 0 : i32
    return %c0_i32, %c0_i32_0, %c0_i32_1 : i32, i32, i32
  }
  func.func @transform_7(%arg0: i32) -> (i32, i32) {
    %c0_i32 = arith.constant 0 : i32
    %c0_i32_0 = arith.constant 0 : i32
    %c0_i32_1 = arith.constant 0 : i32
    return %c0_i32, %c0_i32_0 : i32, i32
  }
  func.func @transform_8(%arg0: i32) -> (i32, i32, i32) {
    %c0_i32 = arith.constant 0 : i32
    %c0_i32_0 = arith.constant 0 : i32
    %c0_i32_1 = arith.constant 0 : i32
    return %arg0, %c0_i32, %c0_i32_0 : i32, i32, i32
  }
}

</mosaic_0001>

<bundles_post_ra>
// kernel: tpu_custom_call.1
= control target key start
LH: loop header
LB: loop body
LE: loop exit
PB: predicated region body
PF: predicated region fallthrough
CT: control target
= control target key end

     0   :  { %s3913_s27 = smov 0   ;;  %s4900_s0 = inlined_call_operand.vmem [shape: f32[2,4,49,16], index: 0, kind: input, shape index: {}]   ;;  %s4901_s1 = inlined_call_operand.vmem [shape: bf16[4,16,24], index: 1, kind: input, shape index: {}]   ;;  %s4902_s2 = inlined_call_operand.vmem [shape: f32[4,1,24], index: 2, kind: input, shape index: {}]   ;;  %s4903_s3 = inlined_call_operand.vmem [shape: bf16[4,4,49,49], index: 3, kind: input, shape index: {}]   ;;  %s4904_s4 = inlined_call_operand.vmem [shape: f32[4,1,4], index: 4, kind: input, shape index: {}]   ;;  %s4905_s5 = inlined_call_operand.vmem [shape: f32[4,49,49], index: 5, kind: input, shape index: {}]   ;;  %s4906_s6 = inlined_call_operand.vmem [shape: bf16[4,16,64], index: 6, kind: input, shape index: {}]   ;;  %s4907_s7 = inlined_call_operand.vmem [shape: f32[1,64], index: 7, kind: input, shape index: {}]   ;;  %s4908_s8 = inlined_call_operand.vmem [shape: f32[2,49,64], index: 8, kind: output, shape index: {}]  }
   0x1 LB: > { %s3135_s28 = sadd.s32 4294967295, %s3862_s27   ;;  %p3139_p0 = scmp.ge.s32.totalorder %s3862_s27, 1  ;;  %s3862_s27 = sphi %s3913_s27, %s18_s27  }
   0x2   : > { %p262_p1 = scmp.lt.s32.totalorder %s3862_s27, 3 }
   0x4   : > { %p263_p2 = pnand %p3139_p0, %p262_p1 }
   0x5   : > { %p296_p3 = scmp.lt.s32.totalorder (!%p263_p2), %s3135_s28, 1  ;;  %s3864_s15 = smov (!%p263_p2), 124  }
   0x6   : > { %266 = sbr.rel (%p263_p2) target bundleno = 3897 (0xf39), region = 52  ;;  %s3867_s30 = smov (!%p263_p2), 120  }
   0xb   : > { %v3665_v0 = vld [vmem:[%s4901_s1] sm:$0xff]  ;;  %s4910_s28 = smov (!%p296_p3, %s3135_s28), 1  ;;  %vm344_vm0 = vcmask 130048   ;;  %vm427_vm1 = vcmask 1040384   ;;  %v3865_v27 = vmov 0   ;;  %vm414_vm2 = vcmask 400384  }
   0xc   : > { %364 = vmatpush.bf16.msra.mxu0 %v3665_v0  ;;  %s3721_s9 = smul.u32 224, %s4910_s28  ;;  %v3735_v15 = vld [vmem:[%s4902_s2] ss:$0 sm:$0xff]  ;;  %v3954_v28 = vsel %vm427_vm1, 65535, %v3865_v27  ;;  %v3672_v37 = vld [vmem:[%s4903_s3 + $0x38] sm:$0xff]  ;;  %v3670_v39 = vld [vmem:[%s4903_s3 + $0x24] sm:$0xff] }
   0xd   : > { %v3666_v35 = vld [vmem:[%s4903_s3] sm:$0xff]  ;;  %v3675_v38 = vld [vmem:[%s4903_s3 + $0x54] sm:$0xff]  ;;  %v3667_v40 = vld [vmem:[%s4903_s3 + $0x8] sm:$0xff]  ;;  %vm749_vm3 = vcmask 31744   ;;  %vm820_vm8 = vcmask 393216   ;;  %s3722_s14 = smul.u32 56, %s4910_s28 }
   0xe   : > { %s3930_s12 = scalar_lea.vmem %s4900_s0, %s3721_s9  ;;  %v3669_v36 = vld [vmem:[%s4903_s3 + $0x1c] sm:$0xff]  ;;  %v3671_v43 = vld [vmem:[%s4903_s3 + $0x2c] sm:$0xff]  ;;  %v3677_v46 = vld [vmem:[%s4903_s3 + $0x64] sm:$0xff]  ;;  %vm3071_vm9 = vcmask 523264   ;;  %vm3078_vm10 = vcmask 516096  }
   0xf   : > { %v321_v1 = vld [vmem:[%s3930_s12] sm:$0xff]  ;;  %v322_v2 = vld [vmem:[%s3930_s12 + $0x8] sm:$0xff]  ;;  %v323_v4 = vld [vmem:[%s3930_s12 + $0x10] sm:$0xff]  ;;  %s4870_s20 = scalar_lea.vmem %s4908_s8, %s3722_s14 }
  0x10   : > { %v328_v3 = vpack.c.bf16 %v322_v2, %v321_v1  ;;  %v324_v5 = vld [vmem:[%s3930_s12 + $0x18] sm:$0xff]  ;;  %v325_v7 = vld [vmem:[%s3930_s12 + $0x20] sm:$0xff]  ;;  %v326_v8 = vld [vmem:[%s3930_s12 + $0x28] sm:$0xff]  ;;  %v307_v1 = vlaneseq }
  0x11   : > { %v329_v6 = vpack.c.bf16 %v324_v5, %v323_v4  ;;  %v330_v9 = vpack.c.bf16 %v326_v8, %v325_v7  ;;  %v327_v10 = vld [vmem:[%s3930_s12 + $0x30] sm:$0x1]  ;;  %v3673_v41 = vld [vmem:[%s4903_s3 + $0x40] sm:$0xff]  ;;  %v3674_v45 = vld [vmem:[%s4903_s3 + $0x48] sm:$0xff]  ;;  %v3866_v7 = vmov 0.0  }
  0x12   : > { %3150 = vmatmul.msk.bf16.vlgmr.msra.gmra.mxu0 %vm344_vm0, %v328_v3  ;;  %v331_v11 = vpack.c.bf16 %v327_v10, %v327_v10  ;;  %v3676_v42 = vld [vmem:[%s4903_s3 + $0x5c] sm:$0xff]  ;;  %v3668_v44 = vld [vmem:[%s4903_s3 + $0x10] sm:$0xff]  ;;  %v395_v48 = vld [vmem:[%s4903_s3 + $0x18] sm:$0x1]  ;;  %v308_v4 = vand.u32 127, %v307_v1 }
  0x13   : > { %v3176_v47 = vld [vmem:[%s4903_s3 + $0x34] sm:$0x1]  ;;  %v3199_v49 = vld [vmem:[%s4903_s3 + $0x50] sm:$0x1]  ;;  %v3222_v50 = vld [vmem:[%s4903_s3 + $0x6c] sm:$0x1]  ;;  %v409_v52 = vunpack.c.l.b16 %v395_v48 }
  0x14   : > { %v496_v51 = vunpack.c.l.b16 %v3176_v47  ;;  %v576_v53 = vunpack.c.l.b16 %v3199_v49  ;;  %v656_v54 = vunpack.c.l.b16 %v3222_v50  ;;  %vm309_vm4 = vcmp.eq.s32.totalorder %v308_v4, 0 }
  0x15   : > { %v413_v56 = vpack.c.b16 %v409_v52, %v409_v52  ;;  %vm312_vm5 = vcmp.eq.s32.totalorder %v308_v4, 1  ;;  %v4046_v8 = vsel %vm309_vm4, 1.0, %v3866_v7  ;;  %vm315_vm6 = vcmp.eq.s32.totalorder %v308_v4, 2 }
  0x16   : > { %v500_v55 = vpack.c.b16 %v496_v51, %v496_v51  ;;  %v580_v57 = vpack.c.b16 %v576_v53, %v576_v53  ;;  %v660_v58 = vpack.c.b16 %v656_v54, %v656_v54  ;;  %vm318_vm7 = vcmp.eq.s32.totalorder %v308_v4, 3 }
  0x22   : > { %3151 = vmatmul.msk.bf16.gmra.mxu0 %vm344_vm0, %v329_v6 }
  0x32   : > { %3152 = vmatmul.msk.bf16.gmra.mxu0 %vm344_vm0, %v330_v9  ;;  %v4048_v9 = vsel %vm312_vm5, 1.0, %v3866_v7 }
  0x42   : > { %3153 = vmatmul.msk.bf16.gmra.mxu0 %vm344_vm0, %v331_v11 }
  0x8f   : > { %v366_v12 = vpop.f32.mrf.mxu0 }
  0x90   : > { %v367_v22 = vadd.f32 %v3735_v15, %v366_v12 }
  0x97   : > { %v368_v13 = vpop.f32.mrf.mxu0 }
  0x98   : > { %v369_v20 = vadd.f32 %v3735_v15, %v368_v13 }
  0x9a   : > { %v3950_v23 = vpack.c.bf16 %v369_v20, %v367_v22  ;;  %v4055_v20 = vsel %vm318_vm7, 1.0, %v3866_v7 }
  0x9f   : > { %v371_v14 = vpop.f32.mrf.mxu0 }
  0xa0   : > { %v372_v17 = vadd.f32 %v3735_v15, %v371_v14  ;;  %v4052_v14 = vsel %vm315_vm6, 1.0, %v3866_v7 }
  0xa7   : > { %v373_v16 = vpop.f32.mrf.mxu0 }
  0xa8   : > { %v374_v18 = vadd.f32 %v3735_v15, %v373_v16 }
  0xaa   : > { %v3946_v19 = vpack.c.bf16 %v374_v18, %v372_v17 }
  0xac   : > { %743 = vrot.lane.b32.xlu1 %v3946_v19, %s3864_s15 }
  0xaf   : > { %v376_v21 = vpop.f32.mrf.mxu0 }
  0xb0   : > { %v377_v32 = vadd.f32 %v3735_v15, %v376_v21 }
  0xb4   : > { %741 = vrot.lane.b32.xlu1 %v3950_v23, %s3864_s15 }
  0xb7   : > { %v378_v24 = vpop.f32.mrf.mxu0 }
  0xb8   : > { %v379_v30 = vadd.f32 %v3735_v15, %v378_v24 }
  0xba   : > { %v3962_v34 = vpack.c.bf16 %v379_v30, %v377_v32 }
  0xbf   : > { %v381_v25 = vpop.f32.mrf.mxu0 }
  0xc0   : > { %v382_v26 = vadd.f32 %v3735_v15, %v381_v25 }
  0xc2   : > { %v3956_v29 = vpack.c.bf16 %v382_v26, %v382_v26 }
  0xc4   : > { %v431_v31 = vand.u32 %v3954_v28, %v3956_v29  ;;  %747 = vrot.lane.b32.xlu0 %v3956_v29, %s3864_s15 }
  0xc6   : > { %437 = vmatpush.bf16.msra.mxu1 %v431_v31  ;;  %517 = vmatpush.bf16.msra.mxu2 %v431_v31 }
  0xc7   : > { %597 = vmatpush.bf16.msra.mxu3 %v431_v31  ;;  %677 = vmatpush.bf16.msrb.mxu0 %v431_v31  ;;  %v383_v33 = vpop.f32.mrf.mxu0 }
  0xca   : > { %438 = vmatpush.bf16.msra.mxu1 %v3962_v34  ;;  %518 = vmatpush.bf16.msra.mxu2 %v3962_v34 }
  0xcb   : > { %598 = vmatpush.bf16.msra.mxu3 %v3962_v34  ;;  %678 = vmatpush.bf16.msrb.mxu0 %v3962_v34 }
  0xcc   : > { %745 = vrot.lane.b32.xlu0 %v3962_v34, %s3864_s15 }
  0xce   : > { %439 = vmatpush.bf16.msra.mxu1 %v3946_v19  ;;  %519 = vmatpush.bf16.msra.mxu2 %v3946_v19 }
  0xcf   : > { %599 = vmatpush.bf16.msra.mxu3 %v3946_v19  ;;  %679 = vmatpush.bf16.msrb.mxu0 %v3946_v19 }
  0xd2   : > { %440 = vmatpush.bf16.msra.mxu1 %v3950_v23  ;;  %520 = vmatpush.bf16.msra.mxu2 %v3950_v23 }
  0xd3   : > { %600 = vmatpush.bf16.msra.mxu3 %v3950_v23  ;;  %680 = vmatpush.bf16.msrb.mxu0 %v3950_v23 }
  0xd5   : > { %3166 = vmatmul.msk.bf16.vlgmr.msra.gmra.mxu1 %vm414_vm2, %v3666_v35  ;;  %3189 = vmatmul.msk.bf16.vlgmr.msra.gmra.mxu2 %vm414_vm2, %v3669_v36  ;;  %v4064_v36 = vld [vmem:[%s4904_s4] ss:$0 sm:$0xff] }
  0xd6   : > { %3212 = vmatmul.msk.bf16.vlgmr.msra.gmra.mxu3 %vm414_vm2, %v3672_v37  ;;  %3235 = vmatmul.msk.bf16.vlgmr.msrb.gmra.mxu0 %vm414_vm2, %v3675_v38 }
  0xe5   : > { %3190 = vmatmul.msk.bf16.gmra.mxu2 %vm414_vm2, %v3670_v39  ;;  %3167 = vmatmul.msk.bf16.gmra.mxu1 %vm414_vm2, %v3667_v40 }
  0xe6   : > { %3213 = vmatmul.msk.bf16.gmra.mxu3 %vm414_vm2, %v3673_v41  ;;  %3236 = vmatmul.msk.bf16.gmra.mxu0 %vm414_vm2, %v3676_v42 }
  0xf5   : > { %3191 = vmatmul.msk.bf16.gmra.mxu2 %vm414_vm2, %v3671_v43  ;;  %3168 = vmatmul.msk.bf16.gmra.mxu1 %vm414_vm2, %v3668_v44 }
  0xf6   : > { %3214 = vmatmul.msk.bf16.gmra.mxu3 %vm414_vm2, %v3674_v45  ;;  %3237 = vmatmul.msk.bf16.gmra.mxu0 %vm414_vm2, %v3677_v46 }
 0x105   : > { %3192 = vmatmul.msk.bf16.gmra.mxu2 %vm414_vm2, %v500_v55  ;;  %3169 = vmatmul.msk.bf16.gmra.mxu1 %vm414_vm2, %v413_v56 }
 0x106   : > { %3215 = vmatmul.msk.bf16.gmra.mxu3 %vm414_vm2, %v580_v57  ;;  %3238 = vmatmul.msk.bf16.gmra.mxu0 %vm414_vm2, %v660_v58 }
 0x11e   : > { %v744_v63 = vpop.permute.xlu1 %743 }
 0x11f   : > { %v766_v0 = vsel %vm749_vm3, %v744_v63, 0 }
 0x126   : > { %v742_v2 = vpop.permute.xlu1 %741 }
 0x127   : > { %v763_v3 = vsel %vm749_vm3, %v742_v2, 0 }
 0x136   : > { %v748_v59 = vpop.permute.xlu0 %747 }
 0x137   : > { %v772_v60 = vsel %vm749_vm3, %v748_v59, 0 }
 0x138   : > { %778 = vmatpush.bf16.xpose.msrb.mxu1 %v772_v60 }
 0x13e   : > { %v746_v61 = vpop.permute.xlu0 %745 }
 0x13f   : > { %v769_v62 = vsel %vm749_vm3, %v746_v61, 0 }
 0x140   : > { %779 = vmatpush.bf16.xpose.msrb.mxu1 %v769_v62 }
 0x148   : > { %780 = vmatpush.bf16.xpose.msrb.mxu1 %v766_v0 }
 0x150   : > { %781 = vmatpush.bf16.xpose.msrb.mxu1 %v763_v3 }
 0x152   : > { %v442_v5 = vpop.f32.mrf.mxu1 }
 0x153   : > { %v682_v6 = vpop.f32.mrf.mxu0  ;;  %v461_v11 = vmul.f32 %v4046_v8, %v442_v5 }
 0x154   : > { %v701_v22 = vmul.f32 %v4055_v20, %v682_v6 }
 0x158   : > { %v522_v10 = vpop.f32.mrf.mxu2 }
 0x159   : > { %v541_v12 = vmul.f32 %v4048_v9, %v522_v10  ;;  %v602_v13 = vpop.f32.mrf.mxu3 }
 0x15a   : > { %v444_v15 = vpop.f32.mrf.mxu1  ;;  %v621_v18 = vmul.f32 %v4052_v14, %v602_v13 }
 0x15b   : > { %v684_v16 = vpop.f32.mrf.mxu0  ;;  %v548_v17 = vadd.f32 %v541_v12, %v461_v11  ;;  %v462_v25 = vmul.f32 %v4046_v8, %v444_v15 }
 0x15c   : > { %v702_v37 = vmul.f32 %v4055_v20, %v684_v16 }
 0x15d   : > { %v628_v24 = vadd.f32 %v621_v18, %v548_v17 }
 0x15f   : > { %v708_v35 = vadd.f32 %v701_v22, %v628_v24 }
 0x160   : > { %v524_v21 = vpop.f32.mrf.mxu2 }
 0x161   : > { %v542_v26 = vmul.f32 %v4048_v9, %v524_v21  ;;  %v604_v27 = vpop.f32.mrf.mxu3  ;;  %v719_v42 = vadd.f32 %v4064_v36, %v708_v35 }
 0x162   : > { %v447_v30 = vpop.f32.mrf.mxu1  ;;  %v622_v32 = vmul.f32 %v4052_v14, %v604_v27 }
 0x163   : > { %v549_v31 = vadd.f32 %v542_v26, %v462_v25  ;;  %v687_v33 = vpop.f32.mrf.mxu0  ;;  %v463_v40 = vmul.f32 %v4046_v8, %v447_v30 }
 0x164   : > { %v703_v52 = vmul.f32 %v4055_v20, %v687_v33 }
 0x165   : > { %v629_v38 = vadd.f32 %v622_v32, %v549_v31 }
 0x167   : > { %v709_v39 = vadd.f32 %v702_v37, %v629_v38 }
 0x168   : > { %v527_v41 = vpop.f32.mrf.mxu2 }
 0x169   : > { %v720_v43 = vadd.f32 %v4064_v36, %v709_v39  ;;  %v543_v44 = vmul.f32 %v4048_v9, %v527_v41  ;;  %v607_v45 = vpop.f32.mrf.mxu3 }
 0x16a   : > { %v449_v46 = vpop.f32.mrf.mxu1  ;;  %v623_v48 = vmul.f32 %v4052_v14, %v607_v45 }
 0x16b   : > { %v550_v47 = vadd.f32 %v543_v44, %v463_v40  ;;  %v726_v49 = vpack.c.bf16 %v720_v43, %v719_v42  ;;  %v689_v50 = vpop.f32.mrf.mxu0  ;;  %v464_v53 = vmul.f32 %v4046_v8, %v449_v46 }
 0x16c   : > { %v704_v61 = vmul.f32 %v4055_v20, %v689_v50 }
 0x16d   : > { %3239 = vmatmul.msk.bf16.vlgmr.msrb.gmra.mxu1 %vm749_vm3, %v726_v49  ;;  %v630_v51 = vadd.f32 %v623_v48, %v550_v47 }
 0x16f   : > { %v710_v59 = vadd.f32 %v703_v52, %v630_v51 }
 0x170   : > { %v529_v54 = vpop.f32.mrf.mxu2 }
 0x171   : > { %v544_v55 = vmul.f32 %v4048_v9, %v529_v54  ;;  %v609_v56 = vpop.f32.mrf.mxu3  ;;  %v721_v0 = vadd.f32 %v4064_v36, %v710_v59  ;;  %v730_v54 = vld [vmem:[%s4905_s5] sm:$0xff] }
 0x172   : > { %v624_v57 = vmul.f32 %v4052_v14, %v609_v56  ;;  %v452_v58 = vpop.f32.mrf.mxu1 }
 0x173   : > { %v551_v60 = vadd.f32 %v544_v55, %v464_v53  ;;  %v692_v62 = vpop.f32.mrf.mxu0  ;;  %v465_v2 = vmul.f32 %v4046_v8, %v452_v58  ;;  %v731_v58 = vld [vmem:[%s4905_s5 + $0x8] sm:$0xff] }
 0x174   : > { %v705_v16 = vmul.f32 %v4055_v20, %v692_v62 }
 0x175   : > { %v631_v63 = vadd.f32 %v624_v57, %v551_v60 }
 0x177   : > { %v711_v1 = vadd.f32 %v704_v61, %v631_v63  ;;  %v732_v61 = vld [vmem:[%s4905_s5 + $0x10] sm:$0xff] }
 0x178   : > { %v532_v3 = vpop.f32.mrf.mxu2 }
 0x179   : > { %v722_v4 = vadd.f32 %v4064_v36, %v711_v1  ;;  %v545_v5 = vmul.f32 %v4048_v9, %v532_v3  ;;  %v612_v6 = vpop.f32.mrf.mxu3  ;;  %v733_v1 = vld [vmem:[%s4905_s5 + $0x18] sm:$0xff] }
 0x17a   : > { %v454_v7 = vpop.f32.mrf.mxu1  ;;  %v625_v11 = vmul.f32 %v4052_v14, %v612_v6 }
 0x17b   : > { %v552_v10 = vadd.f32 %v545_v5, %v465_v2  ;;  %v727_v12 = vpack.c.bf16 %v722_v4, %v721_v0  ;;  %v694_v13 = vpop.f32.mrf.mxu0  ;;  %v466_v17 = vmul.f32 %v4046_v8, %v454_v7  ;;  %v734_v5 = vld [vmem:[%s4905_s5 + $0x20] sm:$0xff] }
 0x17c   : > { %v706_v30 = vmul.f32 %v4055_v20, %v694_v13 }
 0x17d   : > { %3240 = vmatmul.msk.bf16.gmra.mxu1 %vm749_vm3, %v727_v12  ;;  %v632_v15 = vadd.f32 %v625_v11, %v552_v10  ;;  %v735_v11 = vld [vmem:[%s4905_s5 + $0x28] sm:$0xff] }
 0x17f   : > { %v712_v26 = vadd.f32 %v705_v16, %v632_v15  ;;  %v736_v16 = vld [vmem:[%s4905_s5 + $0x30] sm:$0x1] }
 0x180   : > { %v534_v18 = vpop.f32.mrf.mxu2 }
 0x181   : > { %v546_v21 = vmul.f32 %v4048_v9, %v534_v18  ;;  %v614_v22 = vpop.f32.mrf.mxu3  ;;  %v723_v33 = vadd.f32 %v4064_v36, %v712_v26 }
 0x182   : > { %v626_v24 = vmul.f32 %v4052_v14, %v614_v22  ;;  %v457_v25 = vpop.f32.mrf.mxu1 }
 0x183   : > { %v553_v27 = vadd.f32 %v546_v21, %v466_v17  ;;  %v697_v31 = vpop.f32.mrf.mxu0  ;;  %v467_v37 = vmul.f32 %v4046_v8, %v457_v25 }
 0x184   : > { %v707_v48 = vmul.f32 %v4055_v20, %v697_v31 }
 0x185   : > { %v633_v32 = vadd.f32 %v626_v24, %v553_v27 }
 0x187   : > { %v713_v35 = vadd.f32 %v706_v30, %v633_v32 }
 0x188   : > { %v537_v38 = vpop.f32.mrf.mxu2 }
 0x189   : > { %v724_v39 = vadd.f32 %v4064_v36, %v713_v35  ;;  %v547_v40 = vmul.f32 %v4048_v9, %v537_v38  ;;  %v617_v41 = vpop.f32.mrf.mxu3 }
 0x18a   : > { %v627_v42 = vmul.f32 %v4052_v14, %v617_v41  ;;  %v459_v43 = vpop.f32.mrf.mxu1 }
 0x18b   : > { %v728_v44 = vpack.c.bf16 %v724_v39, %v723_v33  ;;  %v554_v45 = vadd.f32 %v547_v40, %v467_v37  ;;  %v699_v46 = vpop.f32.mrf.mxu0 }
 0x18d   : > { %3241 = vmatmul.msk.bf16.gmra.mxu1 %vm749_vm3, %v728_v44  ;;  %v634_v47 = vadd.f32 %v627_v42, %v554_v45 }
 0x18f   : > { %v714_v50 = vadd.f32 %v707_v48, %v634_v47 }
 0x190   : > { %v539_v49 = vpop.f32.mrf.mxu2 }
 0x191   : > { %v619_v51 = vpop.f32.mrf.mxu3  ;;  %v725_v52 = vadd.f32 %v4064_v36, %v714_v50 }
 0x193   : > { %v729_v53 = vpack.c.bf16 %v725_v52, %v725_v52 }
 0x19d   : > { %3242 = vmatmul.msk.bf16.gmra.mxu1 %vm749_vm3, %v729_v53 }
 0x1ea   : > { %v783_v55 = vpop.f32.mrf.mxu1 }
 0x1eb   : > { %v784_v56 = vadd.f32 %v783_v55, %v730_v54 }
 0x1ed   : > { %v802_v57 = vsel %vm414_vm2, %v784_v56, -inf }
 0x1ee   : > { %803 = vmax.xlane.f32.xlu2 %v802_v57 }
 0x1f2   : > { %v785_v59 = vpop.f32.mrf.mxu1 }
 0x1f3   : > { %v786_v60 = vadd.f32 %v785_v59, %v731_v58 }
 0x1f5   : > { %v805_v36 = vsel %vm414_vm2, %v786_v60, -inf }
 0x1f6   : > { %806 = vmax.xlane.f32.xlu2 %v805_v36 }
 0x1fa   : > { %v788_v62 = vpop.f32.mrf.mxu1 }
 0x1fb   : > { %v789_v63 = vadd.f32 %v788_v62, %v732_v61 }
 0x1fd   : > { %v808_v0 = vsel %vm414_vm2, %v789_v63, -inf }
 0x1fe   : > { %809 = vmax.xlane.f32.xlu0 %v808_v0 }
 0x202   : > { %v790_v2 = vpop.f32.mrf.mxu1 }
 0x203   : > { %v4113_v3 = vadd.f32 %v790_v2, %v733_v1 }
 0x205   : > { %v811_v4 = vsel %vm414_vm2, %v4113_v3, -inf }
 0x206   : > { %812 = vmax.xlane.f32.xlu1 %v811_v4 }
 0x20a   : > { %v793_v6 = vpop.f32.mrf.mxu1 }
 0x20b   : > { %v794_v7 = vadd.f32 %v793_v6, %v734_v5 }
 0x20d   : > { %v814_v10 = vsel %vm414_vm2, %v794_v7, -inf }
 0x20e   : > { %815 = vmax.xlane.f32.xlu2 %v814_v10 }
 0x212   : > { %v795_v12 = vpop.f32.mrf.mxu1 }
 0x213   : > { %v796_v13 = vadd.f32 %v795_v12, %v735_v11 }
 0x215   : > { %v817_v15 = vsel %vm414_vm2, %v796_v13, -inf }
 0x216   : > { %818 = vmax.xlane.f32.xlu2 %v817_v15 }
 0x21a   : > { %v798_v17 = vpop.f32.mrf.mxu1 }
 0x21b   : > { %v799_v18 = vadd.f32 %v798_v17, %v736_v16 }
 0x21d   : > { %v821_v21 = vsel %vm820_vm8, %v799_v18, -inf }
 0x21e   : > { %822 = vmax.xlane.f32.xlu0 %v821_v21 }
 0x21f   : > { %888 = vrot.lane.b32.xlu1 %v3962_v34, %s3867_s30 }
 0x222   : > { %v800_v22 = vpop.f32.mrf.mxu1 }
 0x227   : > { %884 = vrot.lane.b32.xlu1 %v3950_v23, %s3867_s30 }
 0x22e   : > { %890 = vrot.lane.b32.xlu2 %v3956_v29, %s3867_s30 }
 0x261   : > { %v804_v24 = vpop.xlane.xlu2 %803 }
 0x262   : > { %v824_v25 = vsub.f32 %v784_v56, %v804_v24 }
 0x264   : > { %v831_v26 = vmul.f32 1.442695, %v824_v25 }
 0x266   : > { %3744 = vpow2.f32 %v831_v26 }
 0x269   : > { %v807_v27 = vpop.xlane.xlu2 %806 }
 0x26a   : > { %v825_v30 = vsub.f32 %v786_v60, %v807_v27 }
 0x26c   : > { %v3745_v31 = vpop.eup %3744  ;;  %v833_v32 = vmul.f32 1.442695, %v825_v30 }
 0x26d   : > { %v845_v33 = vsel %vm414_vm2, %v3745_v31, 0.0 }
 0x26e   : > { %3746 = vpow2.f32 %v833_v32  ;;  %846 = vadd.xlane.f32.xlu2 %v845_v33  ;;  %v3679_v32 = vld [vmem:[%s4901_s1 + $0x8] sm:$0xff] }
 0x26f   : > { %1003 = vmatpush.bf16.msrb.mxu3 %v3679_v32  ;;  %v3688_v32 = vld [vmem:[%s4903_s3 + $0xb8] sm:$0xff] }
 0x271   : > { %v810_v34 = vpop.xlane.xlu0 %809 }
 0x272   : > { %v826_v35 = vsub.f32 %v789_v63, %v810_v34  ;;  %v3247_v34 = vld [vmem:[%s3930_s12 + $0x38] sm:$0xff] }
 0x274   : > { %v3747_v37 = vpop.eup %3746  ;;  %v835_v38 = vmul.f32 1.442695, %v826_v35  ;;  %v3248_v35 = vld [vmem:[%s3930_s12 + $0x40] sm:$0xff] }
 0x275   : > { %v848_v23 = vsel %vm414_vm2, %v3747_v37, 0.0 }
 0x276   : > { %3748 = vpow2.f32 %v835_v38  ;;  %849 = vadd.xlane.f32.xlu0 %v848_v23 }
 0x279   : > { %v813_v48 = vpop.xlane.xlu1 %812 }
 0x27a   : > { %v827_v58 = vsub.f32 %v4113_v3, %v813_v48  ;;  %v3252_v48 = vld [vmem:[%s3930_s12 + $0x60] sm:$0xff] }
 0x27c   : > { %v3749_v29 = vpop.eup %3748  ;;  %v837_v59 = vmul.f32 1.442695, %v827_v58 }
 0x27d   : > { %v851_v39 = vsel %vm414_vm2, %v3749_v29, 0.0 }
 0x27e   : > { %852 = vadd.xlane.f32.xlu1 %v851_v39 }
 0x281   : > { %v816_v40 = vpop.xlane.xlu2 %815 }
 0x282   : > { %v828_v41 = vsub.f32 %v794_v7, %v816_v40  ;;  %v3249_v40 = vld [vmem:[%s3930_s12 + $0x48] sm:$0xff] }
 0x284   : > { %v839_v42 = vmul.f32 1.442695, %v828_v41  ;;  %v3250_v41 = vld [vmem:[%s3930_s12 + $0x50] sm:$0xff] }
 0x286   : > { %3750 = vpow2.f32 %v839_v42 }
 0x289   : > { %v819_v43 = vpop.xlane.xlu2 %818 }
 0x28a   : > { %v829_v44 = vsub.f32 %v796_v13, %v819_v43  ;;  %886 = vrot.lane.b32.xlu0 %v3946_v19, %s3867_s30 }
 0x28c   : > { %v3751_v45 = vpop.eup %3750  ;;  %v841_v46 = vmul.f32 1.442695, %v829_v44 }
 0x28d   : > { %v857_v47 = vsel %vm414_vm2, %v3751_v45, 0.0 }
 0x28e   : > { %3752 = vpow2.f32 %v841_v46  ;;  %858 = vadd.xlane.f32.xlu2 %v857_v47  ;;  %v3251_v47 = vld [vmem:[%s3930_s12 + $0x58] sm:$0xff] }
 0x291   : > { %v823_v49 = vpop.xlane.xlu0 %822  ;;  %v891_v51 = vpop.permute.xlu2 %890 }
 0x292   : > { %v830_v50 = vsub.f32 %v799_v18, %v823_v49  ;;  %v908_v52 = vand.u32 %v891_v51, %v3954_v28  ;;  %v889_v19 = vpop.permute.xlu1 %888 }
 0x294   : > { %v3753_v53 = vpop.eup %3752  ;;  %v843_v54 = vmul.f32 1.442695, %v830_v50  ;;  %914 = vmatpush.bf16.msrb.mxu2 %v908_v52 }
 0x295   : > { %v860_v55 = vsel %vm414_vm2, %v3753_v53, 0.0 }
 0x296   : > { %3754 = vpow2.f32 %v843_v54  ;;  %861 = vadd.xlane.f32.xlu2 %v860_v55  ;;  %v3253_v54 = vld [vmem:[%s3930_s12 + $0x68] sm:$0x1] }
 0x297   : > { %3756 = vpow2.f32 %v837_v59 }
 0x298   : > { %915 = vmatpush.bf16.msrb.mxu2 %v889_v19 }
 0x29a   : > { %v885_v4 = vpop.permute.xlu1 %884 }
 0x29c   : > { %v3755_v56 = vpop.eup %3754 }
 0x29d   : > { %v863_v57 = vsel %vm820_vm8, %v3755_v56, 0.0  ;;  %v3757_v60 = vpop.eup %3756 }
 0x29e   : > { %864 = vadd.xlane.f32.xlu2 %v863_v57  ;;  %v854_v36 = vsel %vm414_vm2, %v3757_v60, 0.0 }
 0x2b4   : > { %855 = vadd.xlane.f32.xlu0 %v854_v36 }
 0x2e1   : > { %v847_v62 = vpop.xlane.xlu2 %846 }
 0x2e9   : > { %v850_v61 = vpop.xlane.xlu0 %849 }
 0x2ea   : > { %3758 = vrcp.f32 %v850_v61 }
 0x2eb   : > { %3760 = vrcp.f32 %v847_v62 }
 0x2f0   : > { %v3759_v63 = vpop.eup %3758 }
 0x2f1   : > { %v3761_v1 = vpop.eup %3760  ;;  %v874_v2 = vmul.f32 %v3759_v63, %v3747_v37  ;;  %v853_v3 = vpop.xlane.xlu1 %852 }
 0x2f2   : > { %v873_v5 = vmul.f32 %v3761_v1, %v3745_v31  ;;  %3762 = vrcp.f32 %v853_v3 }
 0x2f4   : > { %v880_v6 = vpack.c.bf16 %v874_v2, %v873_v5 }
 0x2f8   : > { %v3763_v11 = vpop.eup %3762 }
 0x2f9   : > { %v875_v13 = vmul.f32 %v3763_v11, %v3749_v29 }
 0x2fc   : > { %v887_v0 = vpop.permute.xlu0 %886 }
 0x2fd   : > { %916 = vmatpush.bf16.msrb.mxu2 %v887_v0 }
 0x301   : > { %917 = vmatpush.bf16.msrb.mxu2 %v885_v4  ;;  %v859_v7 = vpop.xlane.xlu2 %858 }
 0x304   : > { %3243 = vmatmul.msk.bf16.vlgmr.msrb.gmra.mxu2 %vm414_vm2, %v880_v6 }
 0x309   : > { %v862_v16 = vpop.xlane.xlu2 %861 }
 0x311   : > { %v865_v25 = vpop.xlane.xlu2 %864 }
 0x327   : > { %v856_v10 = vpop.xlane.xlu0 %855 }
 0x328   : > { %3764 = vrcp.f32 %v856_v10 }
 0x329   : > { %3766 = vrcp.f32 %v862_v16  ;;  %v3680_v16 = vld [vmem:[%s4903_s3 + $0x70] sm:$0xff] }
 0x32a   : > { %3768 = vrcp.f32 %v859_v7 }
 0x32b   : > { %3770 = vrcp.f32 %v865_v25  ;;  %v3687_v25 = vld [vmem:[%s4903_s3 + $0xb0] sm:$0xff] }
 0x32e   : > { %v3765_v12 = vpop.eup %3764 }
 0x32f   : > { %v876_v15 = vmul.f32 %v3765_v12, %v3757_v60  ;;  %v3767_v18 = vpop.eup %3766  ;;  %v3737_v60 = vld [vmem:[%s4902_s2 + $0x1] ss:$0 sm:$0xff] }
 0x330   : > { %v3769_v21 = vpop.eup %3768  ;;  %v878_v22 = vmul.f32 %v3767_v18, %v3753_v53  ;;  %v3686_v18 = vld [vmem:[%s4903_s3 + $0xa8] sm:$0xff] }
 0x331   : > { %v881_v17 = vpack.c.bf16 %v876_v15, %v875_v13  ;;  %v877_v24 = vmul.f32 %v3769_v21, %v3751_v45  ;;  %v3771_v27 = vpop.eup %3770  ;;  %v3689_v21 = vld [vmem:[%s4903_s3 + $0xc4] sm:$0xff] }
 0x332   : > { %v879_v30 = vmul.f32 %v3771_v27, %v3755_v56  ;;  %v3678_v27 = vld [vmem:[%s4906_s6] sm:$0xff] }
 0x333   : > { %3244 = vmatmul.msk.bf16.gmra.mxu2 %vm414_vm2, %v881_v17  ;;  %v882_v26 = vpack.c.bf16 %v878_v22, %v877_v24  ;;  %v3683_v17 = vld [vmem:[%s4903_s3 + $0x8c] sm:$0xff]  ;;  %v3681_v22 = vld [vmem:[%s4903_s3 + $0x78] sm:$0xff] }
 0x334   : > { %v883_v31 = vpack.c.bf16 %v879_v30, %v879_v30  ;;  %v3684_v24 = vld [vmem:[%s4903_s3 + $0x94] sm:$0xff]  ;;  %v3682_v30 = vld [vmem:[%s4903_s3 + $0x80] sm:$0xff] }
 0x343   : > { %3245 = vmatmul.msk.bf16.gmra.mxu2 %vm414_vm2, %v882_v26  ;;  %v3690_v26 = vld [vmem:[%s4903_s3 + $0xcc] sm:$0xff] }
 0x353   : > { %3246 = vmatmul.msk.bf16.gmra.mxu2 %vm414_vm2, %v883_v31  ;;  %v3685_v31 = vld [vmem:[%s4903_s3 + $0x9c] sm:$0xff] }
 0x387   : > { %v4153_v33 = vpop.f32.mrf.mxu2 }
 0x388   : > { %v959_v38 = vadd.f32 %v3247_v34, %v4153_v33  ;;  %v3691_v34 = vld [vmem:[%s4903_s3 + $0xd4] sm:$0xff] }
 0x38f   : > { %v4157_v37 = vpop.f32.mrf.mxu2 }
 0x390   : > { %v960_v23 = vadd.f32 %v3248_v35, %v4157_v37  ;;  %v3271_v35 = vld [vmem:[%s4903_s3 + $0x88] sm:$0x1] }
 0x392   : > { %v966_v29 = vpack.c.bf16 %v960_v23, %v959_v38  ;;  %v3294_v38 = vld [vmem:[%s4903_s3 + $0xa4] sm:$0x1]  ;;  %v3340_v23 = vld [vmem:[%s4903_s3 + $0xdc] sm:$0x1] }
 0x394   : > { %3261 = vmatmul.msk.bf16.vlgmr.msrb.gmra.mxu3 %vm344_vm0, %v966_v29  ;;  %v3317_v29 = vld [vmem:[%s4903_s3 + $0xc0] sm:$0x1] }
 0x3b6   : > { %v4162_v39 = vpop.f32.mrf.mxu2 }
 0x3b7   : > { %v961_v43 = vadd.f32 %v3249_v40, %v4162_v39  ;;  %v1049_v40 = vunpack.c.l.b16 %v3271_v35 }
 0x3be   : > { %v4166_v42 = vpop.f32.mrf.mxu2 }
 0x3bf   : > { %v962_v44 = vadd.f32 %v3250_v41, %v4166_v42  ;;  %v1132_v41 = vunpack.c.l.b16 %v3294_v38 }
 0x3c1   : > { %v967_v45 = vpack.c.bf16 %v962_v44, %v961_v43  ;;  %v1292_v43 = vunpack.c.l.b16 %v3340_v23  ;;  %v1212_v44 = vunpack.c.l.b16 %v3317_v29 }
 0x3c3   : > { %3262 = vmatmul.msk.bf16.gmra.mxu3 %vm344_vm0, %v967_v45  ;;  %v1053_v45 = vpack.c.b16 %v1049_v40, %v1049_v40 }
 0x3c6   : > { %v4171_v46 = vpop.f32.mrf.mxu2 }
 0x3c7   : > { %v963_v50 = vadd.f32 %v3251_v47, %v4171_v46  ;;  %v1136_v47 = vpack.c.b16 %v1132_v41, %v1132_v41 }
 0x3ce   : > { %v4175_v49 = vpop.f32.mrf.mxu2 }
 0x3cf   : > { %v964_v51 = vadd.f32 %v3252_v48, %v4175_v49  ;;  %v1296_v48 = vpack.c.b16 %v1292_v43, %v1292_v43 }
 0x3d1   : > { %v968_v52 = vpack.c.bf16 %v964_v51, %v963_v50  ;;  %v1216_v50 = vpack.c.b16 %v1212_v44, %v1212_v44  ;;  %v939_v51 = vmax.f32 %v4157_v37, 0.0 }
 0x3d3   : > { %3263 = vmatmul.msk.bf16.gmra.mxu3 %vm344_vm0, %v968_v52  ;;  %v938_v52 = vmax.f32 %v4153_v33, 0.0 }
 0x3d6   : > { %v4180_v53 = vpop.f32.mrf.mxu2 }
 0x3d7   : > { %v965_v55 = vadd.f32 %v3253_v54, %v4180_v53  ;;  %v945_v54 = vpack.c.bf16 %v939_v51, %v938_v52 }
 0x3d9   : > { %v969_v56 = vpack.c.bf16 %v965_v55, %v965_v55 }
 0x3de   : > { %v936_v19 = vpop.f32.mrf.mxu2 }
 0x3e3   : > { %3264 = vmatmul.msk.bf16.gmra.mxu3 %vm344_vm0, %v969_v56  ;;  %v941_v56 = vmax.f32 %v4166_v42, 0.0 }
 0x417   : > { %v1005_v57 = vpop.f32.mrf.mxu3 }
 0x418   : > { %v1006_v13 = vadd.f32 %v3737_v60, %v1005_v57  ;;  %v940_v57 = vmax.f32 %v4162_v39, 0.0 }
 0x41f   : > { %v1007_v58 = vpop.f32.mrf.mxu3 }
 0x420   : > { %v1008_v11 = vadd.f32 %v3737_v60, %v1007_v58  ;;  %v946_v58 = vpack.c.bf16 %v941_v56, %v940_v57 }
 0x422   : > { %v4198_v15 = vpack.c.bf16 %v1008_v11, %v1006_v13 }
 0x446   : > { %v1010_v59 = vpop.f32.mrf.mxu3 }
 0x447   : > { %v1011_v61 = vadd.f32 %v3737_v60, %v1010_v59 }
 0x44e   : > { %v1012_v36 = vpop.f32.mrf.mxu3 }
 0x44f   : > { %v1013_v62 = vadd.f32 %v3737_v60, %v1012_v36 }
 0x451   : > { %v4188_v63 = vpack.c.bf16 %v1013_v62, %v1011_v61  ;;  %v943_v61 = vmax.f32 %v4175_v49, 0.0  ;;  %v942_v62 = vmax.f32 %v4171_v46, 0.0 }
 0x453   : > { %1381 = vrot.lane.b32.xlu0 %v4188_v63, %s3864_s15  ;;  %v947_v42 = vpack.c.bf16 %v943_v61, %v942_v62 }
 0x456   : > { %v1015_v0 = vpop.f32.mrf.mxu3 }
 0x457   : > { %v1016_v2 = vadd.f32 %v3737_v60, %v1015_v0 }
 0x45e   : > { %v1017_v1 = vpop.f32.mrf.mxu3 }
 0x45f   : > { %v1018_v4 = vadd.f32 %v3737_v60, %v1017_v1 }
 0x461   : > { %v4192_v5 = vpack.c.bf16 %v1018_v4, %v1016_v2  ;;  %v944_v2 = vmax.f32 %v4180_v53, 0.0 }
 0x463   : > { %1383 = vrot.lane.b32.xlu1 %v4192_v5, %s3864_s15  ;;  %v948_v4 = vpack.c.bf16 %v944_v2, %v944_v2 }
 0x466   : > { %v1020_v6 = vpop.f32.mrf.mxu3 }
 0x467   : > { %v1021_v3 = vadd.f32 %v3737_v60, %v1020_v6 }
 0x469   : > { %v1027_v7 = vpack.c.bf16 %v1021_v3, %v1021_v3 }
 0x46b   : > { %v1067_v10 = vand.u32 %v1027_v7, %v3954_v28  ;;  %1385 = vrot.lane.b32.xlu2 %v1027_v7, %s3864_s15 }
 0x46d   : > { %1073 = vmatpush.bf16.msra.mxu0 %v1067_v10  ;;  %1153 = vmatpush.bf16.msra.mxu1 %v1067_v10 }
 0x46e   : > { %1233 = vmatpush.bf16.msra.mxu2 %v1067_v10  ;;  %1313 = vmatpush.bf16.msra.mxu3 %v1067_v10  ;;  %v1022_v12 = vpop.f32.mrf.mxu3 }
 0x471   : > { %1074 = vmatpush.bf16.msra.mxu0 %v4192_v5  ;;  %1154 = vmatpush.bf16.msra.mxu1 %v4192_v5 }
 0x472   : > { %1234 = vmatpush.bf16.msra.mxu2 %v4192_v5  ;;  %1314 = vmatpush.bf16.msra.mxu3 %v4192_v5 }
 0x473   : > { %1379 = vrot.lane.b32.xlu2 %v4198_v15, %s3864_s15 }
 0x475   : > { %1075 = vmatpush.bf16.msra.mxu0 %v4188_v63  ;;  %1155 = vmatpush.bf16.msra.mxu1 %v4188_v63 }
 0x476   : > { %1235 = vmatpush.bf16.msra.mxu2 %v4188_v63  ;;  %1315 = vmatpush.bf16.msra.mxu3 %v4188_v63 }
 0x479   : > { %1076 = vmatpush.bf16.msra.mxu0 %v4198_v15  ;;  %1156 = vmatpush.bf16.msra.mxu1 %v4198_v15 }
 0x47a   : > { %1236 = vmatpush.bf16.msra.mxu2 %v4198_v15  ;;  %1316 = vmatpush.bf16.msra.mxu3 %v4198_v15 }
 0x47b   : > { %1526 = vrot.lane.b32.xlu2 %v1027_v7, %s3867_s30 }
 0x47c   : > { %3284 = vmatmul.msk.bf16.vlgmr.msra.gmra.mxu0 %vm414_vm2, %v3680_v16  ;;  %3307 = vmatmul.msk.bf16.vlgmr.msra.gmra.mxu1 %vm414_vm2, %v3683_v17 }
 0x47d   : > { %3330 = vmatmul.msk.bf16.vlgmr.msra.gmra.mxu2 %vm414_vm2, %v3686_v18  ;;  %3353 = vmatmul.msk.bf16.vlgmr.msra.gmra.mxu3 %vm414_vm2, %v3689_v21 }
 0x47e   : > { %1659 = vmatpush.bf16.msrb.mxu3 %v3678_v27 }
 0x48c   : > { %3285 = vmatmul.msk.bf16.gmra.mxu0 %vm414_vm2, %v3681_v22  ;;  %3308 = vmatmul.msk.bf16.gmra.mxu1 %vm414_vm2, %v3684_v24 }
 0x48d   : > { %3331 = vmatmul.msk.bf16.gmra.mxu2 %vm414_vm2, %v3687_v25  ;;  %3354 = vmatmul.msk.bf16.gmra.mxu3 %vm414_vm2, %v3690_v26 }
 0x49c   : > { %3286 = vmatmul.msk.bf16.gmra.mxu0 %vm414_vm2, %v3682_v30  ;;  %3309 = vmatmul.msk.bf16.gmra.mxu1 %vm414_vm2, %v3685_v31 }
 0x49d   : > { %3332 = vmatmul.msk.bf16.gmra.mxu2 %vm414_vm2, %v3688_v32  ;;  %3355 = vmatmul.msk.bf16.gmra.mxu3 %vm414_vm2, %v3691_v34  ;;  %v4308_v32 = vld [vmem:[%s4904_s4 + $0x1] ss:$0 sm:$0xff] }
 0x4ac   : > { %3287 = vmatmul.msk.bf16.gmra.mxu0 %vm414_vm2, %v1053_v45  ;;  %3310 = vmatmul.msk.bf16.gmra.mxu1 %vm414_vm2, %v1136_v47 }
 0x4ad   : > { %3356 = vmatmul.msk.bf16.gmra.mxu3 %vm414_vm2, %v1296_v48  ;;  %3333 = vmatmul.msk.bf16.gmra.mxu2 %vm414_vm2, %v1216_v50 }
 0x4bd   : > { %3387 = vmatmul.msk.bf16.vlgmr.msrb.gmra.mxu3 %vm344_vm0, %v945_v54 }
 0x4c5   : > { %v1386_v55 = vpop.permute.xlu2 %1385  ;;  %v1382_v0 = vpop.permute.xlu0 %1381 }
 0x4c6   : > { %v1409_v19 = vsel %vm749_vm3, %v1386_v55, 0  ;;  %v1403_v39 = vsel %vm749_vm3, %v1382_v0, 0 }
 0x4c7   : > { %1415 = vmatpush.bf16.xpose.msrb.mxu0 %v1409_v19 }
 0x4cd   : > { %3388 = vmatmul.msk.bf16.gmra.mxu3 %vm344_vm0, %v946_v58  ;;  %v1380_v59 = vpop.permute.xlu2 %1379 }
 0x4ce   : > { %v1400_v1 = vsel %vm749_vm3, %v1380_v59, 0 }
 0x4d5   : > { %v1384_v60 = vpop.permute.xlu1 %1383  ;;  %v1527_v36 = vpop.permute.xlu2 %1526 }
 0x4d6   : > { %v1406_v37 = vsel %vm749_vm3, %v1384_v60, 0  ;;  %v1544_v33 = vand.u32 %v1527_v36, %v3954_v28 }
 0x4d7   : > { %1416 = vmatpush.bf16.xpose.msrb.mxu0 %v1406_v37 }
 0x4d8   : > { %1550 = vmatpush.bf16.msrb.mxu1 %v1544_v33 }
 0x4dd   : > { %3389 = vmatmul.msk.bf16.gmra.mxu3 %vm344_vm0, %v947_v42 }
 0x4df   : > { %1417 = vmatpush.bf16.xpose.msrb.mxu0 %v1403_v39 }
 0x4e7   : > { %1418 = vmatpush.bf16.xpose.msrb.mxu0 %v1400_v1 }
 0x4ed   : > { %3390 = vmatmul.msk.bf16.gmra.mxu3 %vm344_vm0, %v948_v4 }
 0x4f9   : > { %v1078_v49 = vpop.f32.mrf.mxu0  ;;  %v1158_v6 = vpop.f32.mrf.mxu1 }
 0x4fa   : > { %v1097_v3 = vmul.f32 %v4046_v8, %v1078_v49  ;;  %v1177_v46 = vmul.f32 %v4048_v9, %v1158_v6 }
 0x4fc   : > { %v1184_v13 = vadd.f32 %v1177_v46, %v1097_v3 }
 0x500   : > { %v1238_v7 = vpop.f32.mrf.mxu2  ;;  %v1318_v10 = vpop.f32.mrf.mxu3 }
 0x501   : > { %v1080_v11 = vpop.f32.mrf.mxu0  ;;  %v1160_v12 = vpop.f32.mrf.mxu1  ;;  %v1257_v16 = vmul.f32 %v4052_v14, %v1238_v7  ;;  %v1337_v21 = vmul.f32 %v4055_v20, %v1318_v10 }
 0x502   : > { %v1098_v17 = vmul.f32 %v4046_v8, %v1080_v11  ;;  %v1178_v53 = vmul.f32 %v4048_v9, %v1160_v12 }
 0x503   : > { %v1264_v18 = vadd.f32 %v1257_v16, %v1184_v13 }
 0x504   : > { %v1185_v25 = vadd.f32 %v1178_v53, %v1098_v17 }
 0x505   : > { %v1344_v31 = vadd.f32 %v1337_v21, %v1264_v18 }
 0x507   : > { %v1356_v40 = vadd.f32 %v4308_v32, %v1344_v31 }
 0x508   : > { %v1240_v22 = vpop.f32.mrf.mxu2  ;;  %v1320_v24 = vpop.f32.mrf.mxu3 }
 0x509   : > { %v1258_v26 = vmul.f32 %v4052_v14, %v1240_v22  ;;  %v1083_v27 = vpop.f32.mrf.mxu0  ;;  %v1163_v30 = vpop.f32.mrf.mxu1  ;;  %v1338_v35 = vmul.f32 %v4055_v20, %v1320_v24 }
 0x50a   : > { %v1099_v23 = vmul.f32 %v4046_v8, %v1083_v27  ;;  %v1179_v29 = vmul.f32 %v4048_v9, %v1163_v30 }
 0x50b   : > { %v1265_v34 = vadd.f32 %v1258_v26, %v1185_v25 }
 0x50c   : > { %v1186_v47 = vadd.f32 %v1179_v29, %v1099_v23 }
 0x50d   : > { %v1345_v38 = vadd.f32 %v1338_v35, %v1265_v34 }
 0x50f   : > { %v1357_v41 = vadd.f32 %v4308_v32, %v1345_v38 }
 0x510   : > { %v1243_v43 = vpop.f32.mrf.mxu2  ;;  %v1323_v44 = vpop.f32.mrf.mxu3 }
 0x511   : > { %v1363_v45 = vpack.c.bf16 %v1357_v41, %v1356_v40  ;;  %v1259_v48 = vmul.f32 %v4052_v14, %v1243_v43  ;;  %v1085_v50 = vpop.f32.mrf.mxu0  ;;  %v1165_v51 = vpop.f32.mrf.mxu1  ;;  %v1339_v19 = vmul.f32 %v4055_v20, %v1323_v44 }
 0x512   : > { %v1100_v52 = vmul.f32 %v4046_v8, %v1085_v50  ;;  %v1180_v54 = vmul.f32 %v4048_v9, %v1165_v51 }
 0x513   : > { %3365 = vmatmul.msk.bf16.vlgmr.msrb.gmra.mxu0 %vm749_vm3, %v1363_v45  ;;  %v1266_v55 = vadd.f32 %v1259_v48, %v1186_v47 }
 0x514   : > { %v1187_v56 = vadd.f32 %v1180_v54, %v1100_v52 }
 0x515   : > { %v1346_v59 = vadd.f32 %v1339_v19, %v1266_v55 }
 0x517   : > { %v1358_v62 = vadd.f32 %v4308_v32, %v1346_v59 }
 0x518   : > { %v1245_v57 = vpop.f32.mrf.mxu2  ;;  %v1325_v58 = vpop.f32.mrf.mxu3 }
 0x519   : > { %v1260_v60 = vmul.f32 %v4052_v14, %v1245_v57  ;;  %v1340_v36 = vmul.f32 %v4055_v20, %v1325_v58  ;;  %v1088_v37 = vpop.f32.mrf.mxu0  ;;  %v1168_v33 = vpop.f32.mrf.mxu1 }
 0x51a   : > { %v1101_v0 = vmul.f32 %v4046_v8, %v1088_v37  ;;  %v1181_v39 = vmul.f32 %v4048_v9, %v1168_v33 }
 0x51b   : > { %v1267_v61 = vadd.f32 %v1260_v60, %v1187_v56 }
 0x51c   : > { %v1188_v49 = vadd.f32 %v1181_v39, %v1101_v0 }
 0x51d   : > { %v1347_v42 = vadd.f32 %v1340_v36, %v1267_v61 }
 0x51f   : > { %v1359_v1 = vadd.f32 %v4308_v32, %v1347_v42 }
 0x520   : > { %v1248_v2 = vpop.f32.mrf.mxu2  ;;  %v1328_v4 = vpop.f32.mrf.mxu3 }
 0x521   : > { %v1261_v6 = vmul.f32 %v4052_v14, %v1248_v2  ;;  %v1364_v3 = vpack.c.bf16 %v1359_v1, %v1358_v62  ;;  %v1090_v46 = vpop.f32.mrf.mxu0  ;;  %v1170_v7 = vpop.f32.mrf.mxu1  ;;  %v1341_v13 = vmul.f32 %v4055_v20, %v1328_v4  ;;  %v3359_v62 = vld [vmem:[%s4905_s5 + $0x40] sm:$0xff]  ;;  %v3360_v1 = vld [vmem:[%s4905_s5 + $0x48] sm:$0xff] }
 0x522   : > { %v1102_v10 = vmul.f32 %v4046_v8, %v1090_v46  ;;  %v1182_v11 = vmul.f32 %v4048_v9, %v1170_v7 }
 0x523   : > { %3366 = vmatmul.msk.bf16.gmra.mxu0 %vm749_vm3, %v1364_v3  ;;  %v1268_v12 = vadd.f32 %v1261_v6, %v1188_v49  ;;  %v3361_v6 = vld [vmem:[%s4905_s5 + $0x50] sm:$0xff] }
 0x524   : > { %v1189_v16 = vadd.f32 %v1182_v11, %v1102_v10  ;;  %v3362_v10 = vld [vmem:[%s4905_s5 + $0x58] sm:$0xff] }
 0x525   : > { %v1348_v18 = vadd.f32 %v1341_v13, %v1268_v12 }
 0x527   : > { %v1360_v31 = vadd.f32 %v4308_v32, %v1348_v18 }
 0x528   : > { %v1250_v17 = vpop.f32.mrf.mxu2  ;;  %v1330_v53 = vpop.f32.mrf.mxu3 }
 0x529   : > { %v1262_v21 = vmul.f32 %v4052_v14, %v1250_v17  ;;  %v1342_v22 = vmul.f32 %v4055_v20, %v1330_v53  ;;  %v1093_v24 = vpop.f32.mrf.mxu0  ;;  %v1173_v25 = vpop.f32.mrf.mxu1 }
 0x52a   : > { %v1103_v27 = vmul.f32 %v4046_v8, %v1093_v24  ;;  %v1183_v30 = vmul.f32 %v4048_v9, %v1173_v25 }
 0x52b   : > { %v1269_v26 = vadd.f32 %v1262_v21, %v1189_v16  ;;  %v3363_v16 = vld [vmem:[%s4905_s5 + $0x60] sm:$0xff]  ;;  %v3364_v21 = vld [vmem:[%s4905_s5 + $0x68] sm:$0x1] }
 0x52c   : > { %v1190_v38 = vadd.f32 %v1183_v30, %v1103_v27 }
 0x52d   : > { %v1349_v34 = vadd.f32 %v1342_v22, %v1269_v26 }
 0x52f   : > { %v1361_v35 = vadd.f32 %v4308_v32, %v1349_v34 }
 0x530   : > { %v1333_v23 = vpop.f32.mrf.mxu3  ;;  %v1253_v29 = vpop.f32.mrf.mxu2 }
 0x531   : > { %v1365_v40 = vpack.c.bf16 %v1361_v35, %v1360_v31  ;;  %v1263_v41 = vmul.f32 %v4052_v14, %v1253_v29  ;;  %v1095_v43 = vpop.f32.mrf.mxu0  ;;  %v1175_v44 = vpop.f32.mrf.mxu1  ;;  %v1343_v45 = vmul.f32 %v4055_v20, %v1333_v23 }
 0x533   : > { %3367 = vmatmul.msk.bf16.gmra.mxu0 %vm749_vm3, %v1365_v40  ;;  %v1270_v47 = vadd.f32 %v1263_v41, %v1190_v38 }
 0x535   : > { %v1350_v48 = vadd.f32 %v1343_v45, %v1270_v47 }
 0x537   : > { %v1362_v52 = vadd.f32 %v4308_v32, %v1350_v48  ;;  %v3358_v32 = vld [vmem:[%s4905_s5 + $0x38] sm:$0xff] }
 0x538   : > { %v1335_v50 = vpop.f32.mrf.mxu3  ;;  %v1255_v51 = vpop.f32.mrf.mxu2 }
 0x539   : > { %v1366_v54 = vpack.c.bf16 %v1362_v52, %v1362_v52 }
 0x540   : > { %v4341_v55 = vpop.f32.mrf.mxu3 }
 0x543   : > { %3368 = vmatmul.msk.bf16.gmra.mxu0 %vm749_vm3, %v1366_v54 }
 0x548   : > { %v4344_v19 = vpop.f32.mrf.mxu3 }
 0x550   : > { %v4346_v56 = vpop.f32.mrf.mxu3 }
 0x558   : > { %v4348_v57 = vpop.f32.mrf.mxu3 }
 0x560   : > { %v4350_v58 = vpop.f32.mrf.mxu3 }
 0x568   : > { %v4352_v59 = vpop.f32.mrf.mxu3 }
 0x570   : > { %v4354_v60 = vpop.f32.mrf.mxu3 }
 0x578   : > { %v1678_v36 = vpop.f32.mrf.mxu3 }
 0x590   : > { %v1420_v37 = vpop.f32.mrf.mxu0 }
 0x591   : > { %v1421_v33 = vadd.f32 %v3358_v32, %v1420_v37 }
 0x593   : > { %v1439_v61 = vsel %vm414_vm2, %v1421_v33, -inf }
 0x594   : > { %1440 = vmax.xlane.f32.xlu2 %v1439_v61 }
 0x598   : > { %v1422_v42 = vpop.f32.mrf.mxu0 }
 0x599   : > { %v1423_v0 = vadd.f32 %v3359_v62, %v1422_v42 }
 0x59b   : > { %v1442_v39 = vsel %vm414_vm2, %v1423_v0, -inf }
 0x59c   : > { %1443 = vmax.xlane.f32.xlu0 %v1442_v39 }
 0x5a0   : > { %v1425_v2 = vpop.f32.mrf.mxu0 }
 0x5a1   : > { %v1426_v4 = vadd.f32 %v3360_v1, %v1425_v2 }
 0x5a3   : > { %v1445_v49 = vsel %vm414_vm2, %v1426_v4, -inf }
 0x5a4   : > { %1446 = vmax.xlane.f32.xlu1 %v1445_v49 }
 0x5a8   : > { %v1427_v3 = vpop.f32.mrf.mxu0 }
 0x5a9   : > { %v1428_v46 = vadd.f32 %v3361_v6, %v1427_v3 }
 0x5ab   : > { %v1448_v7 = vsel %vm414_vm2, %v1428_v46, -inf }
 0x5ac   : > { %1449 = vmax.xlane.f32.xlu2 %v1448_v7 }
 0x5b0   : > { %v1430_v11 = vpop.f32.mrf.mxu0 }
 0x5b1   : > { %v1431_v12 = vadd.f32 %v3362_v10, %v1430_v11 }
 0x5b3   : > { %v1451_v13 = vsel %vm414_vm2, %v1431_v12, -inf }
 0x5b4   : > { %1452 = vmax.xlane.f32.xlu0 %v1451_v13 }
 0x5b8   : > { %v1432_v17 = vpop.f32.mrf.mxu0 }
 0x5b9   : > { %v1433_v53 = vadd.f32 %v3363_v16, %v1432_v17 }
 0x5bb   : > { %v1454_v18 = vsel %vm414_vm2, %v1433_v53, -inf }
 0x5bc   : > { %1455 = vmax.xlane.f32.xlu1 %v1454_v18 }
 0x5c0   : > { %v1435_v22 = vpop.f32.mrf.mxu0 }
 0x5c1   : > { %v1436_v24 = vadd.f32 %v3364_v21, %v1435_v22 }
 0x5c3   : > { %v1457_v25 = vsel %vm820_vm8, %v1436_v24, -inf }
 0x5c4   : > { %1520 = vrot.lane.b32.xlu2 %v4198_v15, %s3867_s30  ;;  %1458 = vmax.xlane.f32.xlu1 %v1457_v25 }
 0x5c8   : > { %v1437_v26 = vpop.f32.mrf.mxu0 }
 0x607   : > { %v1441_v27 = vpop.xlane.xlu2 %1440 }
 0x608   : > { %v1460_v30 = vsub.f32 %v1421_v33, %v1441_v27 }
 0x60a   : > { %v1467_v31 = vmul.f32 1.442695, %v1460_v30 }
 0x60c   : > { %3772 = vpow2.f32 %v1467_v31 }
 0x60f   : > { %v1444_v34 = vpop.xlane.xlu0 %1443 }
 0x610   : > { %v1461_v35 = vsub.f32 %v1423_v0, %v1444_v34 }
 0x612   : > { %v3773_v38 = vpop.eup %3772  ;;  %v1469_v23 = vmul.f32 1.442695, %v1461_v35 }
 0x613   : > { %v1481_v29 = vsel %vm414_vm2, %v3773_v38, 0.0 }
 0x614   : > { %3774 = vpow2.f32 %v1469_v23  ;;  %1482 = vadd.xlane.f32.xlu0 %v1481_v29 }
 0x617   : > { %v1447_v45 = vpop.xlane.xlu1 %1446 }
 0x618   : > { %v1462_v32 = vsub.f32 %v1426_v4, %v1447_v45 }
 0x61a   : > { %v3775_v40 = vpop.eup %3774  ;;  %v1471_v37 = vmul.f32 1.442695, %v1462_v32 }
 0x61b   : > { %v1484_v41 = vsel %vm414_vm2, %v3775_v40, 0.0 }
 0x61c   : > { %1485 = vadd.xlane.f32.xlu1 %v1484_v41 }
 0x61f   : > { %v1450_v43 = vpop.xlane.xlu2 %1449 }
 0x620   : > { %v1463_v15 = vsub.f32 %v1428_v46, %v1450_v43 }
 0x622   : > { %v1473_v44 = vmul.f32 1.442695, %v1463_v15  ;;  %v3692_v15 = vld [vmem:[%s4906_s6 + $0x8] sm:$0xff] }
 0x623   : > { %1613 = vmatpush.bf16.msrb.mxu2 %v3692_v15 }
 0x624   : > { %3776 = vpow2.f32 %v1473_v44  ;;  %v3693_v44 = vld [vmem:[%s4901_s1 + $0x10] sm:$0xff] }
 0x625   : > { %1732 = vmatpush.bf16.msra.mxu0 %v3693_v44 }
 0x627   : > { %v1453_v61 = vpop.xlane.xlu0 %1452  ;;  %v1521_v13 = vpop.permute.xlu2 %1520 }
 0x628   : > { %1524 = vrot.lane.b32.xlu0 %v4192_v5, %s3867_s30  ;;  %v1464_v42 = vsub.f32 %v1431_v12, %v1453_v61  ;;  %v3394_v61 = vld [vmem:[%s3930_s12 + $0x88] sm:$0xff] }
 0x62a   : > { %v3777_v47 = vpop.eup %3776  ;;  %v1475_v39 = vmul.f32 1.442695, %v1464_v42 }
 0x62b   : > { %v1490_v48 = vsel %vm414_vm2, %v3777_v47, 0.0 }
 0x62c   : > { %1491 = vadd.xlane.f32.xlu2 %v1490_v48  ;;  %v3392_v48 = vld [vmem:[%s3930_s12 + $0x78] sm:$0xff] }
 0x62f   : > { %v1456_v50 = vpop.xlane.xlu1 %1455 }
 0x630   : > { %v1465_v51 = vsub.f32 %v1433_v53, %v1456_v50 }
 0x632   : > { %v1477_v52 = vmul.f32 1.442695, %v1465_v51 }
 0x634   : > { %3778 = vpow2.f32 %v1477_v52 }
 0x635   : > { %1522 = vrot.lane.b32.xlu1 %v4188_v63, %s3867_s30  ;;  %3780 = vpow2.f32 %v1471_v37 }
 0x637   : > { %v1459_v33 = vpop.xlane.xlu1 %1458 }
 0x638   : > { %v1466_v5 = vsub.f32 %v1436_v24, %v1459_v33 }
 0x63a   : > { %v3779_v54 = vpop.eup %3778  ;;  %v1479_v62 = vmul.f32 1.442695, %v1466_v5  ;;  %v3393_v5 = vld [vmem:[%s3930_s12 + $0x80] sm:$0xff] }
 0x63b   : > { %v1496_v36 = vsel %vm414_vm2, %v3779_v54, 0.0  ;;  %v3781_v0 = vpop.eup %3780 }
 0x63c   : > { %1497 = vadd.xlane.f32.xlu2 %v1496_v36  ;;  %3782 = vpow2.f32 %v1479_v62  ;;  %v1487_v1 = vsel %vm414_vm2, %v3781_v0, 0.0 }
 0x63d   : > { %3784 = vpow2.f32 %v1475_v39 }
 0x642   : > { %v3783_v63 = vpop.eup %3782 }
 0x643   : > { %v1499_v2 = vsel %vm820_vm8, %v3783_v63, 0.0  ;;  %v3785_v49 = vpop.eup %3784 }
 0x644   : > { %v1493_v4 = vsel %vm414_vm2, %v3785_v49, 0.0 }
 0x652   : > { %1488 = vadd.xlane.f32.xlu0 %v1487_v1 }
 0x65a   : > { %1500 = vadd.xlane.f32.xlu0 %v1499_v2 }
 0x65f   : > { %1494 = vadd.xlane.f32.xlu1 %v1493_v4  ;;  %v3395_v4 = vld [vmem:[%s3930_s12 + $0x90] sm:$0xff] }
 0x687   : > { %v1483_v6 = vpop.xlane.xlu0 %1482 }
 0x68f   : > { %v1486_v46 = vpop.xlane.xlu1 %1485 }
 0x690   : > { %3786 = vrcp.f32 %v1486_v46 }
 0x691   : > { %3788 = vrcp.f32 %v1483_v6  ;;  %v3396_v6 = vld [vmem:[%s3930_s12 + $0x98] sm:$0xff] }
 0x696   : > { %v3787_v7 = vpop.eup %3786 }
 0x697   : > { %v3789_v11 = vpop.eup %3788  ;;  %v1510_v12 = vmul.f32 %v3787_v7, %v3775_v40 }
 0x698   : > { %v1509_v16 = vmul.f32 %v3789_v11, %v3773_v38 }
 0x69a   : > { %v1525_v3 = vpop.permute.xlu0 %1524  ;;  %v1516_v17 = vpack.c.bf16 %v1510_v12, %v1509_v16 }
 0x69b   : > { %1551 = vmatpush.bf16.msrb.mxu1 %v1525_v3 }
 0x69f   : > { %v1492_v53 = vpop.xlane.xlu2 %1491 }
 0x6a0   : > { %3790 = vrcp.f32 %v1492_v53 }
 0x6a6   : > { %v3791_v21 = vpop.eup %3790 }
 0x6a7   : > { %v1523_v10 = vpop.permute.xlu1 %1522  ;;  %v1512_v24 = vmul.f32 %v3791_v21, %v3777_v47  ;;  %v3391_v47 = vld [vmem:[%s3930_s12 + $0x70] sm:$0xff] }
 0x6a8   : > { %1552 = vmatpush.bf16.msrb.mxu1 %v1523_v10 }
 0x6ac   : > { %1553 = vmatpush.bf16.msrb.mxu1 %v1521_v13 }
 0x6af   : > { %3369 = vmatmul.msk.bf16.vlgmr.msrb.gmra.mxu1 %vm414_vm2, %v1516_v17  ;;  %v1498_v27 = vpop.xlane.xlu2 %1497  ;;  %v3397_v17 = vld [vmem:[%s3930_s12 + $0xa0] sm:$0x1] }
 0x6c5   : > { %v1489_v18 = vpop.xlane.xlu0 %1488 }
 0x6c6   : > { %3792 = vrcp.f32 %v1489_v18 }
 0x6cc   : > { %v3793_v22 = vpop.eup %3792 }
 0x6cd   : > { %v1511_v25 = vmul.f32 %v3793_v22, %v3781_v0  ;;  %v1501_v23 = vpop.xlane.xlu0 %1500 }
 0x6cf   : > { %v1517_v26 = vpack.c.bf16 %v1512_v24, %v1511_v25 }
 0x6d1   : > { %3370 = vmatmul.msk.bf16.gmra.mxu1 %vm414_vm2, %v1517_v26 }
 0x6d2   : > { %v1495_v30 = vpop.xlane.xlu1 %1494 }
 0x6d3   : > { %3794 = vrcp.f32 %v1495_v30 }
 0x6d4   : > { %3796 = vrcp.f32 %v1498_v27 }
 0x6d5   : > { %3798 = vrcp.f32 %v1501_v23 }
 0x6d9   : > { %v3795_v31 = vpop.eup %3794 }
 0x6da   : > { %v3797_v34 = vpop.eup %3796  ;;  %v1513_v35 = vmul.f32 %v3795_v31, %v3785_v49 }
 0x6db   : > { %v1514_v38 = vmul.f32 %v3797_v34, %v3779_v54  ;;  %v3799_v40 = vpop.eup %3798 }
 0x6dc   : > { %v1515_v41 = vmul.f32 %v3799_v40, %v3783_v63 }
 0x6dd   : > { %v1518_v29 = vpack.c.bf16 %v1514_v38, %v1513_v35  ;;  %v3739_v35 = vld [vmem:[%s4902_s2 + $0x2] ss:$0 sm:$0xff] }
 0x6de   : > { %v1519_v43 = vpack.c.bf16 %v1515_v41, %v1515_v41 }
 0x6e1   : > { %3371 = vmatmul.msk.bf16.gmra.mxu1 %vm414_vm2, %v1518_v29 }
 0x6f1   : > { %3372 = vmatmul.msk.bf16.gmra.mxu1 %vm414_vm2, %v1519_v43 }
 0x72c   : > { %v1555_v45 = vpop.f32.mrf.mxu1 }
 0x72d   : > { %v1574_v51 = vmax.f32 %v1555_v45, 0.0  ;;  %v1688_v52 = vadd.f32 %v3391_v47, %v1555_v45 }
 0x734   : > { %v1557_v50 = vpop.f32.mrf.mxu1 }
 0x735   : > { %v1575_v54 = vmax.f32 %v1557_v50, 0.0  ;;  %v1689_v36 = vadd.f32 %v3392_v48, %v1557_v50 }
 0x737   : > { %v1581_v32 = vpack.c.bf16 %v1575_v54, %v1574_v51  ;;  %v1695_v37 = vpack.c.bf16 %v1689_v36, %v1688_v52 }
 0x739   : > { %3379 = vmatmul.msk.bf16.vlgmr.msrb.gmra.mxu2 %vm344_vm0, %v1581_v32  ;;  %3405 = vmatmul.msk.bf16.vlgmr.msra.gmra.mxu0 %vm344_vm0, %v1695_v37 }
 0x74e   : > { %v1560_v33 = vpop.f32.mrf.mxu1 }
 0x74f   : > { %v1576_v42 = vmax.f32 %v1560_v33, 0.0  ;;  %v1690_v0 = vadd.f32 %v3393_v5, %v1560_v33 }
 0x756   : > { %v1562_v62 = vpop.f32.mrf.mxu1 }
 0x757   : > { %v1577_v39 = vmax.f32 %v1562_v62, 0.0  ;;  %v1691_v1 = vadd.f32 %v3394_v61, %v1562_v62 }
 0x759   : > { %v1582_v63 = vpack.c.bf16 %v1577_v39, %v1576_v42  ;;  %v1696_v2 = vpack.c.bf16 %v1691_v1, %v1690_v0  ;;  %v3694_v42 = vld [vmem:[%s4903_s3 + $0xe0] sm:$0xff]  ;;  %v3700_v39 = vld [vmem:[%s4903_s3 + $0x118] sm:$0xff] }
 0x75a   : > { %v3697_v0 = vld [vmem:[%s4903_s3 + $0xfc] sm:$0xff]  ;;  %v3703_v1 = vld [vmem:[%s4903_s3 + $0x134] sm:$0xff] }
 0x75b   : > { %3380 = vmatmul.msk.bf16.gmra.mxu2 %vm344_vm0, %v1582_v63  ;;  %3406 = vmatmul.msk.bf16.gmra.mxu0 %vm344_vm0, %v1696_v2  ;;  %v3698_v63 = vld [vmem:[%s4903_s3 + $0x104] sm:$0xff] }
 0x75c   : > { %v3695_v2 = vld [vmem:[%s4903_s3 + $0xe8] sm:$0xff] }
 0x75e   : > { %v1565_v49 = vpop.f32.mrf.mxu1 }
 0x75f   : > { %v1578_v46 = vmax.f32 %v1565_v49, 0.0  ;;  %v1692_v7 = vadd.f32 %v3395_v4, %v1565_v49  ;;  %v3701_v49 = vld [vmem:[%s4903_s3 + $0x120] sm:$0xff] }
 0x760   : > { %v3704_v4 = vld [vmem:[%s4903_s3 + $0x13c] sm:$0xff] }
 0x766   : > { %v1567_v3 = vpop.f32.mrf.mxu1 }
 0x767   : > { %v1579_v10 = vmax.f32 %v1567_v3, 0.0  ;;  %v1693_v11 = vadd.f32 %v3396_v6, %v1567_v3  ;;  %v3699_v6 = vld [vmem:[%s4903_s3 + $0x10c] sm:$0xff] }
 0x768   : > { %v3696_v3 = vld [vmem:[%s4903_s3 + $0xf0] sm:$0xff] }
 0x769   : > { %v1583_v12 = vpack.c.bf16 %v1579_v10, %v1578_v46  ;;  %v1697_v13 = vpack.c.bf16 %v1693_v11, %v1692_v7  ;;  %v3702_v46 = vld [vmem:[%s4903_s3 + $0x128] sm:$0xff]  ;;  %v3438_v10 = vld [vmem:[%s4903_s3 + $0x114] sm:$0x1]  ;;  %v3415_v11 = vld [vmem:[%s4903_s3 + $0xf8] sm:$0x1] }
 0x76a   : > { %v3705_v7 = vld [vmem:[%s4903_s3 + $0x144] sm:$0xff] }
 0x76b   : > { %3381 = vmatmul.msk.bf16.gmra.mxu2 %vm344_vm0, %v1583_v12  ;;  %3407 = vmatmul.msk.bf16.gmra.mxu0 %vm344_vm0, %v1697_v13  ;;  %v3461_v12 = vld [vmem:[%s4903_s3 + $0x130] sm:$0x1]  ;;  %v3484_v13 = vld [vmem:[%s4903_s3 + $0x14c] sm:$0x1] }
 0x76e   : > { %v1570_v16 = vpop.f32.mrf.mxu1 }
 0x76f   : > { %v1580_v53 = vmax.f32 %v1570_v16, 0.0  ;;  %v1694_v18 = vadd.f32 %v3397_v17, %v1570_v16  ;;  %v1861_v16 = vunpack.c.l.b16 %v3438_v10  ;;  %v1778_v17 = vunpack.c.l.b16 %v3415_v11  ;;  %v4545_v11 = vld [vmem:[%s4904_s4 + $0x2] ss:$0 sm:$0xff] }
 0x771   : > { %v1584_v22 = vpack.c.bf16 %v1580_v53, %v1580_v53  ;;  %v1698_v24 = vpack.c.bf16 %v1694_v18, %v1694_v18  ;;  %v1941_v53 = vunpack.c.l.b16 %v3461_v12  ;;  %v2021_v18 = vunpack.c.l.b16 %v3484_v13 }
 0x776   : > { %v1572_v21 = vpop.f32.mrf.mxu1 }
 0x777   : > { %v1865_v21 = vpack.c.b16 %v1861_v16, %v1861_v16 }
 0x77b   : > { %3382 = vmatmul.msk.bf16.gmra.mxu2 %vm344_vm0, %v1584_v22  ;;  %3408 = vmatmul.msk.bf16.gmra.mxu0 %vm344_vm0, %v1698_v24  ;;  %v1782_v22 = vpack.c.b16 %v1778_v17, %v1778_v17  ;;  %v1945_v24 = vpack.c.b16 %v1941_v53, %v1941_v53 }
 0x7b6   : > { %v1734_v25 = vpop.f32.mrf.mxu0 }
 0x7b7   : > { %v1735_v54 = vadd.f32 %v3739_v35, %v1734_v25  ;;  %v2025_v25 = vpack.c.b16 %v2021_v18, %v2021_v18 }
 0x7bc   : > { %v4422_v26 = vpop.f32.mrf.mxu2 }
 0x7be   : > { %v1736_v27 = vpop.f32.mrf.mxu0 }
 0x7bf   : > { %v1737_v51 = vadd.f32 %v3739_v35, %v1736_v27 }
 0x7c1   : > { %v4445_v32 = vpack.c.bf16 %v1737_v51, %v1735_v54 }
 0x7c4   : > { %v4424_v30 = vpop.f32.mrf.mxu2 }
 0x7d8   : > { %v1739_v31 = vpop.f32.mrf.mxu0 }
 0x7d9   : > { %v1740_v23 = vadd.f32 %v3739_v35, %v1739_v31 }
 0x7de   : > { %v4426_v34 = vpop.f32.mrf.mxu2 }
 0x7e0   : > { %v1741_v38 = vpop.f32.mrf.mxu0 }
 0x7e1   : > { %v1742_v29 = vadd.f32 %v3739_v35, %v1741_v38 }
 0x7e3   : > { %v4431_v40 = vpack.c.bf16 %v1742_v29, %v1740_v23 }
 0x7e5   : > { %2110 = vrot.lane.b32.xlu1 %v4431_v40, %s3864_s15 }
 0x7e6   : > { %v4435_v41 = vpop.f32.mrf.mxu2 }
 0x7e8   : > { %v1744_v43 = vpop.f32.mrf.mxu0 }
 0x7e9   : > { %v1745_v45 = vadd.f32 %v3739_v35, %v1744_v43 }
 0x7ee   : > { %v4437_v15 = vpop.f32.mrf.mxu2 }
 0x7f0   : > { %v1746_v44 = vpop.f32.mrf.mxu0 }
 0x7f1   : > { %v1747_v47 = vadd.f32 %v3739_v35, %v1746_v44 }
 0x7f3   : > { %v4439_v48 = vpack.c.bf16 %v1747_v47, %v1745_v45 }
 0x7f5   : > { %2112 = vrot.lane.b32.xlu0 %v4439_v48, %s3864_s15 }
 0x7f6   : > { %v4443_v50 = vpop.f32.mrf.mxu2 }
 0x7f8   : > { %v1749_v52 = vpop.f32.mrf.mxu0 }
 0x7f9   : > { %v1750_v36 = vadd.f32 %v3739_v35, %v1749_v52 }
 0x7fb   : > { %v1756_v37 = vpack.c.bf16 %v1750_v36, %v1750_v36 }
 0x7fd   : > { %v1796_v33 = vand.u32 %v1756_v37, %v3954_v28  ;;  %2108 = vrot.lane.b32.xlu0 %v4445_v32, %s3864_s15  ;;  %2255 = vrot.lane.b32.xlu1 %v1756_v37, %s3867_s30 }
 0x7fe   : > { %2114 = vrot.lane.b32.xlu2 %v1756_v37, %s3864_s15  ;;  %v4452_v5 = vpop.f32.mrf.mxu2 }
 0x7ff   : > { %1802 = vmatpush.bf16.msra.mxu1 %v1796_v33  ;;  %1882 = vmatpush.bf16.msra.mxu2 %v1796_v33 }
 0x800   : > { %1962 = vmatpush.bf16.msra.mxu3 %v1796_v33  ;;  %2042 = vmatpush.bf16.msrb.mxu0 %v1796_v33  ;;  %v1751_v61 = vpop.f32.mrf.mxu0 }
 0x803   : > { %1803 = vmatpush.bf16.msra.mxu1 %v4439_v48  ;;  %1883 = vmatpush.bf16.msra.mxu2 %v4439_v48 }
 0x804   : > { %1963 = vmatpush.bf16.msra.mxu3 %v4439_v48  ;;  %2043 = vmatpush.bf16.msrb.mxu0 %v4439_v48 }
 0x806   : > { %v1632_v62 = vpop.f32.mrf.mxu2 }
 0x807   : > { %1804 = vmatpush.bf16.msra.mxu1 %v4431_v40  ;;  %1884 = vmatpush.bf16.msra.mxu2 %v4431_v40 }
 0x808   : > { %1964 = vmatpush.bf16.msra.mxu3 %v4431_v40  ;;  %2044 = vmatpush.bf16.msrb.mxu0 %v4431_v40 }
 0x80b   : > { %1805 = vmatpush.bf16.msra.mxu1 %v4445_v32  ;;  %1885 = vmatpush.bf16.msra.mxu2 %v4445_v32 }
 0x80c   : > { %1965 = vmatpush.bf16.msra.mxu3 %v4445_v32  ;;  %2045 = vmatpush.bf16.msrb.mxu0 %v4445_v32 }
 0x80e   : > { %3428 = vmatmul.msk.bf16.vlgmr.msra.gmra.mxu1 %vm414_vm2, %v3694_v42  ;;  %3451 = vmatmul.msk.bf16.vlgmr.msra.gmra.mxu2 %vm414_vm2, %v3697_v0 }
 0x80f   : > { %3474 = vmatmul.msk.bf16.vlgmr.msra.gmra.mxu3 %vm414_vm2, %v3700_v39  ;;  %3497 = vmatmul.msk.bf16.vlgmr.msrb.gmra.mxu0 %vm414_vm2, %v3703_v1 }
 0x81e   : > { %3452 = vmatmul.msk.bf16.gmra.mxu2 %vm414_vm2, %v3698_v63  ;;  %3429 = vmatmul.msk.bf16.gmra.mxu1 %vm414_vm2, %v3695_v2 }
 0x81f   : > { %3475 = vmatmul.msk.bf16.gmra.mxu3 %vm414_vm2, %v3701_v49  ;;  %3498 = vmatmul.msk.bf16.gmra.mxu0 %vm414_vm2, %v3704_v4 }
 0x82e   : > { %3453 = vmatmul.msk.bf16.gmra.mxu2 %vm414_vm2, %v3699_v6  ;;  %3430 = vmatmul.msk.bf16.gmra.mxu1 %vm414_vm2, %v3696_v3 }
 0x82f   : > { %3476 = vmatmul.msk.bf16.gmra.mxu3 %vm414_vm2, %v3702_v46  ;;  %3499 = vmatmul.msk.bf16.gmra.mxu0 %vm414_vm2, %v3705_v7 }
 0x83e   : > { %3454 = vmatmul.msk.bf16.gmra.mxu2 %vm414_vm2, %v1865_v21  ;;  %3431 = vmatmul.msk.bf16.gmra.mxu1 %vm414_vm2, %v1782_v22 }
 0x83f   : > { %3477 = vmatmul.msk.bf16.gmra.mxu3 %vm414_vm2, %v1945_v24  ;;  %3500 = vmatmul.msk.bf16.gmra.mxu0 %vm414_vm2, %v2025_v25 }
 0x857   : > { %v2111_v35 = vpop.permute.xlu1 %2110 }
 0x858   : > { %v2115_v27 = vpop.permute.xlu2 %2114  ;;  %v2132_v43 = vsel %vm749_vm3, %v2111_v35, 0 }
 0x859   : > { %v2138_v31 = vsel %vm749_vm3, %v2115_v27, 0 }
 0x85a   : > { %2144 = vmatpush.bf16.xpose.msrb.mxu1 %v2138_v31 }
 0x867   : > { %v2113_v38 = vpop.permute.xlu0 %2112 }
 0x868   : > { %v2135_v23 = vsel %vm749_vm3, %v2113_v38, 0 }
 0x869   : > { %2145 = vmatpush.bf16.xpose.msrb.mxu1 %v2135_v23 }
 0x86f   : > { %v2256_v29 = vpop.permute.xlu1 %2255  ;;  %v2109_v45 = vpop.permute.xlu0 %2108 }
 0x870   : > { %v2273_v44 = vand.u32 %v2256_v29, %v3954_v28  ;;  %v2129_v47 = vsel %vm749_vm3, %v2109_v45, 0 }
 0x871   : > { %2146 = vmatpush.bf16.xpose.msrb.mxu1 %v2132_v43 }
 0x872   : > { %2279 = vmatpush.bf16.msrb.mxu2 %v2273_v44 }
 0x879   : > { %2147 = vmatpush.bf16.xpose.msrb.mxu1 %v2129_v47 }
 0x88b   : > { %v1807_v51 = vpop.f32.mrf.mxu1 }
 0x88c   : > { %v2047_v52 = vpop.f32.mrf.mxu0  ;;  %v1826_v36 = vmul.f32 %v4046_v8, %v1807_v51 }
 0x88d   : > { %v2066_v1 = vmul.f32 %v4055_v20, %v2047_v52 }
 0x891   : > { %v1887_v54 = vpop.f32.mrf.mxu2 }
 0x892   : > { %v1906_v37 = vmul.f32 %v4048_v9, %v1887_v54  ;;  %v1967_v33 = vpop.f32.mrf.mxu3 }
 0x893   : > { %v1809_v61 = vpop.f32.mrf.mxu1  ;;  %v1986_v0 = vmul.f32 %v4052_v14, %v1967_v33 }
 0x894   : > { %v2049_v62 = vpop.f32.mrf.mxu0  ;;  %v1913_v42 = vadd.f32 %v1906_v37, %v1826_v36  ;;  %v1827_v2 = vmul.f32 %v4046_v8, %v1809_v61 }
 0x895   : > { %v2067_v12 = vmul.f32 %v4055_v20, %v2049_v62 }
 0x896   : > { %v1993_v63 = vadd.f32 %v1986_v0, %v1913_v42 }
 0x898   : > { %v2073_v10 = vadd.f32 %v2066_v1, %v1993_v63 }
 0x899   : > { %v1889_v39 = vpop.f32.mrf.mxu2 }
 0x89a   : > { %v1907_v49 = vmul.f32 %v4048_v9, %v1889_v39  ;;  %v1969_v4 = vpop.f32.mrf.mxu3  ;;  %v2085_v18 = vadd.f32 %v4545_v11, %v2073_v10 }
 0x89b   : > { %v1812_v6 = vpop.f32.mrf.mxu1  ;;  %v1987_v46 = vmul.f32 %v4052_v14, %v1969_v4 }
 0x89c   : > { %v1914_v3 = vadd.f32 %v1907_v49, %v1827_v2  ;;  %v2052_v7 = vpop.f32.mrf.mxu0  ;;  %v1828_v17 = vmul.f32 %v4046_v8, %v1812_v6 }
 0x89d   : > { %v2068_v29 = vmul.f32 %v4055_v20, %v2052_v7 }
 0x89e   : > { %v1994_v13 = vadd.f32 %v1987_v46, %v1914_v3 }
 0x8a0   : > { %v2074_v16 = vadd.f32 %v2067_v12, %v1994_v13 }
 0x8a1   : > { %v1892_v53 = vpop.f32.mrf.mxu2 }
 0x8a2   : > { %v2086_v21 = vadd.f32 %v4545_v11, %v2074_v16  ;;  %v1908_v22 = vmul.f32 %v4048_v9, %v1892_v53  ;;  %v1972_v24 = vpop.f32.mrf.mxu3 }
 0x8a3   : > { %v1814_v25 = vpop.f32.mrf.mxu1  ;;  %v1988_v35 = vmul.f32 %v4052_v14, %v1972_v24 }
 0x8a4   : > { %v2092_v27 = vpack.c.bf16 %v2086_v21, %v2085_v18  ;;  %v1915_v31 = vadd.f32 %v1908_v22, %v1828_v17  ;;  %v2054_v38 = vpop.f32.mrf.mxu0  ;;  %v1829_v43 = vmul.f32 %v4046_v8, %v1814_v25 }
 0x8a5   : > { %v2069_v37 = vmul.f32 %v4055_v20, %v2054_v38 }
 0x8a6   : > { %3509 = vmatmul.msk.bf16.vlgmr.msrb.gmra.mxu1 %vm749_vm3, %v2092_v27  ;;  %v1995_v23 = vadd.f32 %v1988_v35, %v1915_v31 }
 0x8a8   : > { %v2075_v54 = vadd.f32 %v2068_v29, %v1995_v23 }
 0x8a9   : > { %v1894_v44 = vpop.f32.mrf.mxu2 }
 0x8aa   : > { %v1909_v45 = vmul.f32 %v4048_v9, %v1894_v44  ;;  %v1974_v47 = vpop.f32.mrf.mxu3  ;;  %v2087_v62 = vadd.f32 %v4545_v11, %v2075_v54 }
 0x8ab   : > { %v1989_v51 = vmul.f32 %v4052_v14, %v1974_v47  ;;  %v1817_v52 = vpop.f32.mrf.mxu1 }
 0x8ac   : > { %v1916_v36 = vadd.f32 %v1909_v45, %v1829_v43  ;;  %v2057_v33 = vpop.f32.mrf.mxu0  ;;  %v1830_v0 = vmul.f32 %v4046_v8, %v1817_v52 }
 0x8ad   : > { %v2070_v10 = vmul.f32 %v4055_v20, %v2057_v33 }
 0x8ae   : > { %v1996_v61 = vadd.f32 %v1989_v51, %v1916_v36 }
 0x8b0   : > { %v2076_v42 = vadd.f32 %v2069_v37, %v1996_v61 }
 0x8b1   : > { %v1897_v39 = vpop.f32.mrf.mxu2 }
 0x8b2   : > { %v2088_v1 = vadd.f32 %v4545_v11, %v2076_v42  ;;  %v1910_v63 = vmul.f32 %v4048_v9, %v1897_v39  ;;  %v1977_v2 = vpop.f32.mrf.mxu3  ;;  %v3502_v39 = vld [vmem:[%s4905_s5 + $0x70] sm:$0xff] }
 0x8b3   : > { %v1819_v49 = vpop.f32.mrf.mxu1  ;;  %v1990_v3 = vmul.f32 %v4052_v14, %v1977_v2 }
 0x8b4   : > { %v2093_v4 = vpack.c.bf16 %v2088_v1, %v2087_v62  ;;  %v1917_v6 = vadd.f32 %v1910_v63, %v1830_v0  ;;  %v2059_v46 = vpop.f32.mrf.mxu0  ;;  %v1831_v12 = vmul.f32 %v4046_v8, %v1819_v49  ;;  %v3503_v49 = vld [vmem:[%s4905_s5 + $0x78] sm:$0xff] }
 0x8b5   : > { %v2071_v24 = vmul.f32 %v4055_v20, %v2059_v46 }
 0x8b6   : > { %3510 = vmatmul.msk.bf16.gmra.mxu1 %vm749_vm3, %v2093_v4  ;;  %v1997_v7 = vadd.f32 %v1990_v3, %v1917_v6  ;;  %v3504_v3 = vld [vmem:[%s4905_s5 + $0x80] sm:$0xff] }
 0x8b8   : > { %v2077_v21 = vadd.f32 %v2070_v10, %v1997_v7 }
 0x8b9   : > { %v1899_v13 = vpop.f32.mrf.mxu2 }
 0x8ba   : > { %v1911_v16 = vmul.f32 %v4048_v9, %v1899_v13  ;;  %v1979_v17 = vpop.f32.mrf.mxu3  ;;  %v2089_v31 = vadd.f32 %v4545_v11, %v2077_v21 }
 0x8bb   : > { %v1991_v53 = vmul.f32 %v4052_v14, %v1979_v17  ;;  %v1822_v18 = vpop.f32.mrf.mxu1 }
 0x8bc   : > { %v1918_v22 = vadd.f32 %v1911_v16, %v1831_v12  ;;  %v2062_v25 = vpop.f32.mrf.mxu0  ;;  %v1832_v38 = vmul.f32 %v4046_v8, %v1822_v18  ;;  %v3505_v12 = vld [vmem:[%s4905_s5 + $0x88] sm:$0xff] }
 0x8bd   : > { %v2072_v37 = vmul.f32 %v4055_v20, %v2062_v25 }
 0x8be   : > { %v1998_v27 = vadd.f32 %v1991_v53, %v1918_v22  ;;  %v3506_v53 = vld [vmem:[%s4905_s5 + $0x90] sm:$0xff] }
 0x8c0   : > { %v2078_v35 = vadd.f32 %v2071_v24, %v1998_v27  ;;  %v3507_v24 = vld [vmem:[%s4905_s5 + $0x98] sm:$0xff] }
 0x8c1   : > { %v1902_v23 = vpop.f32.mrf.mxu2 }
 0x8c2   : > { %v2090_v29 = vadd.f32 %v4545_v11, %v2078_v35  ;;  %v1912_v43 = vmul.f32 %v4048_v9, %v1902_v23  ;;  %v1982_v44 = vpop.f32.mrf.mxu3  ;;  %v3508_v35 = vld [vmem:[%s4905_s5 + $0xa0] sm:$0x1] }
 0x8c3   : > { %v1992_v45 = vmul.f32 %v4052_v14, %v1982_v44  ;;  %v1824_v47 = vpop.f32.mrf.mxu1 }
 0x8c4   : > { %v2094_v51 = vpack.c.bf16 %v2090_v29, %v2089_v31  ;;  %v1919_v52 = vadd.f32 %v1912_v43, %v1832_v38  ;;  %v2064_v54 = vpop.f32.mrf.mxu0 }
 0x8c6   : > { %3511 = vmatmul.msk.bf16.gmra.mxu1 %vm749_vm3, %v2094_v51  ;;  %v1999_v36 = vadd.f32 %v1992_v45, %v1919_v52 }
 0x8c8   : > { %v2079_v61 = vadd.f32 %v2072_v37, %v1999_v36 }
 0x8c9   : > { %v1904_v33 = vpop.f32.mrf.mxu2 }
 0x8ca   : > { %v1984_v62 = vpop.f32.mrf.mxu3  ;;  %v2091_v42 = vadd.f32 %v4545_v11, %v2079_v61 }
 0x8cc   : > { %v2095_v0 = vpack.c.bf16 %v2091_v42, %v2091_v42 }
 0x8d6   : > { %3512 = vmatmul.msk.bf16.gmra.mxu1 %vm749_vm3, %v2095_v0 }
 0x923   : > { %v2149_v1 = vpop.f32.mrf.mxu1 }
 0x924   : > { %v2150_v63 = vadd.f32 %v3502_v39, %v2149_v1 }
 0x926   : > { %v2168_v2 = vsel %vm414_vm2, %v2150_v63, -inf }
 0x927   : > { %2169 = vmax.xlane.f32.xlu2 %v2168_v2 }
 0x92b   : > { %v2151_v4 = vpop.f32.mrf.mxu1 }
 0x92c   : > { %v2152_v6 = vadd.f32 %v3503_v49, %v2151_v4 }
 0x92e   : > { %v2171_v11 = vsel %vm414_vm2, %v2152_v6, -inf }
 0x92f   : > { %2172 = vmax.xlane.f32.xlu0 %v2171_v11 }
 0x933   : > { %v2154_v46 = vpop.f32.mrf.mxu1 }
 0x934   : > { %v2155_v7 = vadd.f32 %v3504_v3, %v2154_v46 }
 0x936   : > { %v2174_v10 = vsel %vm414_vm2, %v2155_v7, -inf }
 0x937   : > { %2175 = vmax.xlane.f32.xlu1 %v2174_v10 }
 0x93b   : > { %v2156_v13 = vpop.f32.mrf.mxu1 }
 0x93c   : > { %v2157_v16 = vadd.f32 %v3505_v12, %v2156_v13 }
 0x93e   : > { %v2177_v17 = vsel %vm414_vm2, %v2157_v16, -inf }
 0x93f   : > { %2178 = vmax.xlane.f32.xlu2 %v2177_v17 }
 0x943   : > { %v2159_v18 = vpop.f32.mrf.mxu1 }
 0x944   : > { %v2160_v21 = vadd.f32 %v3506_v53, %v2159_v18 }
 0x946   : > { %v2180_v22 = vsel %vm414_vm2, %v2160_v21, -inf }
 0x947   : > { %2181 = vmax.xlane.f32.xlu0 %v2180_v22 }
 0x94b   : > { %v2161_v25 = vpop.f32.mrf.mxu1 }
 0x94c   : > { %v2162_v27 = vadd.f32 %v3507_v24, %v2161_v25 }
 0x94e   : > { %v2183_v31 = vsel %vm414_vm2, %v2162_v27, -inf }
 0x94f   : > { %2184 = vmax.xlane.f32.xlu2 %v2183_v31 }
 0x950   : > { %2249 = vrot.lane.b32.xlu1 %v4445_v32, %s3867_s30 }
 0x953   : > { %v2164_v38 = vpop.f32.mrf.mxu1 }
 0x954   : > { %v2165_v23 = vadd.f32 %v3508_v35, %v2164_v38 }
 0x956   : > { %v2186_v29 = vsel %vm820_vm8, %v2165_v23, -inf }
 0x957   : > { %2187 = vmax.xlane.f32.xlu2 %v2186_v29 }
 0x95b   : > { %v2166_v43 = vpop.f32.mrf.mxu1 }
 0x99a   : > { %v2170_v44 = vpop.xlane.xlu2 %2169 }
 0x99b   : > { %v2189_v45 = vsub.f32 %v2150_v63, %v2170_v44 }
 0x99d   : > { %v2196_v47 = vmul.f32 1.442695, %v2189_v45 }
 0x99f   : > { %3800 = vpow2.f32 %v2196_v47 }
 0x9a2   : > { %v2173_v51 = vpop.xlane.xlu0 %2172 }
 0x9a3   : > { %v2190_v52 = vsub.f32 %v2152_v6, %v2173_v51 }
 0x9a5   : > { %v3801_v54 = vpop.eup %3800  ;;  %v2198_v36 = vmul.f32 1.442695, %v2190_v52 }
 0x9a6   : > { %v2210_v32 = vsel %vm414_vm2, %v3801_v54, 0.0 }
 0x9a7   : > { %3802 = vpow2.f32 %v2198_v36  ;;  %2211 = vadd.xlane.f32.xlu0 %v2210_v32 }
 0x9aa   : > { %v2176_v4 = vpop.xlane.xlu1 %2175 }
 0x9ab   : > { %v2191_v6 = vsub.f32 %v2155_v7, %v2176_v4  ;;  %v3707_v4 = vld [vmem:[%s4901_s1 + $0x18] sm:$0xff] }
 0x9ac   : > { %2422 = vmatpush.bf16.msra.mxu0 %v3707_v4  ;;  %v1667_v4 = vadd.f32 %v4346_v56, %v4426_v34  ;;  %v1672_v56 = vadd.f32 %v4350_v58, %v4437_v15 }
 0x9ad   : > { %v3803_v37 = vpop.eup %3802  ;;  %v2200_v46 = vmul.f32 1.442695, %v2191_v6 }
 0x9ae   : > { %v2213_v33 = vsel %vm414_vm2, %v3803_v37, 0.0 }
 0x9af   : > { %2214 = vadd.xlane.f32.xlu2 %v2213_v33 }
 0x9b2   : > { %v2179_v61 = vpop.xlane.xlu2 %2178 }
 0x9b3   : > { %v2192_v62 = vsub.f32 %v2157_v16, %v2179_v61 }
 0x9b5   : > { %v2202_v42 = vmul.f32 1.442695, %v2192_v62 }
 0x9b7   : > { %3804 = vpow2.f32 %v2202_v42 }
 0x9bb   : > { %2253 = vrot.lane.b32.xlu0 %v4439_v48, %s3867_s30  ;;  %v2182_v48 = vpop.xlane.xlu0 %2181 }
 0x9bc   : > { %v2193_v12 = vsub.f32 %v2160_v21, %v2182_v48 }
 0x9bd   : > { %v3805_v0 = vpop.eup %3804 }
 0x9be   : > { %v2219_v39 = vsel %vm414_vm2, %v3805_v0, 0.0  ;;  %v2204_v17 = vmul.f32 1.442695, %v2193_v12 }
 0x9bf   : > { %2220 = vadd.xlane.f32.xlu1 %v2219_v39 }
 0x9c2   : > { %v2185_v1 = vpop.xlane.xlu2 %2184 }
 0x9c3   : > { %v2194_v10 = vsub.f32 %v2162_v27, %v2185_v1 }
 0x9c5   : > { %v2206_v13 = vmul.f32 1.442695, %v2194_v10 }
 0x9c7   : > { %2251 = vrot.lane.b32.xlu2 %v4431_v40, %s3867_s30 }
 0x9ca   : > { %v2188_v63 = vpop.xlane.xlu2 %2187 }
 0x9cb   : > { %v2195_v2 = vsub.f32 %v2165_v23, %v2188_v63  ;;  %v2250_v23 = vpop.permute.xlu1 %2249 }
 0x9cd   : > { %v2208_v49 = vmul.f32 1.442695, %v2195_v2 }
 0x9cf   : > { %3806 = vpow2.f32 %v2208_v49  ;;  %v3706_v49 = vld [vmem:[%s4906_s6 + $0x10] sm:$0xff] }
 0x9d0   : > { %3808 = vpow2.f32 %v2200_v46  ;;  %2342 = vmatpush.bf16.msrb.mxu3 %v3706_v49  ;;  %v3528_v46 = vld [vmem:[%s3930_s12 + $0xb0] sm:$0xff] }
 0x9d1   : > { %3810 = vpow2.f32 %v2206_v13 }
 0x9d2   : > { %3812 = vpow2.f32 %v2204_v17 }
 0x9d5   : > { %v3807_v11 = vpop.eup %3806 }
 0x9d6   : > { %v2228_v3 = vsel %vm820_vm8, %v3807_v11, 0.0  ;;  %v3809_v16 = vpop.eup %3808 }
 0x9d7   : > { %2229 = vadd.xlane.f32.xlu1 %v2228_v3  ;;  %v2216_v40 = vsel %vm414_vm2, %v3809_v16, 0.0  ;;  %v3811_v53 = vpop.eup %3810  ;;  %v3527_v3 = vld [vmem:[%s3930_s12 + $0xa8] sm:$0xff] }
 0x9d8   : > { %v3813_v18 = vpop.eup %3812  ;;  %v2225_v7 = vsel %vm414_vm2, %v3811_v53, 0.0 }
 0x9d9   : > { %v2222_v22 = vsel %vm414_vm2, %v3813_v18, 0.0 }
 0x9e5   : > { %2217 = vadd.xlane.f32.xlu0 %v2216_v40 }
 0x9ed   : > { %2226 = vadd.xlane.f32.xlu0 %v2225_v7 }
 0x9f0   : > { %2223 = vadd.xlane.f32.xlu2 %v2222_v22 }
 0xa1a   : > { %v2212_v24 = vpop.xlane.xlu0 %2211 }
 0xa22   : > { %v2215_v25 = vpop.xlane.xlu2 %2214 }
 0xa23   : > { %3814 = vrcp.f32 %v2215_v25 }
 0xa24   : > { %3816 = vrcp.f32 %v2212_v24 }
 0xa29   : > { %v3815_v27 = vpop.eup %3814 }
 0xa2a   : > { %v2252_v31 = vpop.permute.xlu2 %2251  ;;  %v3817_v35 = vpop.eup %3816  ;;  %v2239_v38 = vmul.f32 %v3815_v27, %v3803_v37 }
 0xa2b   : > { %v2238_v29 = vmul.f32 %v3817_v35, %v3801_v54 }
 0xa2d   : > { %v2254_v21 = vpop.permute.xlu0 %2253  ;;  %v2245_v43 = vpack.c.bf16 %v2239_v38, %v2238_v29  ;;  %v3531_v38 = vld [vmem:[%s3930_s12 + $0xc8] sm:$0xff] }
 0xa2e   : > { %2280 = vmatpush.bf16.msrb.mxu2 %v2254_v21 }
 0xa32   : > { %2281 = vmatpush.bf16.msrb.mxu2 %v2252_v31  ;;  %v2221_v44 = vpop.xlane.xlu1 %2220 }
 0xa33   : > { %3818 = vrcp.f32 %v2221_v44 }
 0xa36   : > { %2282 = vmatpush.bf16.msrb.mxu2 %v2250_v23  ;;  %v3532_v23 = vld [vmem:[%s3930_s12 + $0xd0] sm:$0xff] }
 0xa39   : > { %3513 = vmatmul.msk.bf16.vlgmr.msrb.gmra.mxu2 %vm414_vm2, %v2245_v43  ;;  %v3819_v47 = vpop.eup %3818 }
 0xa3a   : > { %v2241_v52 = vmul.f32 %v3819_v47, %v3805_v0 }
 0xa4a   : > { %v2230_v39 = vpop.xlane.xlu1 %2229 }
 0xa58   : > { %v2218_v45 = vpop.xlane.xlu0 %2217 }
 0xa59   : > { %3820 = vrcp.f32 %v2218_v45 }
 0xa5f   : > { %v3821_v51 = vpop.eup %3820 }
 0xa60   : > { %v2240_v36 = vmul.f32 %v3821_v51, %v3809_v16  ;;  %v2227_v61 = vpop.xlane.xlu0 %2226 }
 0xa62   : > { %v2246_v32 = vpack.c.bf16 %v2241_v52, %v2240_v36 }
 0xa63   : > { %v2224_v33 = vpop.xlane.xlu2 %2223 }
 0xa64   : > { %3514 = vmatmul.msk.bf16.gmra.mxu2 %vm414_vm2, %v2246_v32  ;;  %3822 = vrcp.f32 %v2224_v33  ;;  %v3533_v32 = vld [vmem:[%s3930_s12 + $0xd8] sm:$0x1] }
 0xa65   : > { %3824 = vrcp.f32 %v2227_v61 }
 0xa66   : > { %3826 = vrcp.f32 %v2230_v39 }
 0xa6a   : > { %v3823_v54 = vpop.eup %3822 }
 0xa6b   : > { %v3825_v37 = vpop.eup %3824  ;;  %v2242_v62 = vmul.f32 %v3823_v54, %v3813_v18  ;;  %v3530_v18 = vld [vmem:[%s3930_s12 + $0xc0] sm:$0xff] }
 0xa6c   : > { %v2243_v42 = vmul.f32 %v3825_v37, %v3811_v53  ;;  %v3827_v0 = vpop.eup %3826  ;;  %v3529_v53 = vld [vmem:[%s3930_s12 + $0xb8] sm:$0xff] }
 0xa6d   : > { %v2244_v63 = vmul.f32 %v3827_v0, %v3807_v11 }
 0xa6e   : > { %v2247_v1 = vpack.c.bf16 %v2243_v42, %v2242_v62  ;;  %v1662_v42 = vadd.f32 %v4341_v55, %v4422_v26 }
 0xa6f   : > { %v2248_v2 = vpack.c.bf16 %v2244_v63, %v2244_v63 }
 0xa74   : > { %3515 = vmatmul.msk.bf16.gmra.mxu2 %vm414_vm2, %v2247_v1 }
 0xa84   : > { %3516 = vmatmul.msk.bf16.gmra.mxu2 %vm414_vm2, %v2248_v2 }
 0xabc   : > { %v2284_v6 = vpop.f32.mrf.mxu2 }
 0xabd   : > { %v2303_v11 = vmax.f32 %v2284_v6, 0.0  ;;  %v2378_v10 = vadd.f32 %v3527_v3, %v2284_v6  ;;  %v3741_v3 = vld [vmem:[%s4902_s2 + $0x3] ss:$0 sm:$0xff] }
 0xac4   : > { %v2286_v48 = vpop.f32.mrf.mxu2 }
 0xac5   : > { %v2304_v12 = vmax.f32 %v2286_v48, 0.0  ;;  %v2379_v13 = vadd.f32 %v3528_v46, %v2286_v48 }
 0xac7   : > { %v2310_v16 = vpack.c.bf16 %v2304_v12, %v2303_v11  ;;  %v2385_v17 = vpack.c.bf16 %v2379_v13, %v2378_v10 }
 0xac9   : > { %3523 = vmatmul.msk.bf16.vlgmr.msrb.gmra.mxu3 %vm344_vm0, %v2310_v16  ;;  %3541 = vmatmul.msk.bf16.vlgmr.msra.gmra.mxu0 %vm344_vm0, %v2385_v17 }
 0xae7   : > { %v2289_v40 = vpop.f32.mrf.mxu2 }
 0xae8   : > { %v2305_v22 = vmax.f32 %v2289_v40, 0.0  ;;  %v2380_v24 = vadd.f32 %v3529_v53, %v2289_v40 }
 0xaef   : > { %v2291_v7 = vpop.f32.mrf.mxu2 }
 0xaf0   : > { %v2306_v25 = vmax.f32 %v2291_v7, 0.0  ;;  %v2381_v21 = vadd.f32 %v3530_v18, %v2291_v7 }
 0xaf2   : > { %v2311_v27 = vpack.c.bf16 %v2306_v25, %v2305_v22  ;;  %v2386_v31 = vpack.c.bf16 %v2381_v21, %v2380_v24  ;;  %v1677_v25 = vadd.f32 %v4354_v60, %v4452_v5  ;;  %v3711_v5 = vld [vmem:[%s4903_s3 + $0x16c] sm:$0xff] }
 0xaf4   : > { %3524 = vmatmul.msk.bf16.gmra.mxu3 %vm344_vm0, %v2311_v27  ;;  %3542 = vmatmul.msk.bf16.gmra.mxu0 %vm344_vm0, %v2386_v31 }
 0xaf7   : > { %v2294_v35 = vpop.f32.mrf.mxu2 }
 0xaf8   : > { %v2307_v43 = vmax.f32 %v2294_v35, 0.0  ;;  %v2382_v44 = vadd.f32 %v3531_v38, %v2294_v35 }
 0xaff   : > { %v2296_v29 = vpop.f32.mrf.mxu2 }
 0xb00   : > { %v2308_v45 = vmax.f32 %v2296_v29, 0.0  ;;  %v2383_v47 = vadd.f32 %v3532_v23, %v2296_v29  ;;  %v3708_v23 = vld [vmem:[%s4903_s3 + $0x150] sm:$0xff]  ;;  %v3714_v29 = vld [vmem:[%s4903_s3 + $0x188] sm:$0xff] }
 0xb02   : > { %v2312_v51 = vpack.c.bf16 %v2308_v45, %v2307_v43  ;;  %v2387_v52 = vpack.c.bf16 %v2383_v47, %v2382_v44  ;;  %v3717_v43 = vld [vmem:[%s4903_s3 + $0x1a4] sm:$0xff]  ;;  %v3712_v44 = vld [vmem:[%s4903_s3 + $0x174] sm:$0xff] }
 0xb03   : > { %v3709_v45 = vld [vmem:[%s4903_s3 + $0x158] sm:$0xff]  ;;  %v3715_v47 = vld [vmem:[%s4903_s3 + $0x190] sm:$0xff] }
 0xb04   : > { %3525 = vmatmul.msk.bf16.gmra.mxu3 %vm344_vm0, %v2312_v51  ;;  %3543 = vmatmul.msk.bf16.gmra.mxu0 %vm344_vm0, %v2387_v52  ;;  %v3718_v51 = vld [vmem:[%s4903_s3 + $0x1ac] sm:$0xff]  ;;  %v3713_v52 = vld [vmem:[%s4903_s3 + $0x17c] sm:$0xff] }
 0xb07   : > { %v2299_v36 = vpop.f32.mrf.mxu2 }
 0xb08   : > { %v2309_v33 = vmax.f32 %v2299_v36, 0.0  ;;  %v2384_v61 = vadd.f32 %v3533_v32, %v2299_v36  ;;  %v3710_v36 = vld [vmem:[%s4903_s3 + $0x160] sm:$0xff]  ;;  %v3716_v32 = vld [vmem:[%s4903_s3 + $0x198] sm:$0xff] }
 0xb0a   : > { %v2313_v37 = vpack.c.bf16 %v2309_v33, %v2309_v33  ;;  %v2388_v62 = vpack.c.bf16 %v2384_v61, %v2384_v61  ;;  %v3719_v33 = vld [vmem:[%s4903_s3 + $0x1b4] sm:$0xff]  ;;  %v3574_v61 = vld [vmem:[%s4903_s3 + $0x184] sm:$0x1] }
 0xb0f   : > { %v2301_v54 = vpop.f32.mrf.mxu2 }
 0xb10   : > { %v3551_v54 = vld [vmem:[%s4903_s3 + $0x168] sm:$0x1] }
 0xb14   : > { %3526 = vmatmul.msk.bf16.gmra.mxu3 %vm344_vm0, %v2313_v37  ;;  %3544 = vmatmul.msk.bf16.gmra.mxu0 %vm344_vm0, %v2388_v62  ;;  %v3597_v37 = vld [vmem:[%s4903_s3 + $0x1a0] sm:$0x1]  ;;  %v3620_v62 = vld [vmem:[%s4903_s3 + $0x1bc] sm:$0x1] }
 0xb46   : > { %v2424_v0 = vpop.f32.mrf.mxu0 }
 0xb47   : > { %v2425_v35 = vadd.f32 %v3741_v3, %v2424_v0  ;;  %v2631_v0 = vunpack.c.l.b16 %v3597_v37 }
 0xb4c   : > { %v2344_v39 = vpop.f32.mrf.mxu3 }
 0xb4d   : > { %v4647_v1 = vadd.f32 %v2344_v39, %v1662_v42  ;;  %v2551_v42 = vunpack.c.l.b16 %v3574_v61  ;;  %v2468_v39 = vunpack.c.l.b16 %v3551_v54 }
 0xb4e   : > { %v2426_v63 = vpop.f32.mrf.mxu0 }
 0xb4f   : > { %v2427_v21 = vadd.f32 %v3741_v3, %v2426_v63  ;;  %v2711_v63 = vunpack.c.l.b16 %v3620_v62 }
 0xb51   : > { %v4681_v38 = vpack.c.bf16 %v2427_v21, %v2425_v35 }
 0xb54   : > { %v4649_v2 = vpop.f32.mrf.mxu3 }
 0xb71   : > { %v2429_v49 = vpop.f32.mrf.mxu0 }
 0xb72   : > { %v2430_v55 = vadd.f32 %v3741_v3, %v2429_v49  ;;  %v2555_v49 = vpack.c.b16 %v2551_v42, %v2551_v42 }
 0xb77   : > { %v2349_v6 = vpop.f32.mrf.mxu3 }
 0xb78   : > { %v4656_v46 = vadd.f32 %v2349_v6, %v1667_v4  ;;  %v2472_v4 = vpack.c.b16 %v2468_v39, %v2468_v39  ;;  %v2635_v6 = vpack.c.b16 %v2631_v0, %v2631_v0 }
 0xb79   : > { %v2431_v48 = vpop.f32.mrf.mxu0 }
 0xb7a   : > { %v2432_v26 = vadd.f32 %v3741_v3, %v2431_v48 }
 0xb7c   : > { %v4658_v11 = vpack.c.bf16 %v2432_v26, %v2430_v55 }
 0xb7e   : > { %2800 = vrot.lane.b32.xlu2 %v4658_v11, %s3864_s15 }
 0xb7f   : > { %v4662_v10 = vpop.f32.mrf.mxu3 }
 0xb81   : > { %v2434_v12 = vpop.f32.mrf.mxu0 }
 0xb82   : > { %v2435_v17 = vadd.f32 %v3741_v3, %v2434_v12 }
 0xb87   : > { %v2354_v34 = vpop.f32.mrf.mxu3 }
 0xb88   : > { %v4666_v13 = vadd.f32 %v2354_v34, %v1672_v56 }
 0xb89   : > { %v2436_v16 = vpop.f32.mrf.mxu0 }
 0xb8a   : > { %v2437_v40 = vadd.f32 %v3741_v3, %v2436_v16 }
 0xb8c   : > { %v4668_v53 = vpack.c.bf16 %v2437_v40, %v2435_v17 }
 0xb8e   : > { %2802 = vrot.lane.b32.xlu1 %v4668_v53, %s3864_s15 }
 0xb8f   : > { %v4672_v18 = vpop.f32.mrf.mxu3 }
 0xb91   : > { %v2439_v7 = vpop.f32.mrf.mxu0 }
 0xb92   : > { %v2440_v22 = vadd.f32 %v3741_v3, %v2439_v7  ;;  %v2715_v3 = vpack.c.b16 %v2711_v63, %v2711_v63 }
 0xb94   : > { %v2446_v24 = vpack.c.bf16 %v2440_v22, %v2440_v22 }
 0xb96   : > { %v2486_v58 = vand.u32 %v2446_v24, %v3954_v28  ;;  %2945 = vrot.lane.b32.xlu1 %v2446_v24, %s3867_s30  ;;  %2804 = vrot.lane.b32.xlu0 %v2446_v24, %s3864_s15 }
 0xb97   : > { %v2359_v15 = vpop.f32.mrf.mxu3 }
 0xb98   : > { %v4679_v27 = vadd.f32 %v2359_v15, %v1677_v25  ;;  %2492 = vmatpush.bf16.msra.mxu1 %v2486_v58  ;;  %2572 = vmatpush.bf16.msra.mxu2 %v2486_v58 }
 0xb99   : > { %2652 = vmatpush.bf16.msra.mxu3 %v2486_v58  ;;  %2732 = vmatpush.bf16.msrb.mxu0 %v2486_v58  ;;  %v2441_v31 = vpop.f32.mrf.mxu0 }
 0xb9c   : > { %2493 = vmatpush.bf16.msra.mxu1 %v4668_v53  ;;  %2573 = vmatpush.bf16.msra.mxu2 %v4668_v53 }
 0xb9d   : > { %2653 = vmatpush.bf16.msra.mxu3 %v4668_v53  ;;  %2733 = vmatpush.bf16.msrb.mxu0 %v4668_v53 }
 0xb9e   : > { %2798 = vrot.lane.b32.xlu0 %v4681_v38, %s3864_s15 }
 0xb9f   : > { %v2361_v60 = vpop.f32.mrf.mxu3 }
 0xba0   : > { %2494 = vmatpush.bf16.msra.mxu1 %v4658_v11  ;;  %2574 = vmatpush.bf16.msra.mxu2 %v4658_v11 }
 0xba1   : > { %2654 = vmatpush.bf16.msra.mxu3 %v4658_v11  ;;  %2734 = vmatpush.bf16.msrb.mxu0 %v4658_v11 }
 0xba4   : > { %2495 = vmatpush.bf16.msra.mxu1 %v4681_v38  ;;  %2575 = vmatpush.bf16.msra.mxu2 %v4681_v38 }
 0xba5   : > { %2655 = vmatpush.bf16.msra.mxu3 %v4681_v38  ;;  %2735 = vmatpush.bf16.msrb.mxu0 %v4681_v38 }
 0xba7   : > { %3587 = vmatmul.msk.bf16.vlgmr.msra.gmra.mxu2 %vm414_vm2, %v3711_v5  ;;  %3564 = vmatmul.msk.bf16.vlgmr.msra.gmra.mxu1 %vm414_vm2, %v3708_v23 }
 0xba8   : > { %3610 = vmatmul.msk.bf16.vlgmr.msra.gmra.mxu3 %vm414_vm2, %v3714_v29  ;;  %3633 = vmatmul.msk.bf16.vlgmr.msrb.gmra.mxu0 %vm414_vm2, %v3717_v43 }
 0xbb7   : > { %3588 = vmatmul.msk.bf16.gmra.mxu2 %vm414_vm2, %v3712_v44  ;;  %3565 = vmatmul.msk.bf16.gmra.mxu1 %vm414_vm2, %v3709_v45 }
 0xbb8   : > { %3611 = vmatmul.msk.bf16.gmra.mxu3 %vm414_vm2, %v3715_v47  ;;  %3634 = vmatmul.msk.bf16.gmra.mxu0 %vm414_vm2, %v3718_v51 }
 0xbc7   : > { %3589 = vmatmul.msk.bf16.gmra.mxu2 %vm414_vm2, %v3713_v52  ;;  %3566 = vmatmul.msk.bf16.gmra.mxu1 %vm414_vm2, %v3710_v36 }
 0xbc8   : > { %3612 = vmatmul.msk.bf16.gmra.mxu3 %vm414_vm2, %v3716_v32  ;;  %3635 = vmatmul.msk.bf16.gmra.mxu0 %vm414_vm2, %v3719_v33  ;;  %v4776_v33 = vld [vmem:[%s4904_s4 + $0x3] ss:$0 sm:$0xff] }
 0xbd7   : > { %3590 = vmatmul.msk.bf16.gmra.mxu2 %vm414_vm2, %v2555_v49  ;;  %3567 = vmatmul.msk.bf16.gmra.mxu1 %vm414_vm2, %v2472_v4 }
 0xbd8   : > { %3613 = vmatmul.msk.bf16.gmra.mxu3 %vm414_vm2, %v2635_v6  ;;  %3636 = vmatmul.msk.bf16.gmra.mxu0 %vm414_vm2, %v2715_v3  ;;  %v2801_v16 = vpop.permute.xlu2 %2800 }
 0xbd9   : > { %v2822_v17 = vsel %vm749_vm3, %v2801_v16, 0 }
 0xc00   : > { %v2803_v48 = vpop.permute.xlu1 %2802 }
 0xc01   : > { %v2825_v34 = vsel %vm749_vm3, %v2803_v48, 0 }
 0xc08   : > { %v2946_v55 = vpop.permute.xlu1 %2945  ;;  %v2805_v26 = vpop.permute.xlu0 %2804 }
 0xc09   : > { %v2963_v12 = vand.u32 %v2946_v55, %v3954_v28  ;;  %v2828_v56 = vsel %vm749_vm3, %v2805_v26, 0 }
 0xc0a   : > { %2834 = vmatpush.bf16.xpose.msrb.mxu1 %v2828_v56 }
 0xc0b   : > { %2969 = vmatpush.bf16.msrb.mxu2 %v2963_v12 }
 0xc10   : > { %v2799_v40 = vpop.permute.xlu0 %2798 }
 0xc11   : > { %v2819_v7 = vsel %vm749_vm3, %v2799_v40, 0 }
 0xc12   : > { %2835 = vmatpush.bf16.xpose.msrb.mxu1 %v2825_v34 }
 0xc1a   : > { %2836 = vmatpush.bf16.xpose.msrb.mxu1 %v2822_v17 }
 0xc22   : > { %2837 = vmatpush.bf16.xpose.msrb.mxu1 %v2819_v7 }
 0xc24   : > { %v2497_v22 = vpop.f32.mrf.mxu1 }
 0xc25   : > { %v2737_v24 = vpop.f32.mrf.mxu0  ;;  %v2516_v28 = vmul.f32 %v4046_v8, %v2497_v22 }
 0xc26   : > { %v2756_v29 = vmul.f32 %v4055_v20, %v2737_v24 }
 0xc2a   : > { %v2577_v25 = vpop.f32.mrf.mxu2 }
 0xc2b   : > { %v2596_v58 = vmul.f32 %v4048_v9, %v2577_v25  ;;  %v2657_v15 = vpop.f32.mrf.mxu3 }
 0xc2c   : > { %v2499_v21 = vpop.f32.mrf.mxu1  ;;  %v2676_v60 = vmul.f32 %v4052_v14, %v2657_v15 }
 0xc2d   : > { %v2739_v31 = vpop.f32.mrf.mxu0  ;;  %v2603_v35 = vadd.f32 %v2596_v58, %v2516_v28  ;;  %v2517_v43 = vmul.f32 %v4046_v8, %v2499_v21 }
 0xc2e   : > { %v2757_v54 = vmul.f32 %v4055_v20, %v2739_v31 }
 0xc2f   : > { %v2683_v23 = vadd.f32 %v2676_v60, %v2603_v35 }
 0xc31   : > { %v2763_v32 = vadd.f32 %v2756_v29, %v2683_v23 }
 0xc32   : > { %v2579_v5 = vpop.f32.mrf.mxu2 }
 0xc33   : > { %v2597_v44 = vmul.f32 %v4048_v9, %v2579_v5  ;;  %v2659_v45 = vpop.f32.mrf.mxu3  ;;  %v2775_v39 = vadd.f32 %v4776_v33, %v2763_v32 }
 0xc34   : > { %v2502_v47 = vpop.f32.mrf.mxu1  ;;  %v2677_v52 = vmul.f32 %v4052_v14, %v2659_v45 }
 0xc35   : > { %v2604_v51 = vadd.f32 %v2597_v44, %v2517_v43  ;;  %v2742_v36 = vpop.f32.mrf.mxu0  ;;  %v2518_v62 = vmul.f32 %v4046_v8, %v2502_v47 }
 0xc36   : > { %v2758_v12 = vmul.f32 %v4055_v20, %v2742_v36 }
 0xc37   : > { %v2684_v61 = vadd.f32 %v2677_v52, %v2604_v51 }
 0xc39   : > { %v2764_v37 = vadd.f32 %v2757_v54, %v2684_v61 }
 0xc3a   : > { %v2582_v42 = vpop.f32.mrf.mxu2 }
 0xc3b   : > { %v2776_v0 = vadd.f32 %v4776_v33, %v2764_v37  ;;  %v2598_v63 = vmul.f32 %v4048_v9, %v2582_v42  ;;  %v2662_v49 = vpop.f32.mrf.mxu3 }
 0xc3c   : > { %v2504_v4 = vpop.f32.mrf.mxu1  ;;  %v2678_v48 = vmul.f32 %v4052_v14, %v2662_v49 }
 0xc3d   : > { %v2782_v6 = vpack.c.bf16 %v2776_v0, %v2775_v39  ;;  %v2605_v3 = vadd.f32 %v2598_v63, %v2518_v62  ;;  %v2744_v55 = vpop.f32.mrf.mxu0  ;;  %v2519_v56 = vmul.f32 %v4046_v8, %v2504_v4 }
 0xc3e   : > { %v2759_v25 = vmul.f32 %v4055_v20, %v2744_v55 }
 0xc3f   : > { %3645 = vmatmul.msk.bf16.vlgmr.msrb.gmra.mxu1 %vm749_vm3, %v2782_v6  ;;  %v2685_v26 = vadd.f32 %v2678_v48, %v2605_v3 }
 0xc41   : > { %v2765_v22 = vadd.f32 %v2758_v12, %v2685_v26 }
 0xc42   : > { %v2584_v34 = vpop.f32.mrf.mxu2 }
 0xc43   : > { %v2599_v16 = vmul.f32 %v4048_v9, %v2584_v34  ;;  %v2664_v17 = vpop.f32.mrf.mxu3  ;;  %v2777_v15 = vadd.f32 %v4776_v33, %v2765_v22 }
 0xc44   : > { %v2679_v40 = vmul.f32 %v4052_v14, %v2664_v17  ;;  %v2507_v7 = vpop.f32.mrf.mxu1 }
 0xc45   : > { %v2606_v24 = vadd.f32 %v2599_v16, %v2519_v56  ;;  %v2747_v28 = vpop.f32.mrf.mxu0  ;;  %v2520_v31 = vmul.f32 %v4046_v8, %v2507_v7 }
 0xc46   : > { %v2760_v52 = vmul.f32 %v4055_v20, %v2747_v28 }
 0xc47   : > { %v2686_v58 = vadd.f32 %v2679_v40, %v2606_v24 }
 0xc49   : > { %v2766_v21 = vadd.f32 %v2759_v25, %v2686_v58 }
 0xc4a   : > { %v2587_v35 = vpop.f32.mrf.mxu2 }
 0xc4b   : > { %v2778_v60 = vadd.f32 %v4776_v33, %v2766_v21  ;;  %v2600_v5 = vmul.f32 %v4048_v9, %v2587_v35  ;;  %v2667_v23 = vpop.f32.mrf.mxu3 }
 0xc4c   : > { %v2509_v29 = vpop.f32.mrf.mxu1  ;;  %v2680_v45 = vmul.f32 %v4052_v14, %v2667_v23 }
 0xc4d   : > { %v2783_v43 = vpack.c.bf16 %v2778_v60, %v2777_v15  ;;  %v2607_v44 = vadd.f32 %v2600_v5, %v2520_v31  ;;  %v2749_v47 = vpop.f32.mrf.mxu0  ;;  %v2521_v36 = vmul.f32 %v4046_v8, %v2509_v29  ;;  %v3640_v60 = vld [vmem:[%s4905_s5 + $0xb8] sm:$0xff] }
 0xc4e   : > { %v2761_v0 = vmul.f32 %v4055_v20, %v2749_v47 }
 0xc4f   : > { %3646 = vmatmul.msk.bf16.gmra.mxu1 %vm749_vm3, %v2783_v43  ;;  %v2687_v51 = vadd.f32 %v2680_v45, %v2607_v44  ;;  %v3641_v43 = vld [vmem:[%s4905_s5 + $0xc0] sm:$0xff] }
 0xc51   : > { %v2767_v42 = vadd.f32 %v2760_v52, %v2687_v51  ;;  %v3642_v51 = vld [vmem:[%s4905_s5 + $0xc8] sm:$0xff] }
 0xc52   : > { %v2589_v32 = vpop.f32.mrf.mxu2 }
 0xc53   : > { %v2601_v61 = vmul.f32 %v4048_v9, %v2589_v32  ;;  %v2669_v54 = vpop.f32.mrf.mxu3  ;;  %v2779_v4 = vadd.f32 %v4776_v33, %v2767_v42  ;;  %v3644_v42 = vld [vmem:[%s4905_s5 + $0xd8] sm:$0x1] }
 0xc54   : > { %v2681_v37 = vmul.f32 %v4052_v14, %v2669_v54  ;;  %v2512_v62 = vpop.f32.mrf.mxu1 }
 0xc55   : > { %v2608_v39 = vadd.f32 %v2601_v61, %v2521_v36  ;;  %v2752_v63 = vpop.f32.mrf.mxu0  ;;  %v2522_v3 = vmul.f32 %v4046_v8, %v2512_v62  ;;  %v3643_v61 = vld [vmem:[%s4905_s5 + $0xd0] sm:$0xff] }
 0xc56   : > { %v2762_v22 = vmul.f32 %v4055_v20, %v2752_v63  ;;  %v3639_v20 = vld [vmem:[%s4905_s5 + $0xb0] sm:$0xff] }
 0xc57   : > { %v2688_v49 = vadd.f32 %v2681_v37, %v2608_v39 }
 0xc59   : > { %v2768_v6 = vadd.f32 %v2761_v0, %v2688_v49 }
 0xc5a   : > { %v2592_v48 = vpop.f32.mrf.mxu2 }
 0xc5b   : > { %v2780_v55 = vadd.f32 %v4776_v33, %v2768_v6  ;;  %v2602_v26 = vmul.f32 %v4048_v9, %v2592_v48  ;;  %v2672_v12 = vpop.f32.mrf.mxu3  ;;  %v3638_v9 = vld [vmem:[%s4905_s5 + $0xa8] sm:$0xff] }
 0xc5c   : > { %v2682_v56 = vmul.f32 %v4052_v14, %v2672_v12  ;;  %v2514_v34 = vpop.f32.mrf.mxu1 }
 0xc5d   : > { %v2784_v16 = vpack.c.bf16 %v2780_v55, %v2779_v4  ;;  %v2609_v17 = vadd.f32 %v2602_v26, %v2522_v3  ;;  %v2754_v40 = vpop.f32.mrf.mxu0 }
 0xc5f   : > { %3647 = vmatmul.msk.bf16.gmra.mxu1 %vm749_vm3, %v2784_v16  ;;  %v2689_v7 = vadd.f32 %v2682_v56, %v2609_v17 }
 0xc61   : > { %v2769_v25 = vadd.f32 %v2762_v22, %v2689_v7 }
 0xc62   : > { %v2594_v24 = vpop.f32.mrf.mxu2 }
 0xc63   : > { %v2674_v8 = vpop.f32.mrf.mxu3  ;;  %v2781_v28 = vadd.f32 %v4776_v33, %v2769_v25 }
 0xc65   : > { %v2785_v58 = vpack.c.bf16 %v2781_v28, %v2781_v28 }
 0xc6f   : > { %3648 = vmatmul.msk.bf16.gmra.mxu1 %vm749_vm3, %v2785_v58 }
 0xcbc   : > { %v2839_v14 = vpop.f32.mrf.mxu1 }
 0xcbd   : > { %v2840_v15 = vadd.f32 %v3638_v9, %v2839_v14 }
 0xcbf   : > { %v2858_v21 = vsel %vm414_vm2, %v2840_v15, -inf }
 0xcc0   : > { %2859 = vmax.xlane.f32.xlu1 %v2858_v21 }
 0xcc4   : > { %v2841_v31 = vpop.f32.mrf.mxu1 }
 0xcc5   : > { %v2842_v35 = vadd.f32 %v3639_v20, %v2841_v31 }
 0xcc7   : > { %v2861_v33 = vsel %vm414_vm2, %v2842_v35, -inf }
 0xcc8   : > { %2862 = vmax.xlane.f32.xlu0 %v2861_v33 }
 0xccc   : > { %v2844_v5 = vpop.f32.mrf.mxu1 }
 0xccd   : > { %v2845_v23 = vadd.f32 %v3640_v60, %v2844_v5 }
 0xccf   : > { %v2864_v29 = vsel %vm414_vm2, %v2845_v23, -inf }
 0xcd0   : > { %2865 = vmax.xlane.f32.xlu2 %v2864_v29 }
 0xcd4   : > { %v2846_v44 = vpop.f32.mrf.mxu1 }
 0xcd5   : > { %v2847_v45 = vadd.f32 %v3641_v43, %v2846_v44 }
 0xcd7   : > { %v2867_v47 = vsel %vm414_vm2, %v2847_v45, -inf }
 0xcd8   : > { %2868 = vmax.xlane.f32.xlu1 %v2867_v47 }
 0xcdc   : > { %v2849_v52 = vpop.f32.mrf.mxu1 }
 0xcdd   : > { %v2850_v36 = vadd.f32 %v3642_v51, %v2849_v52 }
 0xcdf   : > { %v2870_v32 = vsel %vm414_vm2, %v2850_v36, -inf }
 0xce0   : > { %2871 = vmax.xlane.f32.xlu0 %v2870_v32 }
 0xce4   : > { %v2851_v54 = vpop.f32.mrf.mxu1 }
 0xce5   : > { %v2852_v37 = vadd.f32 %v3643_v61, %v2851_v54 }
 0xce7   : > { %v2873_v62 = vsel %vm414_vm2, %v2852_v37, -inf }
 0xce8   : > { %2874 = vmax.xlane.f32.xlu2 %v2873_v62 }
 0xcec   : > { %v2854_v39 = vpop.f32.mrf.mxu1 }
 0xced   : > { %v2855_v0 = vadd.f32 %v3644_v42, %v2854_v39 }
 0xcef   : > { %v2876_v63 = vsel %vm820_vm8, %v2855_v0, -inf }
 0xcf0   : > { %2877 = vmax.xlane.f32.xlu2 %v2876_v63 }
 0xcf1   : > { %2939 = vrot.lane.b32.xlu1 %v4681_v38, %s3867_s30 }
 0xcf4   : > { %v2856_v49 = vpop.f32.mrf.mxu1 }
 0xd33   : > { %v2860_v4 = vpop.xlane.xlu1 %2859 }
 0xd34   : > { %v2879_v6 = vsub.f32 %v2840_v15, %v2860_v4 }
 0xd36   : > { %v2886_v3 = vmul.f32 1.442695, %v2879_v6 }
 0xd38   : > { %3828 = vpow2.f32 %v2886_v3 }
 0xd3b   : > { %v2863_v48 = vpop.xlane.xlu0 %2862 }
 0xd3c   : > { %v2880_v55 = vsub.f32 %v2842_v35, %v2863_v48 }
 0xd3e   : > { %v3829_v26 = vpop.eup %3828  ;;  %v2888_v12 = vmul.f32 1.442695, %v2880_v55 }
 0xd3f   : > { %v2900_v56 = vsel %vm414_vm2, %v3829_v26, 0.0 }
 0xd40   : > { %3830 = vpow2.f32 %v2888_v12  ;;  %2901 = vadd.xlane.f32.xlu0 %v2900_v56 }
 0xd43   : > { %v2866_v7 = vpop.xlane.xlu2 %2865 }
 0xd44   : > { %v2881_v9 = vsub.f32 %v2845_v23, %v2866_v7 }
 0xd46   : > { %v3831_v34 = vpop.eup %3830  ;;  %v2890_v21 = vmul.f32 1.442695, %v2881_v9 }
 0xd47   : > { %v2903_v16 = vsel %vm414_vm2, %v3831_v34, 0.0 }
 0xd48   : > { %2904 = vadd.xlane.f32.xlu2 %v2903_v16 }
 0xd4b   : > { %v2869_v17 = vpop.xlane.xlu1 %2868 }
 0xd4c   : > { %v2882_v40 = vsub.f32 %v2847_v45, %v2869_v17 }
 0xd4e   : > { %v2892_v38 = vmul.f32 1.442695, %v2882_v40 }
 0xd50   : > { %3832 = vpow2.f32 %v2892_v38  ;;  %v3720_v38 = vld [vmem:[%s4906_s6 + $0x18] sm:$0xff] }
 0xd51   : > { %3032 = vmatpush.bf16.msrb.mxu3 %v3720_v38 }
 0xd54   : > { %2943 = vrot.lane.b32.xlu0 %v4668_v53, %s3867_s30  ;;  %v2872_v53 = vpop.xlane.xlu0 %2871 }
 0xd55   : > { %v2883_v31 = vsub.f32 %v2850_v36, %v2872_v53 }
 0xd56   : > { %v3833_v22 = vpop.eup %3832 }
 0xd57   : > { %v2909_v24 = vsel %vm414_vm2, %v3833_v22, 0.0  ;;  %v2894_v60 = vmul.f32 1.442695, %v2883_v31 }
 0xd58   : > { %2910 = vadd.xlane.f32.xlu1 %v2909_v24 }
 0xd5b   : > { %v2875_v25 = vpop.xlane.xlu2 %2874 }
 0xd5c   : > { %v2884_v20 = vsub.f32 %v2852_v37, %v2875_v25 }
 0xd5e   : > { %v2896_v35 = vmul.f32 1.442695, %v2884_v20 }
 0xd60   : > { %2941 = vrot.lane.b32.xlu2 %v4658_v11, %s3867_s30 }
 0xd63   : > { %v2878_v8 = vpop.xlane.xlu2 %2877  ;;  %v2940_v61 = vpop.permute.xlu1 %2939 }
 0xd64   : > { %v2885_v28 = vsub.f32 %v2855_v0, %v2878_v8 }
 0xd66   : > { %v2898_v58 = vmul.f32 1.442695, %v2885_v28 }
 0xd68   : > { %3834 = vpow2.f32 %v2898_v58 }
 0xd69   : > { %3836 = vpow2.f32 %v2890_v21 }
 0xd6a   : > { %3838 = vpow2.f32 %v2896_v35 }
 0xd6b   : > { %3840 = vpow2.f32 %v2894_v60 }
 0xd6e   : > { %v3835_v14 = vpop.eup %3834 }
 0xd6f   : > { %v2918_v15 = vsel %vm820_vm8, %v3835_v14, 0.0  ;;  %v3837_v33 = vpop.eup %3836 }
 0xd70   : > { %2919 = vadd.xlane.f32.xlu1 %v2918_v15  ;;  %v2906_v11 = vsel %vm414_vm2, %v3837_v33, 0.0  ;;  %v3839_v5 = vpop.eup %3838 }
 0xd71   : > { %v3841_v29 = vpop.eup %3840  ;;  %v2915_v23 = vsel %vm414_vm2, %v3839_v5, 0.0 }
 0xd72   : > { %v2912_v43 = vsel %vm414_vm2, %v3841_v29, 0.0 }
 0xd7e   : > { %2907 = vadd.xlane.f32.xlu0 %v2906_v11 }
 0xd86   : > { %2916 = vadd.xlane.f32.xlu0 %v2915_v23 }
 0xd89   : > { %2913 = vadd.xlane.f32.xlu2 %v2912_v43 }
 0xdb3   : > { %v2902_v44 = vpop.xlane.xlu0 %2901 }
 0xdbb   : > { %v2905_v45 = vpop.xlane.xlu2 %2904 }
 0xdbc   : > { %3842 = vrcp.f32 %v2905_v45  ;;  %v1664_v45 = vadd.f32 %v4344_v19, %v4424_v30 }
 0xdbd   : > { %3844 = vrcp.f32 %v2902_v44 }
 0xdc2   : > { %v3843_v51 = vpop.eup %3842 }
 0xdc3   : > { %v2942_v52 = vpop.permute.xlu2 %2941  ;;  %v3845_v36 = vpop.eup %3844  ;;  %v2929_v32 = vmul.f32 %v3843_v51, %v3831_v34 }
 0xdc4   : > { %v2928_v54 = vmul.f32 %v3845_v36, %v3829_v26 }
 0xdc6   : > { %v2944_v47 = vpop.permute.xlu0 %2943  ;;  %v2935_v37 = vpack.c.bf16 %v2929_v32, %v2928_v54  ;;  %v1669_v54 = vadd.f32 %v4348_v57, %v4435_v41 }
 0xdc7   : > { %2970 = vmatpush.bf16.msrb.mxu2 %v2944_v47  ;;  %v2364_v47 = vadd.f32 %v4649_v2, %v1664_v45 }
 0xdc8   : > { %v2366_v19 = vadd.f32 %v4662_v10, %v1669_v54 }
 0xdcb   : > { %2971 = vmatpush.bf16.msrb.mxu2 %v2942_v52  ;;  %v2911_v62 = vpop.xlane.xlu1 %2910 }
 0xdcc   : > { %3846 = vrcp.f32 %v2911_v62 }
 0xdcf   : > { %2972 = vmatpush.bf16.msrb.mxu2 %v2940_v61 }
 0xdd2   : > { %3649 = vmatmul.msk.bf16.vlgmr.msrb.gmra.mxu2 %vm414_vm2, %v2935_v37  ;;  %v3847_v39 = vpop.eup %3846 }
 0xdd3   : > { %v2931_v63 = vmul.f32 %v3847_v39, %v3833_v22 }
 0xde3   : > { %v2920_v56 = vpop.xlane.xlu1 %2919 }
 0xdf1   : > { %v2908_v42 = vpop.xlane.xlu0 %2907 }
 0xdf2   : > { %3848 = vrcp.f32 %v2908_v42 }
 0xdf8   : > { %v3849_v0 = vpop.eup %3848 }
 0xdf9   : > { %v2930_v49 = vmul.f32 %v3849_v0, %v3837_v33  ;;  %v2917_v3 = vpop.xlane.xlu0 %2916 }
 0xdfb   : > { %v2936_v4 = vpack.c.bf16 %v2931_v63, %v2930_v49 }
 0xdfc   : > { %v2914_v6 = vpop.xlane.xlu2 %2913 }
 0xdfd   : > { %3650 = vmatmul.msk.bf16.gmra.mxu2 %vm414_vm2, %v2936_v4  ;;  %3850 = vrcp.f32 %v2914_v6 }
 0xdfe   : > { %3852 = vrcp.f32 %v2917_v3 }
 0xdff   : > { %3854 = vrcp.f32 %v2920_v56 }
 0xe03   : > { %v3851_v48 = vpop.eup %3850 }
 0xe04   : > { %v3853_v55 = vpop.eup %3852  ;;  %v2932_v26 = vmul.f32 %v3851_v48, %v3841_v29  ;;  %v3743_v29 = vld [vmem:[%s4907_s7] ss:$0 sm:$0xff] }
 0xe05   : > { %v2933_v12 = vmul.f32 %v3853_v55, %v3839_v5  ;;  %v3855_v16 = vpop.eup %3854 }
 0xe06   : > { %v2934_v17 = vmul.f32 %v3855_v16, %v3835_v14 }
 0xe07   : > { %v2937_v34 = vpack.c.bf16 %v2933_v12, %v2932_v26 }
 0xe08   : > { %v2938_v40 = vpack.c.bf16 %v2934_v17, %v2934_v17 }
 0xe0d   : > { %3651 = vmatmul.msk.bf16.gmra.mxu2 %vm414_vm2, %v2937_v34 }
 0xe1d   : > { %3652 = vmatmul.msk.bf16.gmra.mxu2 %vm414_vm2, %v2938_v40 }
 0xe55   : > { %v2974_v7 = vpop.f32.mrf.mxu2 }
 0xe56   : > { %v2993_v24 = vmax.f32 %v2974_v7, 0.0 }
 0xe5d   : > { %v2976_v22 = vpop.f32.mrf.mxu2 }
 0xe5e   : > { %v2994_v25 = vmax.f32 %v2976_v22, 0.0 }
 0xe60   : > { %v3000_v8 = vpack.c.bf16 %v2994_v25, %v2993_v24 }
 0xe62   : > { %3659 = vmatmul.msk.bf16.vlgmr.msrb.gmra.mxu3 %vm344_vm0, %v3000_v8 }
 0xe80   : > { %v2979_v28 = vpop.f32.mrf.mxu2 }
 0xe81   : > { %v2995_v9 = vmax.f32 %v2979_v28, 0.0 }
 0xe88   : > { %v2981_v58 = vpop.f32.mrf.mxu2 }
 0xe89   : > { %v2996_v14 = vmax.f32 %v2981_v58, 0.0 }
 0xe8b   : > { %v3001_v15 = vpack.c.bf16 %v2996_v14, %v2995_v9 }
 0xe8d   : > { %3660 = vmatmul.msk.bf16.gmra.mxu3 %vm344_vm0, %v3001_v15 }
 0xe90   : > { %v2984_v21 = vpop.f32.mrf.mxu2 }
 0xe91   : > { %v2997_v20 = vmax.f32 %v2984_v21, 0.0 }
 0xe98   : > { %v2986_v53 = vpop.f32.mrf.mxu2 }
 0xe99   : > { %v2998_v31 = vmax.f32 %v2986_v53, 0.0 }
 0xe9b   : > { %v3002_v35 = vpack.c.bf16 %v2998_v31, %v2997_v20 }
 0xe9d   : > { %3661 = vmatmul.msk.bf16.gmra.mxu3 %vm344_vm0, %v3002_v35 }
 0xea0   : > { %v2989_v33 = vpop.f32.mrf.mxu2 }
 0xea1   : > { %v2999_v60 = vmax.f32 %v2989_v33, 0.0 }
 0xea3   : > { %v3003_v5 = vpack.c.bf16 %v2999_v60, %v2999_v60 }
 0xea8   : > { %v2991_v11 = vpop.f32.mrf.mxu2 }
 0xead   : > { %3662 = vmatmul.msk.bf16.gmra.mxu3 %vm344_vm0, %v3003_v5 }
 0xee5   : > { %v3034_v23 = vpop.f32.mrf.mxu3 }
 0xee6   : > { %v3053_v43 = vadd.f32 %v3034_v23, %v4647_v1 }
 0xee8   : > { %v3064_v44 = vadd.f32 %v3743_v29, %v3053_v43 }
 0xeea   : > { %3072 = vst.msk [vmem:[%s4870_s20] sm:$0xff] %vm3071_vm9, %v3064_v44 }
 0xeed   : > { %v3036_v51 = vpop.f32.mrf.mxu3 }
 0xeee   : > { %v3054_v1 = vadd.f32 %v3036_v51, %v2364_v47 }
 0xef0   : > { %v3065_v52 = vadd.f32 %v3743_v29, %v3054_v1 }
 0xef2   : > { %3073 = vst.msk [vmem:[%s4870_s20 + $0x8] sm:$0xff] %vm3071_vm9, %v3065_v52 }
 0xf10   : > { %v3039_v36 = vpop.f32.mrf.mxu3 }
 0xf11   : > { %v3055_v32 = vadd.f32 %v3039_v36, %v4656_v46  ;;  %v1674_v46 = vadd.f32 %v4352_v59, %v4443_v50 }
 0xf13   : > { %v3066_v61 = vadd.f32 %v3743_v29, %v3055_v32  ;;  %v2368_v57 = vadd.f32 %v4672_v18, %v1674_v46 }
 0xf15   : > { %3074 = vst.msk [vmem:[%s4870_s20 + $0x10] sm:$0xff] %vm3071_vm9, %v3066_v61 }
 0xf18   : > { %v3041_v30 = vpop.f32.mrf.mxu3 }
 0xf19   : > { %v3056_v2 = vadd.f32 %v3041_v30, %v2366_v19 }
 0xf1b   : > { %v3067_v37 = vadd.f32 %v3743_v29, %v3056_v2 }
 0xf1d   : > { %3075 = vst.msk [vmem:[%s4870_s20 + $0x18] sm:$0xff] %vm3071_vm9, %v3067_v37 }
 0xf20   : > { %v3044_v62 = vpop.f32.mrf.mxu3 }
 0xf21   : > { %v3057_v42 = vadd.f32 %v3044_v62, %v4666_v13 }
 0xf23   : > { %v3068_v39 = vadd.f32 %v3743_v29, %v3057_v42 }
 0xf25   : > { %3076 = vst.msk [vmem:[%s4870_s20 + $0x20] sm:$0xff] %vm3071_vm9, %v3068_v39 }
 0xf28   : > { %v3046_v41 = vpop.f32.mrf.mxu3 }
 0xf29   : > { %v3058_v0 = vadd.f32 %v3046_v41, %v2368_v57 }
 0xf2b   : > { %v3069_v10 = vadd.f32 %v3743_v29, %v3058_v0 }
 0xf2d   : > { %3077 = vst.msk [vmem:[%s4870_s20 + $0x28] sm:$0xff] %vm3071_vm9, %v3069_v10 }
 0xf30   : > { %v3049_v63 = vpop.f32.mrf.mxu3 }
 0xf31   : > { %v3059_v49 = vadd.f32 %v3049_v63, %v4679_v27 }
 0xf33   : > { %v3070_v4 = vadd.f32 %v3743_v29, %v3059_v49 }
 0xf35   : > { %3079 = vst.msk [vmem:[%s4870_s20 + $0x30] sm:$0x1] %vm3078_vm10, %v3070_v4 }
 0xf38   : > { %v3051_v13 = vpop.f32.mrf.mxu3 }
 0xf39 PF: > { %s18_s27 = sadd.s32 1, %s3862_s27  }
 0xf3a   : > { %p15_p4 = scmp.ge.s32.totalorder %s18_s27, 4  }
 0xf3c   :  { %17 = sbr.rel (!%p15_p4) target bundleno = 1 (0x1), region = 115 }

</bundles_post_ra>
